<compile_context>
chip_gen: v7x
topology: tpu7x:2x2x1
jax: 0.10.0
libtpu: 0.0.40
codegen_flags: <defaults>
</compile_context>

<pallas_src>
import numpy as np
import jax
import jax.numpy as jnp
from jax.experimental import pallas as pl
from jax.experimental.pallas import tpu as pltpu  # noqa: F401  (kept for TPU-specific knobs)

# ----------------------------- model hyperparameters ------------------------------
NUM_CHANNELS = 3
INPUT_SIZE   = 16
PATCH_SIZE   = 4
EMB_DIM      = 32
NUM_HEADS    = 4
HEAD_DIM     = EMB_DIM // NUM_HEADS            # 8
DEPTH        = 2                               # number of transformer blocks
MLP_RATIO    = 4
MLP_DIM      = EMB_DIM * MLP_RATIO             # 128
GRID_SIZE    = INPUT_SIZE // PATCH_SIZE        # 4
NUM_PATCHES  = GRID_SIZE * GRID_SIZE           # 16
OUT_DIM      = NUM_CHANNELS * PATCH_SIZE ** 2  # 48
OUT_PAD      = 128                             # lane-dense (padded) head output width
LN_EPS       = 1e-6
GLOBAL_POOL  = False                           # => cls token present in input, dropped in forward

# ------------------------- packed small-vector row layout -------------------------
# One (VROWS, 128) f32 slab holds every small vector; each logical vector starts at
# lane 0 of its own row (no lane-offset slicing in the kernel).
R_LN1W, R_LN1B, R_LN2W, R_LN2B, R_ATTNB, R_FC2B, R_FC1B = 0, 1, 2, 3, 4, 5, 6
R_BQ  = 7                       # NUM_HEADS rows (per-head q bias, hd lanes)
R_BK  = 7 + NUM_HEADS           # NUM_HEADS rows (per-head k bias)
R_BVP = 7 + 2 * NUM_HEADS       # NUM_HEADS rows (per-head value@proj bias, D lanes)
LROWS = 7 + 3 * NUM_HEADS       # rows per layer (= 19)
GROWS = DEPTH * LROWS           # 38
R_FNW, R_FNB, R_HEADB = GROWS, GROWS + 1, GROWS + 2
VROWS = ((GROWS + 3 + 7) // 8) * 8   # 48 (pad row count to a multiple of 8)


# ----------------------- 2D sin-cos positional embedding (numpy) -------------------
def _get_1d_sincos_pos_embed_from_grid(embed_dim, pos):
    omega = np.arange(embed_dim // 2, dtype=np.float64)
    omega /= embed_dim / 2.0
    omega = 1.0 / 10000 ** omega
    pos = pos.reshape(-1)
    out = np.einsum("m,d->md", pos, omega)
    return np.concatenate([np.sin(out), np.cos(out)], axis=1)


def _get_2d_sincos_pos_embed_from_grid(embed_dim, grid):
    emb_h = _get_1d_sincos_pos_embed_from_grid(embed_dim // 2, grid[0])
    emb_w = _get_1d_sincos_pos_embed_from_grid(embed_dim // 2, grid[1])
    return np.concatenate([emb_h, emb_w], axis=1)


def get_2d_sincos_pos_embed(embed_dim, grid_size, cls_token=False):
    grid_h = np.arange(grid_size, dtype=np.float32)
    grid_w = np.arange(grid_size, dtype=np.float32)
    grid = np.meshgrid(grid_w, grid_h)
    grid = np.stack(grid, axis=0).reshape([2, 1, grid_size, grid_size])
    pos_embed = _get_2d_sincos_pos_embed_from_grid(embed_dim, grid)
    if cls_token:
        pos_embed = np.concatenate([np.zeros([1, embed_dim]), pos_embed], axis=0)
    return pos_embed


# --------------------------------- Pallas kernel -----------------------------------
def mae_decoder_kernel(feat_ref, pos_ref, vecs_ref, wqk_ref, wup_ref, wdown_ref, out_ref):
    # Single invocation: full (B, 1+N, D) activations resident in VMEM (<1 MiB).
    B = feat_ref.shape[0]
    N = NUM_PATCHES
    D = EMB_DIM
    BN = B * N
    hd = HEAD_DIM
    scale = jnp.float32(1.0 / np.sqrt(hd))

    def row(r, n):
        # One packed small-vector row, as a (1, n) broadcastable operand (lane offset 0).
        return vecs_ref[r, :n].reshape(1, n)

    def layer_norm(v, w_row, b_row):
        mu = jnp.mean(v, axis=-1, keepdims=True)
        var = jnp.maximum(jnp.mean(v * v, axis=-1, keepdims=True) - mu * mu, 0.0)
        return (v - mu) * jax.lax.rsqrt(var + LN_EPS) * w_row + b_row

    # Drop cls token in-kernel, add pos-embed (broadcast over batch), flatten (B, N) into
    # the matmul M dimension so every linear layer runs on a (B*N, D) slab.
    x_full = feat_ref[...]                                    # (B, 1+N, D)
    x = (x_full[:, 1:, :] + pos_ref[...][None, :, :]).reshape(BN, D)

    for l in range(DEPTH):                                    # fully unrolled (DEPTH = 2)
        base = l * LROWS

        # ---- multi-head self-attention block (pre-norm) ----
        h_ln = layer_norm(x, row(base + R_LN1W, D), row(base + R_LN1B, D))
        acc = None
        for h in range(NUM_HEADS):
            # Per-head weights were pre-split at pack time -> no lane-offset slices here.
            qh = jnp.dot(h_ln, wqk_ref[l, 0, h],
                         preferred_element_type=jnp.float32) + row(base + R_BQ + h, hd)
            kh = jnp.dot(h_ln, wqk_ref[l, 1, h],
                         preferred_element_type=jnp.float32) + row(base + R_BK + h, hd)
            # Output projection folded into the value weights: v'_h = v_h @ proj_rows_h.
            vh = jnp.dot(h_ln, wdown_ref[l, 1, h * D:(h + 1) * D, :],
                         preferred_element_type=jnp.float32) + row(base + R_BVP + h, D)

            q3 = qh.reshape(B, N, hd)
            k3 = kh.reshape(B, N, hd)
            v3 = vh.reshape(B, N, D)

            att = jnp.einsum("bnd,bmd->bnm", q3, k3,
                             preferred_element_type=jnp.float32) * scale
            att = att - jnp.max(att, axis=-1, keepdims=True)
            p = jnp.exp(att)
            p = p * pl.reciprocal(jnp.sum(p, axis=-1, keepdims=True), approx=True)
            part = jnp.einsum("bnm,bmd->bnd", p, v3,
                              preferred_element_type=jnp.float32)       # (B, N, D)
            acc = part if acc is None else acc + part
        x = x + acc.reshape(BN, D) + row(base + R_ATTNB, D)

        # ---- MLP block (exact erf GELU, matching nn.GELU) ----
        h2 = layer_norm(x, row(base + R_LN2W, D), row(base + R_LN2B, D))
        u = jnp.dot(h2, wup_ref[l], preferred_element_type=jnp.float32) + row(base + R_FC1B, MLP_DIM)
        u = 0.5 * u * (1.0 + jax.lax.erf(u * jnp.float32(1.0 / np.sqrt(2.0))))
        d = jnp.dot(u, wdown_ref[l, 0], preferred_element_type=jnp.float32) + row(base + R_FC2B, D)
        x = x + d

    # ---- final norm + decoder head (lane-padded to 128 outputs -> unmasked stores) ----
    x = layer_norm(x, row(R_FNW, D), row(R_FNB, D))
    out = jnp.dot(x, wup_ref[DEPTH], preferred_element_type=jnp.float32) + row(R_HEADB, OUT_PAD)
    out_ref[...] = out.astype(out_ref.dtype)


# --------------------------- one-time parameter packing -----------------------------
def pack_params(params):
    D, H, hd, M = EMB_DIM, NUM_HEADS, HEAD_DIM, MLP_DIM
    assert H * D == M, "wdown packing relies on H*D == MLP_DIM"

    qkv_w = np.asarray(params["qkv_w"])        # (DEPTH, D, 3D)
    qkv_b = np.asarray(params["qkv_b"])        # (DEPTH, 3D)
    proj_w = np.asarray(params["proj_w"])      # (DEPTH, D, D)

    Wq = qkv_w[:, :, 0:D].reshape(DEPTH, D, H, hd).transpose(0, 2, 1, 3)       # (DEPTH,H,D,hd)
    Wk = qkv_w[:, :, D:2 * D].reshape(DEPTH, D, H, hd).transpose(0, 2, 1, 3)
    Wv = qkv_w[:, :, 2 * D:3 * D].reshape(DEPTH, D, H, hd).transpose(0, 2, 1, 3)
    Pw = proj_w.reshape(DEPTH, H, hd, D)                                        # proj rows per head
    wqk = np.stack([Wq, Wk], axis=1)                                            # (DEPTH,2,H,D,hd)

    # Fold output projection into value weights/biases (same math as concat-then-project).
    wvp = np.einsum("lhdk,lhkc->lhdc", Wv, Pw)                                  # (DEPTH,H,D,D)
    bq = qkv_b[:, 0:D].reshape(DEPTH, H, hd)
    bk = qkv_b[:, D:2 * D].reshape(DEPTH, H, hd)
    bv = qkv_b[:, 2 * D:3 * D].reshape(DEPTH, H, hd)
    bvp = np.einsum("lhk,lhkc->lhc", bv, Pw)                                    # (DEPTH,H,D)

    # Stacked "up" matmuls (D -> 128 lanes): fc1 per layer + zero-padded head.
    head_w_pad = np.zeros((D, OUT_PAD), np.float32)
    head_w_pad[:, :OUT_DIM] = np.asarray(params["head_w"])
    wup = np.concatenate([np.asarray(params["fc1_w"]), head_w_pad[None]], axis=0)  # (DEPTH+1,D,128)

    # Stacked "down" matmuls (128 rows -> D): [l,0]=fc2, [l,1]=per-head folded value proj.
    wdown = np.stack([np.asarray(params["fc2_w"]), wvp.reshape(DEPTH, H * D, D)], axis=1)

    # Packed small-vector slab.
    vecs = np.zeros((VROWS, 128), np.float32)
    for l in range(DEPTH):
        b = l * LROWS
        vecs[b + R_LN1W, :D] = np.asarray(params["ln1_w"][l])
        vecs[b + R_LN1B, :D] = np.asarray(params["ln1_b"][l])
        vecs[b + R_LN2W, :D] = np.asarray(params["ln2_w"][l])
        vecs[b + R_LN2B, :D] = np.asarray(params["ln2_b"][l])
        vecs[b + R_ATTNB, :D] = np.asarray(params["proj_b"][l])
        vecs[b + R_FC2B, :D] = np.asarray(params["fc2_b"][l])
        vecs[b + R_FC1B, :M] = np.asarray(params["fc1_b"][l])
        for h in range(H):
            vecs[b + R_BQ + h, :hd] = bq[l, h]
            vecs[b + R_BK + h, :hd] = bk[l, h]
            vecs[b + R_BVP + h, :D] = bvp[l, h]
    vecs[R_FNW, :D] = np.asarray(params["fnorm_w"][0])
    vecs[R_FNB, :D] = np.asarray(params["fnorm_b"][0])
    vecs[R_HEADB, :OUT_DIM] = np.asarray(params["head_b"][0])

    pos = np.asarray(params["pos_embed"])[0, :NUM_PATCHES, :]   # (N, D), includes zero cls row

    return {
        "pos": jnp.asarray(pos, jnp.float32),
        "vecs": jnp.asarray(vecs, jnp.float32),
        "wqk": jnp.asarray(wqk, jnp.float32),
        "wup": jnp.asarray(wup, jnp.float32),
        "wdown": jnp.asarray(wdown, jnp.float32),
    }


# ------------------------------- wrapper / glue (jitted) ----------------------------
def _forward(features, packed):
    # features: (B, 1+N, D) when global_pool is False (cls token present).
    B = features.shape[0]
    N = NUM_PATCHES

    patches = pl.pallas_call(
        mae_decoder_kernel,
        out_shape=jax.ShapeDtypeStruct((B * N, OUT_PAD), jnp.float32),
    )(features, packed["pos"], packed["vecs"], packed["wqk"], packed["wup"], packed["wdown"])

    # Drop lane padding; patch2img: 'b (h w) (p1 p2 c) -> b c (h p1) (w p2)'  (layout glue,
    # fused into the same jitted executable).
    patches = patches[:, :OUT_DIM].reshape(B, N, OUT_DIM)
    h = w = GRID_SIZE
    img = patches.reshape(B, h, w, PATCH_SIZE, PATCH_SIZE, NUM_CHANNELS)
    img = jnp.transpose(img, (0, 5, 1, 3, 2, 4))
    return img.reshape(B, NUM_CHANNELS, h * PATCH_SIZE, w * PATCH_SIZE)


mae_decoder_forward = jax.jit(_forward)


# ------------------------------ pure-JAX reference ----------------------------------
def reference_forward(features, params):
    x = features[:, 1:, :] if not GLOBAL_POOL else features
    x = x + params["pos_embed"][:, :x.shape[1], :]
    B, N, D = x.shape
    hd = D // NUM_HEADS

    def ln(x, w, b):
        mu = jnp.mean(x, axis=-1, keepdims=True)
        var = jnp.mean((x - mu) ** 2, axis=-1, keepdims=True)
        return (x - mu) * jax.lax.rsqrt(var + LN_EPS) * w + b

    for l in range(DEPTH):
        h = ln(x, params["ln1_w"][l], params["ln1_b"][l])
        qkv = h @ params["qkv_w"][l] + params["qkv_b"][l]
        q, k, v = jnp.split(qkv, 3, axis=-1)
        q = q.reshape(B, N, NUM_HEADS, hd).transpose(0, 2, 1, 3)
        k = k.reshape(B, N, NUM_HEADS, hd).transpose(0, 2, 1, 3)
        v = v.reshape(B, N, NUM_HEADS, hd).transpose(0, 2, 1, 3)
        att = jnp.einsum("bhnd,bhmd->bhnm", q, k) / np.sqrt(hd)
        p = jax.nn.softmax(att, axis=-1)
        o = jnp.einsum("bhnm,bhmd->bhnd", p, v).transpose(0, 2, 1, 3).reshape(B, N, D)
        x = x + o @ params["proj_w"][l] + params["proj_b"][l]
        h = ln(x, params["ln2_w"][l], params["ln2_b"][l])
        h = h @ params["fc1_w"][l] + params["fc1_b"][l]
        h = 0.5 * h * (1.0 + jax.lax.erf(h / np.sqrt(2.0)))
        h = h @ params["fc2_w"][l] + params["fc2_b"][l]
        x = x + h
    x = ln(x, params["fnorm_w"][0], params["fnorm_b"][0])
    patches = x @ params["head_w"] + params["head_b"][0]
    h = w = GRID_SIZE
    img = patches.reshape(B, h, w, PATCH_SIZE, PATCH_SIZE, NUM_CHANNELS)
    img = jnp.transpose(img, (0, 5, 1, 3, 2, 4))
    return img.reshape(B, NUM_CHANNELS, h * PATCH_SIZE, w * PATCH_SIZE)


# --------------------------------- param init ---------------------------------------
def init_params(key):
    D, M = EMB_DIM, MLP_DIM
    ks = jax.random.split(key, 8)
    std = 0.02
    params = {
        # NOTE: mask_token exists in the module but is unused in forward(); omitted.
        "pos_embed": jnp.asarray(
            get_2d_sincos_pos_embed(D, GRID_SIZE, cls_token=not GLOBAL_POOL),
            dtype=jnp.float32)[None, :, :],                         # (1, 1+N, D)
        "ln1_w": jnp.ones((DEPTH, D), jnp.float32),
        "ln1_b": jnp.zeros((DEPTH, D), jnp.float32),
        "qkv_w": std * jax.random.normal(ks[0], (DEPTH, D, 3 * D), jnp.float32),
        "qkv_b": jnp.zeros((DEPTH, 3 * D), jnp.float32),
        "proj_w": std * jax.random.normal(ks[1], (DEPTH, D, D), jnp.float32),
        "proj_b": jnp.zeros((DEPTH, D), jnp.float32),
        "ln2_w": jnp.ones((DEPTH, D), jnp.float32),
        "ln2_b": jnp.zeros((DEPTH, D), jnp.float32),
        "fc1_w": std * jax.random.normal(ks[2], (DEPTH, D, M), jnp.float32),
        "fc1_b": jnp.zeros((DEPTH, M), jnp.float32),
        "fc2_w": std * jax.random.normal(ks[3], (DEPTH, M, D), jnp.float32),
        "fc2_b": jnp.zeros((DEPTH, D), jnp.float32),
        "fnorm_w": jnp.ones((1, D), jnp.float32),
        "fnorm_b": jnp.zeros((1, D), jnp.float32),
        "head_w": std * jax.random.normal(ks[4], (D, OUT_DIM), jnp.float32),
        "head_b": jnp.zeros((1, OUT_DIM), jnp.float32),
    }
    return params


# ------------------------------------ main -------------------------------------------
if __name__ == "__main__":
    key = jax.random.PRNGKey(0)
    kp, kx = jax.random.split(key)
    params = init_params(kp)
    packed = pack_params(params)           # one-time packing / padding (outside the hot path)

    B = 2
    T = NUM_PATCHES + (0 if GLOBAL_POOL else 1)   # 17 tokens (cls + 16 patches)
    features = jax.random.normal(kx, (B, T, EMB_DIM), jnp.float32)

    img = mae_decoder_forward(features, packed)
    img = jax.block_until_ready(img)

    ref = jax.block_until_ready(reference_forward(features, params))
    np.testing.assert_allclose(np.asarray(img), np.asarray(ref), atol=2e-3, rtol=2e-3)

    assert img.shape == (B, NUM_CHANNELS, INPUT_SIZE, INPUT_SIZE)
    print("KERNEL_OK")
</pallas_src>

<mosaic_0001>
module attributes {stable_mosaic.version = 11 : i64} {
  func.func @mae_decoder_kernel(%arg0: memref<2x17x32xf32, #tpu.memory_space<vmem>>, %arg1: memref<16x32xf32, #tpu.memory_space<vmem>>, %arg2: memref<48x128xf32, #tpu.memory_space<vmem>>, %arg3: memref<2x2x4x32x8xf32, #tpu.memory_space<vmem>>, %arg4: memref<3x32x128xf32, #tpu.memory_space<vmem>>, %arg5: memref<2x2x128x32xf32, #tpu.memory_space<vmem>>, %arg6: memref<32x128xf32, #tpu.memory_space<vmem>>) attributes {dimension_semantics = [], scalar_prefetch = 0 : i64, scratch_operands = 0 : i64, tpu.core_type = #tpu.core_type<tc>} {
    %c0 = arith.constant 0 : index
    %c0_0 = arith.constant 0 : index
    %c0_1 = arith.constant 0 : index
    %0 = vector.load %arg0[%c0, %c0_0, %c0_1] : memref<2x17x32xf32, #tpu.memory_space<vmem>>, vector<2x17x32xf32>
    %1 = vector.extract_strided_slice %0 {offsets = [0, 1, 0], sizes = [2, 16, 32], strides = [1, 1, 1]} : vector<2x17x32xf32> to vector<2x16x32xf32>
    %c0_2 = arith.constant 0 : index
    %c0_3 = arith.constant 0 : index
    %2 = vector.load %arg1[%c0_2, %c0_3] : memref<16x32xf32, #tpu.memory_space<vmem>>, vector<16x32xf32>
    %3 = vector.shape_cast %2 : vector<16x32xf32> to vector<1x16x32xf32>
    %4 = vector.broadcast %3 : vector<1x16x32xf32> to vector<2x16x32xf32>
    %5 = arith.addf %1, %4 : vector<2x16x32xf32>
    %6 = vector.shape_cast %5 : vector<2x16x32xf32> to vector<32x32xf32>
    %c0_4 = arith.constant 0 : index
    %c0_5 = arith.constant 0 : index
    %7 = vector.load %arg2[%c0_4, %c0_5] : memref<48x128xf32, #tpu.memory_space<vmem>>, vector<1x32xf32>
    %8 = vector.shape_cast %7 : vector<1x32xf32> to vector<32xf32>
    %9 = vector.shape_cast %8 : vector<32xf32> to vector<1x32xf32>
    %c1 = arith.constant 1 : index
    %c0_6 = arith.constant 0 : index
    %10 = vector.load %arg2[%c1, %c0_6] : memref<48x128xf32, #tpu.memory_space<vmem>>, vector<1x32xf32>
    %11 = vector.shape_cast %10 : vector<1x32xf32> to vector<32xf32>
    %12 = vector.shape_cast %11 : vector<32xf32> to vector<1x32xf32>
    %cst = arith.constant dense<0.000000e+00> : vector<32xf32>
    %13 = vector.multi_reduction <add>, %6, %cst [1] : vector<32x32xf32> to vector<32xf32>
    %14 = vector.shape_cast %13 : vector<32xf32> to vector<32x1xf32>
    %cst_7 = arith.constant 3.200000e+01 : f32
    %15 = vector.broadcast %cst_7 : f32 to vector<32x1xf32>
    %16 = arith.divf %14, %15 : vector<32x1xf32>
    %17 = arith.mulf %6, %6 : vector<32x32xf32>
    %cst_8 = arith.constant dense<0.000000e+00> : vector<32xf32>
    %18 = vector.multi_reduction <add>, %17, %cst_8 [1] : vector<32x32xf32> to vector<32xf32>
    %19 = vector.shape_cast %18 : vector<32xf32> to vector<32x1xf32>
    %cst_9 = arith.constant 3.200000e+01 : f32
    %20 = vector.broadcast %cst_9 : f32 to vector<32x1xf32>
    %21 = arith.divf %19, %20 : vector<32x1xf32>
    %22 = arith.mulf %16, %16 : vector<32x1xf32>
    %23 = arith.subf %21, %22 : vector<32x1xf32>
    %cst_10 = arith.constant 0.000000e+00 : f32
    %24 = vector.broadcast %cst_10 : f32 to vector<32x1xf32>
    %25 = arith.maximumf %23, %24 : vector<32x1xf32>
    %26 = vector.broadcast %16 : vector<32x1xf32> to vector<32x32xf32>
    %27 = arith.subf %6, %26 : vector<32x32xf32>
    %cst_11 = arith.constant 9.99999997E-7 : f32
    %28 = vector.broadcast %cst_11 : f32 to vector<32x1xf32>
    %29 = arith.addf %25, %28 : vector<32x1xf32>
    %30 = math.rsqrt %29 : vector<32x1xf32>
    %31 = vector.broadcast %30 : vector<32x1xf32> to vector<32x32xf32>
    %32 = arith.mulf %27, %31 : vector<32x32xf32>
    %33 = vector.broadcast %9 : vector<1x32xf32> to vector<32x32xf32>
    %34 = arith.mulf %32, %33 : vector<32x32xf32>
    %35 = vector.broadcast %12 : vector<1x32xf32> to vector<32x32xf32>
    %36 = arith.addf %34, %35 : vector<32x32xf32>
    %c0_12 = arith.constant 0 : index
    %c0_13 = arith.constant 0 : index
    %c0_14 = arith.constant 0 : index
    %c0_15 = arith.constant 0 : index
    %c0_16 = arith.constant 0 : index
    %37 = vector.load %arg3[%c0_12, %c0_13, %c0_14, %c0_15, %c0_16] : memref<2x2x4x32x8xf32, #tpu.memory_space<vmem>>, vector<1x1x1x32x8xf32>
    %38 = vector.shape_cast %37 : vector<1x1x1x32x8xf32> to vector<32x8xf32>
    %cst_17 = arith.constant dense<0.000000e+00> : vector<32x8xf32>
    %39 = tpu.matmul %36, %38, %cst_17 {dimension_numbers = #tpu.dot_dimension_numbers<[1], [0], [0], [1], [0, 0, 1, 1], [], []>} : vector<32x32xf32>, vector<32x8xf32>, vector<32x8xf32> -> vector<32x8xf32>
    %c7 = arith.constant 7 : index
    %c0_18 = arith.constant 0 : index
    %40 = vector.load %arg2[%c7, %c0_18] : memref<48x128xf32, #tpu.memory_space<vmem>>, vector<1x8xf32>
    %41 = vector.shape_cast %40 : vector<1x8xf32> to vector<8xf32>
    %42 = vector.shape_cast %41 : vector<8xf32> to vector<1x8xf32>
    %43 = vector.broadcast %42 : vector<1x8xf32> to vector<32x8xf32>
    %44 = arith.addf %39, %43 : vector<32x8xf32>
    %c0_19 = arith.constant 0 : index
    %c1_20 = arith.constant 1 : index
    %c0_21 = arith.constant 0 : index
    %c0_22 = arith.constant 0 : index
    %c0_23 = arith.constant 0 : index
    %45 = vector.load %arg3[%c0_19, %c1_20, %c0_21, %c0_22, %c0_23] : memref<2x2x4x32x8xf32, #tpu.memory_space<vmem>>, vector<1x1x1x32x8xf32>
    %46 = vector.shape_cast %45 : vector<1x1x1x32x8xf32> to vector<32x8xf32>
    %cst_24 = arith.constant dense<0.000000e+00> : vector<32x8xf32>
    %47 = tpu.matmul %36, %46, %cst_24 {dimension_numbers = #tpu.dot_dimension_numbers<[1], [0], [0], [1], [0, 0, 1, 1], [], []>} : vector<32x32xf32>, vector<32x8xf32>, vector<32x8xf32> -> vector<32x8xf32>
    %c11 = arith.constant 11 : index
    %c0_25 = arith.constant 0 : index
    %48 = vector.load %arg2[%c11, %c0_25] : memref<48x128xf32, #tpu.memory_space<vmem>>, vector<1x8xf32>
    %49 = vector.shape_cast %48 : vector<1x8xf32> to vector<8xf32>
    %50 = vector.shape_cast %49 : vector<8xf32> to vector<1x8xf32>
    %51 = vector.broadcast %50 : vector<1x8xf32> to vector<32x8xf32>
    %52 = arith.addf %47, %51 : vector<32x8xf32>
    %c0_26 = arith.constant 0 : index
    %c1_27 = arith.constant 1 : index
    %c0_28 = arith.constant 0 : index
    %c0_29 = arith.constant 0 : index
    %53 = vector.load %arg5[%c0_26, %c1_27, %c0_28, %c0_29] : memref<2x2x128x32xf32, #tpu.memory_space<vmem>>, vector<1x1x32x32xf32>
    %54 = vector.shape_cast %53 : vector<1x1x32x32xf32> to vector<32x32xf32>
    %cst_30 = arith.constant dense<0.000000e+00> : vector<32x32xf32>
    %55 = tpu.matmul %36, %54, %cst_30 {dimension_numbers = #tpu.dot_dimension_numbers<[1], [0], [0], [1], [0, 0, 1, 1], [], []>} : vector<32x32xf32>, vector<32x32xf32>, vector<32x32xf32> -> vector<32x32xf32>
    %c15 = arith.constant 15 : index
    %c0_31 = arith.constant 0 : index
    %56 = vector.load %arg2[%c15, %c0_31] : memref<48x128xf32, #tpu.memory_space<vmem>>, vector<1x32xf32>
    %57 = vector.shape_cast %56 : vector<1x32xf32> to vector<32xf32>
    %58 = vector.shape_cast %57 : vector<32xf32> to vector<1x32xf32>
    %59 = vector.broadcast %58 : vector<1x32xf32> to vector<32x32xf32>
    %60 = arith.addf %55, %59 : vector<32x32xf32>
    %61 = vector.shape_cast %44 : vector<32x8xf32> to vector<2x16x8xf32>
    %62 = vector.shape_cast %52 : vector<32x8xf32> to vector<2x16x8xf32>
    %63 = vector.shape_cast %60 : vector<32x32xf32> to vector<2x16x32xf32>
    "tpu.trace_start"() <{level = 10 : i32, message = "bnd,bmd->bnm"}> : () -> ()
    %cst_32 = arith.constant dense<0.000000e+00> : vector<2x16x16xf32>
    %64 = tpu.matmul %61, %62, %cst_32 {dimension_numbers = #tpu.dot_dimension_numbers<[2], [2], [1], [1], [0, 0, 0, 1, 1, 1], [0], [0]>} : vector<2x16x8xf32>, vector<2x16x8xf32>, vector<2x16x16xf32> -> vector<2x16x16xf32>
    "tpu.trace_stop"() : () -> ()
    %cst_33 = arith.constant 0.353553385 : f32
    %65 = vector.broadcast %cst_33 : f32 to vector<2x16x16xf32>
    %66 = arith.mulf %64, %65 : vector<2x16x16xf32>
    %cst_34 = arith.constant dense<0xFF800000> : vector<2x16xf32>
    %67 = vector.multi_reduction <maximumf>, %66, %cst_34 [2] : vector<2x16x16xf32> to vector<2x16xf32>
    %68 = vector.shape_cast %67 : vector<2x16xf32> to vector<2x16x1xf32>
    %69 = vector.broadcast %68 : vector<2x16x1xf32> to vector<2x16x16xf32>
    %70 = arith.subf %66, %69 : vector<2x16x16xf32>
    %71 = math.exp %70 : vector<2x16x16xf32>
    %cst_35 = arith.constant dense<0.000000e+00> : vector<2x16xf32>
    %72 = vector.multi_reduction <add>, %71, %cst_35 [2] : vector<2x16x16xf32> to vector<2x16xf32>
    %73 = vector.shape_cast %72 : vector<2x16xf32> to vector<2x16x1xf32>
    %74 = tpu.reciprocal %73 {approx = true} : vector<2x16x1xf32> -> vector<2x16x1xf32>
    %75 = vector.broadcast %74 : vector<2x16x1xf32> to vector<2x16x16xf32>
    %76 = arith.mulf %71, %75 : vector<2x16x16xf32>
    "tpu.trace_start"() <{level = 10 : i32, message = "bnm,bmd->bnd"}> : () -> ()
    %cst_36 = arith.constant dense<0.000000e+00> : vector<2x16x32xf32>
    %77 = tpu.matmul %76, %63, %cst_36 {dimension_numbers = #tpu.dot_dimension_numbers<[2], [1], [1], [2], [0, 0, 0, 1, 1, 2], [0], [0]>} : vector<2x16x16xf32>, vector<2x16x32xf32>, vector<2x16x32xf32> -> vector<2x16x32xf32>
    "tpu.trace_stop"() : () -> ()
    %c0_37 = arith.constant 0 : index
    %c0_38 = arith.constant 0 : index
    %c1_39 = arith.constant 1 : index
    %c0_40 = arith.constant 0 : index
    %c0_41 = arith.constant 0 : index
    %78 = vector.load %arg3[%c0_37, %c0_38, %c1_39, %c0_40, %c0_41] : memref<2x2x4x32x8xf32, #tpu.memory_space<vmem>>, vector<1x1x1x32x8xf32>
    %79 = vector.shape_cast %78 : vector<1x1x1x32x8xf32> to vector<32x8xf32>
    %cst_42 = arith.constant dense<0.000000e+00> : vector<32x8xf32>
    %80 = tpu.matmul %36, %79, %cst_42 {dimension_numbers = #tpu.dot_dimension_numbers<[1], [0], [0], [1], [0, 0, 1, 1], [], []>} : vector<32x32xf32>, vector<32x8xf32>, vector<32x8xf32> -> vector<32x8xf32>
    %c8 = arith.constant 8 : index
    %c0_43 = arith.constant 0 : index
    %81 = vector.load %arg2[%c8, %c0_43] : memref<48x128xf32, #tpu.memory_space<vmem>>, vector<1x8xf32>
    %82 = vector.shape_cast %81 : vector<1x8xf32> to vector<8xf32>
    %83 = vector.shape_cast %82 : vector<8xf32> to vector<1x8xf32>
    %84 = vector.broadcast %83 : vector<1x8xf32> to vector<32x8xf32>
    %85 = arith.addf %80, %84 : vector<32x8xf32>
    %c0_44 = arith.constant 0 : index
    %c1_45 = arith.constant 1 : index
    %c1_46 = arith.constant 1 : index
    %c0_47 = arith.constant 0 : index
    %c0_48 = arith.constant 0 : index
    %86 = vector.load %arg3[%c0_44, %c1_45, %c1_46, %c0_47, %c0_48] : memref<2x2x4x32x8xf32, #tpu.memory_space<vmem>>, vector<1x1x1x32x8xf32>
    %87 = vector.shape_cast %86 : vector<1x1x1x32x8xf32> to vector<32x8xf32>
    %cst_49 = arith.constant dense<0.000000e+00> : vector<32x8xf32>
    %88 = tpu.matmul %36, %87, %cst_49 {dimension_numbers = #tpu.dot_dimension_numbers<[1], [0], [0], [1], [0, 0, 1, 1], [], []>} : vector<32x32xf32>, vector<32x8xf32>, vector<32x8xf32> -> vector<32x8xf32>
    %c12 = arith.constant 12 : index
    %c0_50 = arith.constant 0 : index
    %89 = vector.load %arg2[%c12, %c0_50] : memref<48x128xf32, #tpu.memory_space<vmem>>, vector<1x8xf32>
    %90 = vector.shape_cast %89 : vector<1x8xf32> to vector<8xf32>
    %91 = vector.shape_cast %90 : vector<8xf32> to vector<1x8xf32>
    %92 = vector.broadcast %91 : vector<1x8xf32> to vector<32x8xf32>
    %93 = arith.addf %88, %92 : vector<32x8xf32>
    %c0_51 = arith.constant 0 : index
    %c1_52 = arith.constant 1 : index
    %c32 = arith.constant 32 : index
    %c0_53 = arith.constant 0 : index
    %94 = vector.load %arg5[%c0_51, %c1_52, %c32, %c0_53] : memref<2x2x128x32xf32, #tpu.memory_space<vmem>>, vector<1x1x32x32xf32>
    %95 = vector.shape_cast %94 : vector<1x1x32x32xf32> to vector<32x32xf32>
    %cst_54 = arith.constant dense<0.000000e+00> : vector<32x32xf32>
    %96 = tpu.matmul %36, %95, %cst_54 {dimension_numbers = #tpu.dot_dimension_numbers<[1], [0], [0], [1], [0, 0, 1, 1], [], []>} : vector<32x32xf32>, vector<32x32xf32>, vector<32x32xf32> -> vector<32x32xf32>
    %c16 = arith.constant 16 : index
    %c0_55 = arith.constant 0 : index
    %97 = vector.load %arg2[%c16, %c0_55] : memref<48x128xf32, #tpu.memory_space<vmem>>, vector<1x32xf32>
    %98 = vector.shape_cast %97 : vector<1x32xf32> to vector<32xf32>
    %99 = vector.shape_cast %98 : vector<32xf32> to vector<1x32xf32>
    %100 = vector.broadcast %99 : vector<1x32xf32> to vector<32x32xf32>
    %101 = arith.addf %96, %100 : vector<32x32xf32>
    %102 = vector.shape_cast %85 : vector<32x8xf32> to vector<2x16x8xf32>
    %103 = vector.shape_cast %93 : vector<32x8xf32> to vector<2x16x8xf32>
    %104 = vector.shape_cast %101 : vector<32x32xf32> to vector<2x16x32xf32>
    "tpu.trace_start"() <{level = 10 : i32, message = "bnd,bmd->bnm"}> : () -> ()
    %cst_56 = arith.constant dense<0.000000e+00> : vector<2x16x16xf32>
    %105 = tpu.matmul %102, %103, %cst_56 {dimension_numbers = #tpu.dot_dimension_numbers<[2], [2], [1], [1], [0, 0, 0, 1, 1, 1], [0], [0]>} : vector<2x16x8xf32>, vector<2x16x8xf32>, vector<2x16x16xf32> -> vector<2x16x16xf32>
    "tpu.trace_stop"() : () -> ()
    %cst_57 = arith.constant 0.353553385 : f32
    %106 = vector.broadcast %cst_57 : f32 to vector<2x16x16xf32>
    %107 = arith.mulf %105, %106 : vector<2x16x16xf32>
    %cst_58 = arith.constant dense<0xFF800000> : vector<2x16xf32>
    %108 = vector.multi_reduction <maximumf>, %107, %cst_58 [2] : vector<2x16x16xf32> to vector<2x16xf32>
    %109 = vector.shape_cast %108 : vector<2x16xf32> to vector<2x16x1xf32>
    %110 = vector.broadcast %109 : vector<2x16x1xf32> to vector<2x16x16xf32>
    %111 = arith.subf %107, %110 : vector<2x16x16xf32>
    %112 = math.exp %111 : vector<2x16x16xf32>
    %cst_59 = arith.constant dense<0.000000e+00> : vector<2x16xf32>
    %113 = vector.multi_reduction <add>, %112, %cst_59 [2] : vector<2x16x16xf32> to vector<2x16xf32>
    %114 = vector.shape_cast %113 : vector<2x16xf32> to vector<2x16x1xf32>
    %115 = tpu.reciprocal %114 {approx = true} : vector<2x16x1xf32> -> vector<2x16x1xf32>
    %116 = vector.broadcast %115 : vector<2x16x1xf32> to vector<2x16x16xf32>
    %117 = arith.mulf %112, %116 : vector<2x16x16xf32>
    "tpu.trace_start"() <{level = 10 : i32, message = "bnm,bmd->bnd"}> : () -> ()
    %cst_60 = arith.constant dense<0.000000e+00> : vector<2x16x32xf32>
    %118 = tpu.matmul %117, %104, %cst_60 {dimension_numbers = #tpu.dot_dimension_numbers<[2], [1], [1], [2], [0, 0, 0, 1, 1, 2], [0], [0]>} : vector<2x16x16xf32>, vector<2x16x32xf32>, vector<2x16x32xf32> -> vector<2x16x32xf32>
    "tpu.trace_stop"() : () -> ()
    %119 = arith.addf %77, %118 : vector<2x16x32xf32>
    %c0_61 = arith.constant 0 : index
    %c0_62 = arith.constant 0 : index
    %c2 = arith.constant 2 : index
    %c0_63 = arith.constant 0 : index
    %c0_64 = arith.constant 0 : index
    %120 = vector.load %arg3[%c0_61, %c0_62, %c2, %c0_63, %c0_64] : memref<2x2x4x32x8xf32, #tpu.memory_space<vmem>>, vector<1x1x1x32x8xf32>
    %121 = vector.shape_cast %120 : vector<1x1x1x32x8xf32> to vector<32x8xf32>
    %cst_65 = arith.constant dense<0.000000e+00> : vector<32x8xf32>
    %122 = tpu.matmul %36, %121, %cst_65 {dimension_numbers = #tpu.dot_dimension_numbers<[1], [0], [0], [1], [0, 0, 1, 1], [], []>} : vector<32x32xf32>, vector<32x8xf32>, vector<32x8xf32> -> vector<32x8xf32>
    %c9 = arith.constant 9 : index
    %c0_66 = arith.constant 0 : index
    %123 = vector.load %arg2[%c9, %c0_66] : memref<48x128xf32, #tpu.memory_space<vmem>>, vector<1x8xf32>
    %124 = vector.shape_cast %123 : vector<1x8xf32> to vector<8xf32>
    %125 = vector.shape_cast %124 : vector<8xf32> to vector<1x8xf32>
    %126 = vector.broadcast %125 : vector<1x8xf32> to vector<32x8xf32>
    %127 = arith.addf %122, %126 : vector<32x8xf32>
    %c0_67 = arith.constant 0 : index
    %c1_68 = arith.constant 1 : index
    %c2_69 = arith.constant 2 : index
    %c0_70 = arith.constant 0 : index
    %c0_71 = arith.constant 0 : index
    %128 = vector.load %arg3[%c0_67, %c1_68, %c2_69, %c0_70, %c0_71] : memref<2x2x4x32x8xf32, #tpu.memory_space<vmem>>, vector<1x1x1x32x8xf32>
    %129 = vector.shape_cast %128 : vector<1x1x1x32x8xf32> to vector<32x8xf32>
    %cst_72 = arith.constant dense<0.000000e+00> : vector<32x8xf32>
    %130 = tpu.matmul %36, %129, %cst_72 {dimension_numbers = #tpu.dot_dimension_numbers<[1], [0], [0], [1], [0, 0, 1, 1], [], []>} : vector<32x32xf32>, vector<32x8xf32>, vector<32x8xf32> -> vector<32x8xf32>
    %c13 = arith.constant 13 : index
    %c0_73 = arith.constant 0 : index
    %131 = vector.load %arg2[%c13, %c0_73] : memref<48x128xf32, #tpu.memory_space<vmem>>, vector<1x8xf32>
    %132 = vector.shape_cast %131 : vector<1x8xf32> to vector<8xf32>
    %133 = vector.shape_cast %132 : vector<8xf32> to vector<1x8xf32>
    %134 = vector.broadcast %133 : vector<1x8xf32> to vector<32x8xf32>
    %135 = arith.addf %130, %134 : vector<32x8xf32>
    %c0_74 = arith.constant 0 : index
    %c1_75 = arith.constant 1 : index
    %c64 = arith.constant 64 : index
    %c0_76 = arith.constant 0 : index
    %136 = vector.load %arg5[%c0_74, %c1_75, %c64, %c0_76] : memref<2x2x128x32xf32, #tpu.memory_space<vmem>>, vector<1x1x32x32xf32>
    %137 = vector.shape_cast %136 : vector<1x1x32x32xf32> to vector<32x32xf32>
    %cst_77 = arith.constant dense<0.000000e+00> : vector<32x32xf32>
    %138 = tpu.matmul %36, %137, %cst_77 {dimension_numbers = #tpu.dot_dimension_numbers<[1], [0], [0], [1], [0, 0, 1, 1], [], []>} : vector<32x32xf32>, vector<32x32xf32>, vector<32x32xf32> -> vector<32x32xf32>
    %c17 = arith.constant 17 : index
    %c0_78 = arith.constant 0 : index
    %139 = vector.load %arg2[%c17, %c0_78] : memref<48x128xf32, #tpu.memory_space<vmem>>, vector<1x32xf32>
    %140 = vector.shape_cast %139 : vector<1x32xf32> to vector<32xf32>
    %141 = vector.shape_cast %140 : vector<32xf32> to vector<1x32xf32>
    %142 = vector.broadcast %141 : vector<1x32xf32> to vector<32x32xf32>
    %143 = arith.addf %138, %142 : vector<32x32xf32>
    %144 = vector.shape_cast %127 : vector<32x8xf32> to vector<2x16x8xf32>
    %145 = vector.shape_cast %135 : vector<32x8xf32> to vector<2x16x8xf32>
    %146 = vector.shape_cast %143 : vector<32x32xf32> to vector<2x16x32xf32>
    "tpu.trace_start"() <{level = 10 : i32, message = "bnd,bmd->bnm"}> : () -> ()
    %cst_79 = arith.constant dense<0.000000e+00> : vector<2x16x16xf32>
    %147 = tpu.matmul %144, %145, %cst_79 {dimension_numbers = #tpu.dot_dimension_numbers<[2], [2], [1], [1], [0, 0, 0, 1, 1, 1], [0], [0]>} : vector<2x16x8xf32>, vector<2x16x8xf32>, vector<2x16x16xf32> -> vector<2x16x16xf32>
    "tpu.trace_stop"() : () -> ()
    %cst_80 = arith.constant 0.353553385 : f32
    %148 = vector.broadcast %cst_80 : f32 to vector<2x16x16xf32>
    %149 = arith.mulf %147, %148 : vector<2x16x16xf32>
    %cst_81 = arith.constant dense<0xFF800000> : vector<2x16xf32>
    %150 = vector.multi_reduction <maximumf>, %149, %cst_81 [2] : vector<2x16x16xf32> to vector<2x16xf32>
    %151 = vector.shape_cast %150 : vector<2x16xf32> to vector<2x16x1xf32>
    %152 = vector.broadcast %151 : vector<2x16x1xf32> to vector<2x16x16xf32>
    %153 = arith.subf %149, %152 : vector<2x16x16xf32>
    %154 = math.exp %153 : vector<2x16x16xf32>
    %cst_82 = arith.constant dense<0.000000e+00> : vector<2x16xf32>
    %155 = vector.multi_reduction <add>, %154, %cst_82 [2] : vector<2x16x16xf32> to vector<2x16xf32>
    %156 = vector.shape_cast %155 : vector<2x16xf32> to vector<2x16x1xf32>
    %157 = tpu.reciprocal %156 {approx = true} : vector<2x16x1xf32> -> vector<2x16x1xf32>
    %158 = vector.broadcast %157 : vector<2x16x1xf32> to vector<2x16x16xf32>
    %159 = arith.mulf %154, %158 : vector<2x16x16xf32>
    "tpu.trace_start"() <{level = 10 : i32, message = "bnm,bmd->bnd"}> : () -> ()
    %cst_83 = arith.constant dense<0.000000e+00> : vector<2x16x32xf32>
    %160 = tpu.matmul %159, %146, %cst_83 {dimension_numbers = #tpu.dot_dimension_numbers<[2], [1], [1], [2], [0, 0, 0, 1, 1, 2], [0], [0]>} : vector<2x16x16xf32>, vector<2x16x32xf32>, vector<2x16x32xf32> -> vector<2x16x32xf32>
    "tpu.trace_stop"() : () -> ()
    %161 = arith.addf %119, %160 : vector<2x16x32xf32>
    %c0_84 = arith.constant 0 : index
    %c0_85 = arith.constant 0 : index
    %c3 = arith.constant 3 : index
    %c0_86 = arith.constant 0 : index
    %c0_87 = arith.constant 0 : index
    %162 = vector.load %arg3[%c0_84, %c0_85, %c3, %c0_86, %c0_87] : memref<2x2x4x32x8xf32, #tpu.memory_space<vmem>>, vector<1x1x1x32x8xf32>
    %163 = vector.shape_cast %162 : vector<1x1x1x32x8xf32> to vector<32x8xf32>
    %cst_88 = arith.constant dense<0.000000e+00> : vector<32x8xf32>
    %164 = tpu.matmul %36, %163, %cst_88 {dimension_numbers = #tpu.dot_dimension_numbers<[1], [0], [0], [1], [0, 0, 1, 1], [], []>} : vector<32x32xf32>, vector<32x8xf32>, vector<32x8xf32> -> vector<32x8xf32>
    %c10 = arith.constant 10 : index
    %c0_89 = arith.constant 0 : index
    %165 = vector.load %arg2[%c10, %c0_89] : memref<48x128xf32, #tpu.memory_space<vmem>>, vector<1x8xf32>
    %166 = vector.shape_cast %165 : vector<1x8xf32> to vector<8xf32>
    %167 = vector.shape_cast %166 : vector<8xf32> to vector<1x8xf32>
    %168 = vector.broadcast %167 : vector<1x8xf32> to vector<32x8xf32>
    %169 = arith.addf %164, %168 : vector<32x8xf32>
    %c0_90 = arith.constant 0 : index
    %c1_91 = arith.constant 1 : index
    %c3_92 = arith.constant 3 : index
    %c0_93 = arith.constant 0 : index
    %c0_94 = arith.constant 0 : index
    %170 = vector.load %arg3[%c0_90, %c1_91, %c3_92, %c0_93, %c0_94] : memref<2x2x4x32x8xf32, #tpu.memory_space<vmem>>, vector<1x1x1x32x8xf32>
    %171 = vector.shape_cast %170 : vector<1x1x1x32x8xf32> to vector<32x8xf32>
    %cst_95 = arith.constant dense<0.000000e+00> : vector<32x8xf32>
    %172 = tpu.matmul %36, %171, %cst_95 {dimension_numbers = #tpu.dot_dimension_numbers<[1], [0], [0], [1], [0, 0, 1, 1], [], []>} : vector<32x32xf32>, vector<32x8xf32>, vector<32x8xf32> -> vector<32x8xf32>
    %c14 = arith.constant 14 : index
    %c0_96 = arith.constant 0 : index
    %173 = vector.load %arg2[%c14, %c0_96] : memref<48x128xf32, #tpu.memory_space<vmem>>, vector<1x8xf32>
    %174 = vector.shape_cast %173 : vector<1x8xf32> to vector<8xf32>
    %175 = vector.shape_cast %174 : vector<8xf32> to vector<1x8xf32>
    %176 = vector.broadcast %175 : vector<1x8xf32> to vector<32x8xf32>
    %177 = arith.addf %172, %176 : vector<32x8xf32>
    %c0_97 = arith.constant 0 : index
    %c1_98 = arith.constant 1 : index
    %c96 = arith.constant 96 : index
    %c0_99 = arith.constant 0 : index
    %178 = vector.load %arg5[%c0_97, %c1_98, %c96, %c0_99] : memref<2x2x128x32xf32, #tpu.memory_space<vmem>>, vector<1x1x32x32xf32>
    %179 = vector.shape_cast %178 : vector<1x1x32x32xf32> to vector<32x32xf32>
    %cst_100 = arith.constant dense<0.000000e+00> : vector<32x32xf32>
    %180 = tpu.matmul %36, %179, %cst_100 {dimension_numbers = #tpu.dot_dimension_numbers<[1], [0], [0], [1], [0, 0, 1, 1], [], []>} : vector<32x32xf32>, vector<32x32xf32>, vector<32x32xf32> -> vector<32x32xf32>
    %c18 = arith.constant 18 : index
    %c0_101 = arith.constant 0 : index
    %181 = vector.load %arg2[%c18, %c0_101] : memref<48x128xf32, #tpu.memory_space<vmem>>, vector<1x32xf32>
    %182 = vector.shape_cast %181 : vector<1x32xf32> to vector<32xf32>
    %183 = vector.shape_cast %182 : vector<32xf32> to vector<1x32xf32>
    %184 = vector.broadcast %183 : vector<1x32xf32> to vector<32x32xf32>
    %185 = arith.addf %180, %184 : vector<32x32xf32>
    %186 = vector.shape_cast %169 : vector<32x8xf32> to vector<2x16x8xf32>
    %187 = vector.shape_cast %177 : vector<32x8xf32> to vector<2x16x8xf32>
    %188 = vector.shape_cast %185 : vector<32x32xf32> to vector<2x16x32xf32>
    "tpu.trace_start"() <{level = 10 : i32, message = "bnd,bmd->bnm"}> : () -> ()
    %cst_102 = arith.constant dense<0.000000e+00> : vector<2x16x16xf32>
    %189 = tpu.matmul %186, %187, %cst_102 {dimension_numbers = #tpu.dot_dimension_numbers<[2], [2], [1], [1], [0, 0, 0, 1, 1, 1], [0], [0]>} : vector<2x16x8xf32>, vector<2x16x8xf32>, vector<2x16x16xf32> -> vector<2x16x16xf32>
    "tpu.trace_stop"() : () -> ()
    %cst_103 = arith.constant 0.353553385 : f32
    %190 = vector.broadcast %cst_103 : f32 to vector<2x16x16xf32>
    %191 = arith.mulf %189, %190 : vector<2x16x16xf32>
    %cst_104 = arith.constant dense<0xFF800000> : vector<2x16xf32>
    %192 = vector.multi_reduction <maximumf>, %191, %cst_104 [2] : vector<2x16x16xf32> to vector<2x16xf32>
    %193 = vector.shape_cast %192 : vector<2x16xf32> to vector<2x16x1xf32>
    %194 = vector.broadcast %193 : vector<2x16x1xf32> to vector<2x16x16xf32>
    %195 = arith.subf %191, %194 : vector<2x16x16xf32>
    %196 = math.exp %195 : vector<2x16x16xf32>
    %cst_105 = arith.constant dense<0.000000e+00> : vector<2x16xf32>
    %197 = vector.multi_reduction <add>, %196, %cst_105 [2] : vector<2x16x16xf32> to vector<2x16xf32>
    %198 = vector.shape_cast %197 : vector<2x16xf32> to vector<2x16x1xf32>
    %199 = tpu.reciprocal %198 {approx = true} : vector<2x16x1xf32> -> vector<2x16x1xf32>
    %200 = vector.broadcast %199 : vector<2x16x1xf32> to vector<2x16x16xf32>
    %201 = arith.mulf %196, %200 : vector<2x16x16xf32>
    "tpu.trace_start"() <{level = 10 : i32, message = "bnm,bmd->bnd"}> : () -> ()
    %cst_106 = arith.constant dense<0.000000e+00> : vector<2x16x32xf32>
    %202 = tpu.matmul %201, %188, %cst_106 {dimension_numbers = #tpu.dot_dimension_numbers<[2], [1], [1], [2], [0, 0, 0, 1, 1, 2], [0], [0]>} : vector<2x16x16xf32>, vector<2x16x32xf32>, vector<2x16x32xf32> -> vector<2x16x32xf32>
    "tpu.trace_stop"() : () -> ()
    %203 = arith.addf %161, %202 : vector<2x16x32xf32>
    %204 = vector.shape_cast %203 : vector<2x16x32xf32> to vector<32x32xf32>
    %205 = arith.addf %6, %204 : vector<32x32xf32>
    %c4 = arith.constant 4 : index
    %c0_107 = arith.constant 0 : index
    %206 = vector.load %arg2[%c4, %c0_107] : memref<48x128xf32, #tpu.memory_space<vmem>>, vector<1x32xf32>
    %207 = vector.shape_cast %206 : vector<1x32xf32> to vector<32xf32>
    %208 = vector.shape_cast %207 : vector<32xf32> to vector<1x32xf32>
    %209 = vector.broadcast %208 : vector<1x32xf32> to vector<32x32xf32>
    %210 = arith.addf %205, %209 : vector<32x32xf32>
    %c2_108 = arith.constant 2 : index
    %c0_109 = arith.constant 0 : index
    %211 = vector.load %arg2[%c2_108, %c0_109] : memref<48x128xf32, #tpu.memory_space<vmem>>, vector<1x32xf32>
    %212 = vector.shape_cast %211 : vector<1x32xf32> to vector<32xf32>
    %213 = vector.shape_cast %212 : vector<32xf32> to vector<1x32xf32>
    %c3_110 = arith.constant 3 : index
    %c0_111 = arith.constant 0 : index
    %214 = vector.load %arg2[%c3_110, %c0_111] : memref<48x128xf32, #tpu.memory_space<vmem>>, vector<1x32xf32>
    %215 = vector.shape_cast %214 : vector<1x32xf32> to vector<32xf32>
    %216 = vector.shape_cast %215 : vector<32xf32> to vector<1x32xf32>
    %cst_112 = arith.constant dense<0.000000e+00> : vector<32xf32>
    %217 = vector.multi_reduction <add>, %210, %cst_112 [1] : vector<32x32xf32> to vector<32xf32>
    %218 = vector.shape_cast %217 : vector<32xf32> to vector<32x1xf32>
    %cst_113 = arith.constant 3.200000e+01 : f32
    %219 = vector.broadcast %cst_113 : f32 to vector<32x1xf32>
    %220 = arith.divf %218, %219 : vector<32x1xf32>
    %221 = arith.mulf %210, %210 : vector<32x32xf32>
    %cst_114 = arith.constant dense<0.000000e+00> : vector<32xf32>
    %222 = vector.multi_reduction <add>, %221, %cst_114 [1] : vector<32x32xf32> to vector<32xf32>
    %223 = vector.shape_cast %222 : vector<32xf32> to vector<32x1xf32>
    %cst_115 = arith.constant 3.200000e+01 : f32
    %224 = vector.broadcast %cst_115 : f32 to vector<32x1xf32>
    %225 = arith.divf %223, %224 : vector<32x1xf32>
    %226 = arith.mulf %220, %220 : vector<32x1xf32>
    %227 = arith.subf %225, %226 : vector<32x1xf32>
    %cst_116 = arith.constant 0.000000e+00 : f32
    %228 = vector.broadcast %cst_116 : f32 to vector<32x1xf32>
    %229 = arith.maximumf %227, %228 : vector<32x1xf32>
    %230 = vector.broadcast %220 : vector<32x1xf32> to vector<32x32xf32>
    %231 = arith.subf %210, %230 : vector<32x32xf32>
    %cst_117 = arith.constant 9.99999997E-7 : f32
    %232 = vector.broadcast %cst_117 : f32 to vector<32x1xf32>
    %233 = arith.addf %229, %232 : vector<32x1xf32>
    %234 = math.rsqrt %233 : vector<32x1xf32>
    %235 = vector.broadcast %234 : vector<32x1xf32> to vector<32x32xf32>
    %236 = arith.mulf %231, %235 : vector<32x32xf32>
    %237 = vector.broadcast %213 : vector<1x32xf32> to vector<32x32xf32>
    %238 = arith.mulf %236, %237 : vector<32x32xf32>
    %239 = vector.broadcast %216 : vector<1x32xf32> to vector<32x32xf32>
    %240 = arith.addf %238, %239 : vector<32x32xf32>
    %c0_118 = arith.constant 0 : index
    %c0_119 = arith.constant 0 : index
    %c0_120 = arith.constant 0 : index
    %241 = vector.load %arg4[%c0_118, %c0_119, %c0_120] : memref<3x32x128xf32, #tpu.memory_space<vmem>>, vector<1x32x128xf32>
    %242 = vector.shape_cast %241 : vector<1x32x128xf32> to vector<32x128xf32>
    %cst_121 = arith.constant dense<0.000000e+00> : vector<32x128xf32>
    %243 = tpu.matmul %240, %242, %cst_121 {dimension_numbers = #tpu.dot_dimension_numbers<[1], [0], [0], [1], [0, 0, 1, 1], [], []>} : vector<32x32xf32>, vector<32x128xf32>, vector<32x128xf32> -> vector<32x128xf32>
    %c6 = arith.constant 6 : index
    %c0_122 = arith.constant 0 : index
    %244 = vector.load %arg2[%c6, %c0_122] : memref<48x128xf32, #tpu.memory_space<vmem>>, vector<1x128xf32>
    %245 = vector.shape_cast %244 : vector<1x128xf32> to vector<128xf32>
    %246 = vector.shape_cast %245 : vector<128xf32> to vector<1x128xf32>
    %247 = vector.broadcast %246 : vector<1x128xf32> to vector<32x128xf32>
    %248 = arith.addf %243, %247 : vector<32x128xf32>
    %cst_123 = arith.constant 5.000000e-01 : f32
    %249 = vector.broadcast %cst_123 : f32 to vector<32x128xf32>
    %250 = arith.mulf %249, %248 : vector<32x128xf32>
    %cst_124 = arith.constant 0.707106769 : f32
    %251 = vector.broadcast %cst_124 : f32 to vector<32x128xf32>
    %252 = arith.mulf %248, %251 : vector<32x128xf32>
    %253 = math.erf %252 : vector<32x128xf32>
    %cst_125 = arith.constant 1.000000e+00 : f32
    %254 = vector.broadcast %cst_125 : f32 to vector<32x128xf32>
    %255 = arith.addf %254, %253 : vector<32x128xf32>
    %256 = arith.mulf %250, %255 : vector<32x128xf32>
    %c0_126 = arith.constant 0 : index
    %c0_127 = arith.constant 0 : index
    %c0_128 = arith.constant 0 : index
    %c0_129 = arith.constant 0 : index
    %257 = vector.load %arg5[%c0_126, %c0_127, %c0_128, %c0_129] : memref<2x2x128x32xf32, #tpu.memory_space<vmem>>, vector<1x1x128x32xf32>
    %258 = vector.shape_cast %257 : vector<1x1x128x32xf32> to vector<128x32xf32>
    %cst_130 = arith.constant dense<0.000000e+00> : vector<32x32xf32>
    %259 = tpu.matmul %256, %258, %cst_130 {dimension_numbers = #tpu.dot_dimension_numbers<[1], [0], [0], [1], [0, 0, 1, 1], [], []>} : vector<32x128xf32>, vector<128x32xf32>, vector<32x32xf32> -> vector<32x32xf32>
    %c5 = arith.constant 5 : index
    %c0_131 = arith.constant 0 : index
    %260 = vector.load %arg2[%c5, %c0_131] : memref<48x128xf32, #tpu.memory_space<vmem>>, vector<1x32xf32>
    %261 = vector.shape_cast %260 : vector<1x32xf32> to vector<32xf32>
    %262 = vector.shape_cast %261 : vector<32xf32> to vector<1x32xf32>
    %263 = vector.broadcast %262 : vector<1x32xf32> to vector<32x32xf32>
    %264 = arith.addf %259, %263 : vector<32x32xf32>
    %265 = arith.addf %210, %264 : vector<32x32xf32>
    %c19 = arith.constant 19 : index
    %c0_132 = arith.constant 0 : index
    %266 = vector.load %arg2[%c19, %c0_132] : memref<48x128xf32, #tpu.memory_space<vmem>>, vector<1x32xf32>
    %267 = vector.shape_cast %266 : vector<1x32xf32> to vector<32xf32>
    %268 = vector.shape_cast %267 : vector<32xf32> to vector<1x32xf32>
    %c20 = arith.constant 20 : index
    %c0_133 = arith.constant 0 : index
    %269 = vector.load %arg2[%c20, %c0_133] : memref<48x128xf32, #tpu.memory_space<vmem>>, vector<1x32xf32>
    %270 = vector.shape_cast %269 : vector<1x32xf32> to vector<32xf32>
    %271 = vector.shape_cast %270 : vector<32xf32> to vector<1x32xf32>
    %cst_134 = arith.constant dense<0.000000e+00> : vector<32xf32>
    %272 = vector.multi_reduction <add>, %265, %cst_134 [1] : vector<32x32xf32> to vector<32xf32>
    %273 = vector.shape_cast %272 : vector<32xf32> to vector<32x1xf32>
    %cst_135 = arith.constant 3.200000e+01 : f32
    %274 = vector.broadcast %cst_135 : f32 to vector<32x1xf32>
    %275 = arith.divf %273, %274 : vector<32x1xf32>
    %276 = arith.mulf %265, %265 : vector<32x32xf32>
    %cst_136 = arith.constant dense<0.000000e+00> : vector<32xf32>
    %277 = vector.multi_reduction <add>, %276, %cst_136 [1] : vector<32x32xf32> to vector<32xf32>
    %278 = vector.shape_cast %277 : vector<32xf32> to vector<32x1xf32>
    %cst_137 = arith.constant 3.200000e+01 : f32
    %279 = vector.broadcast %cst_137 : f32 to vector<32x1xf32>
    %280 = arith.divf %278, %279 : vector<32x1xf32>
    %281 = arith.mulf %275, %275 : vector<32x1xf32>
    %282 = arith.subf %280, %281 : vector<32x1xf32>
    %cst_138 = arith.constant 0.000000e+00 : f32
    %283 = vector.broadcast %cst_138 : f32 to vector<32x1xf32>
    %284 = arith.maximumf %282, %283 : vector<32x1xf32>
    %285 = vector.broadcast %275 : vector<32x1xf32> to vector<32x32xf32>
    %286 = arith.subf %265, %285 : vector<32x32xf32>
    %cst_139 = arith.constant 9.99999997E-7 : f32
    %287 = vector.broadcast %cst_139 : f32 to vector<32x1xf32>
    %288 = arith.addf %284, %287 : vector<32x1xf32>
    %289 = math.rsqrt %288 : vector<32x1xf32>
    %290 = vector.broadcast %289 : vector<32x1xf32> to vector<32x32xf32>
    %291 = arith.mulf %286, %290 : vector<32x32xf32>
    %292 = vector.broadcast %268 : vector<1x32xf32> to vector<32x32xf32>
    %293 = arith.mulf %291, %292 : vector<32x32xf32>
    %294 = vector.broadcast %271 : vector<1x32xf32> to vector<32x32xf32>
    %295 = arith.addf %293, %294 : vector<32x32xf32>
    %c1_140 = arith.constant 1 : index
    %c0_141 = arith.constant 0 : index
    %c0_142 = arith.constant 0 : index
    %c0_143 = arith.constant 0 : index
    %c0_144 = arith.constant 0 : index
    %296 = vector.load %arg3[%c1_140, %c0_141, %c0_142, %c0_143, %c0_144] : memref<2x2x4x32x8xf32, #tpu.memory_space<vmem>>, vector<1x1x1x32x8xf32>
    %297 = vector.shape_cast %296 : vector<1x1x1x32x8xf32> to vector<32x8xf32>
    %cst_145 = arith.constant dense<0.000000e+00> : vector<32x8xf32>
    %298 = tpu.matmul %295, %297, %cst_145 {dimension_numbers = #tpu.dot_dimension_numbers<[1], [0], [0], [1], [0, 0, 1, 1], [], []>} : vector<32x32xf32>, vector<32x8xf32>, vector<32x8xf32> -> vector<32x8xf32>
    %c26 = arith.constant 26 : index
    %c0_146 = arith.constant 0 : index
    %299 = vector.load %arg2[%c26, %c0_146] : memref<48x128xf32, #tpu.memory_space<vmem>>, vector<1x8xf32>
    %300 = vector.shape_cast %299 : vector<1x8xf32> to vector<8xf32>
    %301 = vector.shape_cast %300 : vector<8xf32> to vector<1x8xf32>
    %302 = vector.broadcast %301 : vector<1x8xf32> to vector<32x8xf32>
    %303 = arith.addf %298, %302 : vector<32x8xf32>
    %c1_147 = arith.constant 1 : index
    %c1_148 = arith.constant 1 : index
    %c0_149 = arith.constant 0 : index
    %c0_150 = arith.constant 0 : index
    %c0_151 = arith.constant 0 : index
    %304 = vector.load %arg3[%c1_147, %c1_148, %c0_149, %c0_150, %c0_151] : memref<2x2x4x32x8xf32, #tpu.memory_space<vmem>>, vector<1x1x1x32x8xf32>
    %305 = vector.shape_cast %304 : vector<1x1x1x32x8xf32> to vector<32x8xf32>
    %cst_152 = arith.constant dense<0.000000e+00> : vector<32x8xf32>
    %306 = tpu.matmul %295, %305, %cst_152 {dimension_numbers = #tpu.dot_dimension_numbers<[1], [0], [0], [1], [0, 0, 1, 1], [], []>} : vector<32x32xf32>, vector<32x8xf32>, vector<32x8xf32> -> vector<32x8xf32>
    %c30 = arith.constant 30 : index
    %c0_153 = arith.constant 0 : index
    %307 = vector.load %arg2[%c30, %c0_153] : memref<48x128xf32, #tpu.memory_space<vmem>>, vector<1x8xf32>
    %308 = vector.shape_cast %307 : vector<1x8xf32> to vector<8xf32>
    %309 = vector.shape_cast %308 : vector<8xf32> to vector<1x8xf32>
    %310 = vector.broadcast %309 : vector<1x8xf32> to vector<32x8xf32>
    %311 = arith.addf %306, %310 : vector<32x8xf32>
    %c1_154 = arith.constant 1 : index
    %c1_155 = arith.constant 1 : index
    %c0_156 = arith.constant 0 : index
    %c0_157 = arith.constant 0 : index
    %312 = vector.load %arg5[%c1_154, %c1_155, %c0_156, %c0_157] : memref<2x2x128x32xf32, #tpu.memory_space<vmem>>, vector<1x1x32x32xf32>
    %313 = vector.shape_cast %312 : vector<1x1x32x32xf32> to vector<32x32xf32>
    %cst_158 = arith.constant dense<0.000000e+00> : vector<32x32xf32>
    %314 = tpu.matmul %295, %313, %cst_158 {dimension_numbers = #tpu.dot_dimension_numbers<[1], [0], [0], [1], [0, 0, 1, 1], [], []>} : vector<32x32xf32>, vector<32x32xf32>, vector<32x32xf32> -> vector<32x32xf32>
    %c34 = arith.constant 34 : index
    %c0_159 = arith.constant 0 : index
    %315 = vector.load %arg2[%c34, %c0_159] : memref<48x128xf32, #tpu.memory_space<vmem>>, vector<1x32xf32>
    %316 = vector.shape_cast %315 : vector<1x32xf32> to vector<32xf32>
    %317 = vector.shape_cast %316 : vector<32xf32> to vector<1x32xf32>
    %318 = vector.broadcast %317 : vector<1x32xf32> to vector<32x32xf32>
    %319 = arith.addf %314, %318 : vector<32x32xf32>
    %320 = vector.shape_cast %303 : vector<32x8xf32> to vector<2x16x8xf32>
    %321 = vector.shape_cast %311 : vector<32x8xf32> to vector<2x16x8xf32>
    %322 = vector.shape_cast %319 : vector<32x32xf32> to vector<2x16x32xf32>
    "tpu.trace_start"() <{level = 10 : i32, message = "bnd,bmd->bnm"}> : () -> ()
    %cst_160 = arith.constant dense<0.000000e+00> : vector<2x16x16xf32>
    %323 = tpu.matmul %320, %321, %cst_160 {dimension_numbers = #tpu.dot_dimension_numbers<[2], [2], [1], [1], [0, 0, 0, 1, 1, 1], [0], [0]>} : vector<2x16x8xf32>, vector<2x16x8xf32>, vector<2x16x16xf32> -> vector<2x16x16xf32>
    "tpu.trace_stop"() : () -> ()
    %cst_161 = arith.constant 0.353553385 : f32
    %324 = vector.broadcast %cst_161 : f32 to vector<2x16x16xf32>
    %325 = arith.mulf %323, %324 : vector<2x16x16xf32>
    %cst_162 = arith.constant dense<0xFF800000> : vector<2x16xf32>
    %326 = vector.multi_reduction <maximumf>, %325, %cst_162 [2] : vector<2x16x16xf32> to vector<2x16xf32>
    %327 = vector.shape_cast %326 : vector<2x16xf32> to vector<2x16x1xf32>
    %328 = vector.broadcast %327 : vector<2x16x1xf32> to vector<2x16x16xf32>
    %329 = arith.subf %325, %328 : vector<2x16x16xf32>
    %330 = math.exp %329 : vector<2x16x16xf32>
    %cst_163 = arith.constant dense<0.000000e+00> : vector<2x16xf32>
    %331 = vector.multi_reduction <add>, %330, %cst_163 [2] : vector<2x16x16xf32> to vector<2x16xf32>
    %332 = vector.shape_cast %331 : vector<2x16xf32> to vector<2x16x1xf32>
    %333 = tpu.reciprocal %332 {approx = true} : vector<2x16x1xf32> -> vector<2x16x1xf32>
    %334 = vector.broadcast %333 : vector<2x16x1xf32> to vector<2x16x16xf32>
    %335 = arith.mulf %330, %334 : vector<2x16x16xf32>
    "tpu.trace_start"() <{level = 10 : i32, message = "bnm,bmd->bnd"}> : () -> ()
    %cst_164 = arith.constant dense<0.000000e+00> : vector<2x16x32xf32>
    %336 = tpu.matmul %335, %322, %cst_164 {dimension_numbers = #tpu.dot_dimension_numbers<[2], [1], [1], [2], [0, 0, 0, 1, 1, 2], [0], [0]>} : vector<2x16x16xf32>, vector<2x16x32xf32>, vector<2x16x32xf32> -> vector<2x16x32xf32>
    "tpu.trace_stop"() : () -> ()
    %c1_165 = arith.constant 1 : index
    %c0_166 = arith.constant 0 : index
    %c1_167 = arith.constant 1 : index
    %c0_168 = arith.constant 0 : index
    %c0_169 = arith.constant 0 : index
    %337 = vector.load %arg3[%c1_165, %c0_166, %c1_167, %c0_168, %c0_169] : memref<2x2x4x32x8xf32, #tpu.memory_space<vmem>>, vector<1x1x1x32x8xf32>
    %338 = vector.shape_cast %337 : vector<1x1x1x32x8xf32> to vector<32x8xf32>
    %cst_170 = arith.constant dense<0.000000e+00> : vector<32x8xf32>
    %339 = tpu.matmul %295, %338, %cst_170 {dimension_numbers = #tpu.dot_dimension_numbers<[1], [0], [0], [1], [0, 0, 1, 1], [], []>} : vector<32x32xf32>, vector<32x8xf32>, vector<32x8xf32> -> vector<32x8xf32>
    %c27 = arith.constant 27 : index
    %c0_171 = arith.constant 0 : index
    %340 = vector.load %arg2[%c27, %c0_171] : memref<48x128xf32, #tpu.memory_space<vmem>>, vector<1x8xf32>
    %341 = vector.shape_cast %340 : vector<1x8xf32> to vector<8xf32>
    %342 = vector.shape_cast %341 : vector<8xf32> to vector<1x8xf32>
    %343 = vector.broadcast %342 : vector<1x8xf32> to vector<32x8xf32>
    %344 = arith.addf %339, %343 : vector<32x8xf32>
    %c1_172 = arith.constant 1 : index
    %c1_173 = arith.constant 1 : index
    %c1_174 = arith.constant 1 : index
    %c0_175 = arith.constant 0 : index
    %c0_176 = arith.constant 0 : index
    %345 = vector.load %arg3[%c1_172, %c1_173, %c1_174, %c0_175, %c0_176] : memref<2x2x4x32x8xf32, #tpu.memory_space<vmem>>, vector<1x1x1x32x8xf32>
    %346 = vector.shape_cast %345 : vector<1x1x1x32x8xf32> to vector<32x8xf32>
    %cst_177 = arith.constant dense<0.000000e+00> : vector<32x8xf32>
    %347 = tpu.matmul %295, %346, %cst_177 {dimension_numbers = #tpu.dot_dimension_numbers<[1], [0], [0], [1], [0, 0, 1, 1], [], []>} : vector<32x32xf32>, vector<32x8xf32>, vector<32x8xf32> -> vector<32x8xf32>
    %c31 = arith.constant 31 : index
    %c0_178 = arith.constant 0 : index
    %348 = vector.load %arg2[%c31, %c0_178] : memref<48x128xf32, #tpu.memory_space<vmem>>, vector<1x8xf32>
    %349 = vector.shape_cast %348 : vector<1x8xf32> to vector<8xf32>
    %350 = vector.shape_cast %349 : vector<8xf32> to vector<1x8xf32>
    %351 = vector.broadcast %350 : vector<1x8xf32> to vector<32x8xf32>
    %352 = arith.addf %347, %351 : vector<32x8xf32>
    %c1_179 = arith.constant 1 : index
    %c1_180 = arith.constant 1 : index
    %c32_181 = arith.constant 32 : index
    %c0_182 = arith.constant 0 : index
    %353 = vector.load %arg5[%c1_179, %c1_180, %c32_181, %c0_182] : memref<2x2x128x32xf32, #tpu.memory_space<vmem>>, vector<1x1x32x32xf32>
    %354 = vector.shape_cast %353 : vector<1x1x32x32xf32> to vector<32x32xf32>
    %cst_183 = arith.constant dense<0.000000e+00> : vector<32x32xf32>
    %355 = tpu.matmul %295, %354, %cst_183 {dimension_numbers = #tpu.dot_dimension_numbers<[1], [0], [0], [1], [0, 0, 1, 1], [], []>} : vector<32x32xf32>, vector<32x32xf32>, vector<32x32xf32> -> vector<32x32xf32>
    %c35 = arith.constant 35 : index
    %c0_184 = arith.constant 0 : index
    %356 = vector.load %arg2[%c35, %c0_184] : memref<48x128xf32, #tpu.memory_space<vmem>>, vector<1x32xf32>
    %357 = vector.shape_cast %356 : vector<1x32xf32> to vector<32xf32>
    %358 = vector.shape_cast %357 : vector<32xf32> to vector<1x32xf32>
    %359 = vector.broadcast %358 : vector<1x32xf32> to vector<32x32xf32>
    %360 = arith.addf %355, %359 : vector<32x32xf32>
    %361 = vector.shape_cast %344 : vector<32x8xf32> to vector<2x16x8xf32>
    %362 = vector.shape_cast %352 : vector<32x8xf32> to vector<2x16x8xf32>
    %363 = vector.shape_cast %360 : vector<32x32xf32> to vector<2x16x32xf32>
    "tpu.trace_start"() <{level = 10 : i32, message = "bnd,bmd->bnm"}> : () -> ()
    %cst_185 = arith.constant dense<0.000000e+00> : vector<2x16x16xf32>
    %364 = tpu.matmul %361, %362, %cst_185 {dimension_numbers = #tpu.dot_dimension_numbers<[2], [2], [1], [1], [0, 0, 0, 1, 1, 1], [0], [0]>} : vector<2x16x8xf32>, vector<2x16x8xf32>, vector<2x16x16xf32> -> vector<2x16x16xf32>
    "tpu.trace_stop"() : () -> ()
    %cst_186 = arith.constant 0.353553385 : f32
    %365 = vector.broadcast %cst_186 : f32 to vector<2x16x16xf32>
    %366 = arith.mulf %364, %365 : vector<2x16x16xf32>
    %cst_187 = arith.constant dense<0xFF800000> : vector<2x16xf32>
    %367 = vector.multi_reduction <maximumf>, %366, %cst_187 [2] : vector<2x16x16xf32> to vector<2x16xf32>
    %368 = vector.shape_cast %367 : vector<2x16xf32> to vector<2x16x1xf32>
    %369 = vector.broadcast %368 : vector<2x16x1xf32> to vector<2x16x16xf32>
    %370 = arith.subf %366, %369 : vector<2x16x16xf32>
    %371 = math.exp %370 : vector<2x16x16xf32>
    %cst_188 = arith.constant dense<0.000000e+00> : vector<2x16xf32>
    %372 = vector.multi_reduction <add>, %371, %cst_188 [2] : vector<2x16x16xf32> to vector<2x16xf32>
    %373 = vector.shape_cast %372 : vector<2x16xf32> to vector<2x16x1xf32>
    %374 = tpu.reciprocal %373 {approx = true} : vector<2x16x1xf32> -> vector<2x16x1xf32>
    %375 = vector.broadcast %374 : vector<2x16x1xf32> to vector<2x16x16xf32>
    %376 = arith.mulf %371, %375 : vector<2x16x16xf32>
    "tpu.trace_start"() <{level = 10 : i32, message = "bnm,bmd->bnd"}> : () -> ()
    %cst_189 = arith.constant dense<0.000000e+00> : vector<2x16x32xf32>
    %377 = tpu.matmul %376, %363, %cst_189 {dimension_numbers = #tpu.dot_dimension_numbers<[2], [1], [1], [2], [0, 0, 0, 1, 1, 2], [0], [0]>} : vector<2x16x16xf32>, vector<2x16x32xf32>, vector<2x16x32xf32> -> vector<2x16x32xf32>
    "tpu.trace_stop"() : () -> ()
    %378 = arith.addf %336, %377 : vector<2x16x32xf32>
    %c1_190 = arith.constant 1 : index
    %c0_191 = arith.constant 0 : index
    %c2_192 = arith.constant 2 : index
    %c0_193 = arith.constant 0 : index
    %c0_194 = arith.constant 0 : index
    %379 = vector.load %arg3[%c1_190, %c0_191, %c2_192, %c0_193, %c0_194] : memref<2x2x4x32x8xf32, #tpu.memory_space<vmem>>, vector<1x1x1x32x8xf32>
    %380 = vector.shape_cast %379 : vector<1x1x1x32x8xf32> to vector<32x8xf32>
    %cst_195 = arith.constant dense<0.000000e+00> : vector<32x8xf32>
    %381 = tpu.matmul %295, %380, %cst_195 {dimension_numbers = #tpu.dot_dimension_numbers<[1], [0], [0], [1], [0, 0, 1, 1], [], []>} : vector<32x32xf32>, vector<32x8xf32>, vector<32x8xf32> -> vector<32x8xf32>
    %c28 = arith.constant 28 : index
    %c0_196 = arith.constant 0 : index
    %382 = vector.load %arg2[%c28, %c0_196] : memref<48x128xf32, #tpu.memory_space<vmem>>, vector<1x8xf32>
    %383 = vector.shape_cast %382 : vector<1x8xf32> to vector<8xf32>
    %384 = vector.shape_cast %383 : vector<8xf32> to vector<1x8xf32>
    %385 = vector.broadcast %384 : vector<1x8xf32> to vector<32x8xf32>
    %386 = arith.addf %381, %385 : vector<32x8xf32>
    %c1_197 = arith.constant 1 : index
    %c1_198 = arith.constant 1 : index
    %c2_199 = arith.constant 2 : index
    %c0_200 = arith.constant 0 : index
    %c0_201 = arith.constant 0 : index
    %387 = vector.load %arg3[%c1_197, %c1_198, %c2_199, %c0_200, %c0_201] : memref<2x2x4x32x8xf32, #tpu.memory_space<vmem>>, vector<1x1x1x32x8xf32>
    %388 = vector.shape_cast %387 : vector<1x1x1x32x8xf32> to vector<32x8xf32>
    %cst_202 = arith.constant dense<0.000000e+00> : vector<32x8xf32>
    %389 = tpu.matmul %295, %388, %cst_202 {dimension_numbers = #tpu.dot_dimension_numbers<[1], [0], [0], [1], [0, 0, 1, 1], [], []>} : vector<32x32xf32>, vector<32x8xf32>, vector<32x8xf32> -> vector<32x8xf32>
    %c32_203 = arith.constant 32 : index
    %c0_204 = arith.constant 0 : index
    %390 = vector.load %arg2[%c32_203, %c0_204] : memref<48x128xf32, #tpu.memory_space<vmem>>, vector<1x8xf32>
    %391 = vector.shape_cast %390 : vector<1x8xf32> to vector<8xf32>
    %392 = vector.shape_cast %391 : vector<8xf32> to vector<1x8xf32>
    %393 = vector.broadcast %392 : vector<1x8xf32> to vector<32x8xf32>
    %394 = arith.addf %389, %393 : vector<32x8xf32>
    %c1_205 = arith.constant 1 : index
    %c1_206 = arith.constant 1 : index
    %c64_207 = arith.constant 64 : index
    %c0_208 = arith.constant 0 : index
    %395 = vector.load %arg5[%c1_205, %c1_206, %c64_207, %c0_208] : memref<2x2x128x32xf32, #tpu.memory_space<vmem>>, vector<1x1x32x32xf32>
    %396 = vector.shape_cast %395 : vector<1x1x32x32xf32> to vector<32x32xf32>
    %cst_209 = arith.constant dense<0.000000e+00> : vector<32x32xf32>
    %397 = tpu.matmul %295, %396, %cst_209 {dimension_numbers = #tpu.dot_dimension_numbers<[1], [0], [0], [1], [0, 0, 1, 1], [], []>} : vector<32x32xf32>, vector<32x32xf32>, vector<32x32xf32> -> vector<32x32xf32>
    %c36 = arith.constant 36 : index
    %c0_210 = arith.constant 0 : index
    %398 = vector.load %arg2[%c36, %c0_210] : memref<48x128xf32, #tpu.memory_space<vmem>>, vector<1x32xf32>
    %399 = vector.shape_cast %398 : vector<1x32xf32> to vector<32xf32>
    %400 = vector.shape_cast %399 : vector<32xf32> to vector<1x32xf32>
    %401 = vector.broadcast %400 : vector<1x32xf32> to vector<32x32xf32>
    %402 = arith.addf %397, %401 : vector<32x32xf32>
    %403 = vector.shape_cast %386 : vector<32x8xf32> to vector<2x16x8xf32>
    %404 = vector.shape_cast %394 : vector<32x8xf32> to vector<2x16x8xf32>
    %405 = vector.shape_cast %402 : vector<32x32xf32> to vector<2x16x32xf32>
    "tpu.trace_start"() <{level = 10 : i32, message = "bnd,bmd->bnm"}> : () -> ()
    %cst_211 = arith.constant dense<0.000000e+00> : vector<2x16x16xf32>
    %406 = tpu.matmul %403, %404, %cst_211 {dimension_numbers = #tpu.dot_dimension_numbers<[2], [2], [1], [1], [0, 0, 0, 1, 1, 1], [0], [0]>} : vector<2x16x8xf32>, vector<2x16x8xf32>, vector<2x16x16xf32> -> vector<2x16x16xf32>
    "tpu.trace_stop"() : () -> ()
    %cst_212 = arith.constant 0.353553385 : f32
    %407 = vector.broadcast %cst_212 : f32 to vector<2x16x16xf32>
    %408 = arith.mulf %406, %407 : vector<2x16x16xf32>
    %cst_213 = arith.constant dense<0xFF800000> : vector<2x16xf32>
    %409 = vector.multi_reduction <maximumf>, %408, %cst_213 [2] : vector<2x16x16xf32> to vector<2x16xf32>
    %410 = vector.shape_cast %409 : vector<2x16xf32> to vector<2x16x1xf32>
    %411 = vector.broadcast %410 : vector<2x16x1xf32> to vector<2x16x16xf32>
    %412 = arith.subf %408, %411 : vector<2x16x16xf32>
    %413 = math.exp %412 : vector<2x16x16xf32>
    %cst_214 = arith.constant dense<0.000000e+00> : vector<2x16xf32>
    %414 = vector.multi_reduction <add>, %413, %cst_214 [2] : vector<2x16x16xf32> to vector<2x16xf32>
    %415 = vector.shape_cast %414 : vector<2x16xf32> to vector<2x16x1xf32>
    %416 = tpu.reciprocal %415 {approx = true} : vector<2x16x1xf32> -> vector<2x16x1xf32>
    %417 = vector.broadcast %416 : vector<2x16x1xf32> to vector<2x16x16xf32>
    %418 = arith.mulf %413, %417 : vector<2x16x16xf32>
    "tpu.trace_start"() <{level = 10 : i32, message = "bnm,bmd->bnd"}> : () -> ()
    %cst_215 = arith.constant dense<0.000000e+00> : vector<2x16x32xf32>
    %419 = tpu.matmul %418, %405, %cst_215 {dimension_numbers = #tpu.dot_dimension_numbers<[2], [1], [1], [2], [0, 0, 0, 1, 1, 2], [0], [0]>} : vector<2x16x16xf32>, vector<2x16x32xf32>, vector<2x16x32xf32> -> vector<2x16x32xf32>
    "tpu.trace_stop"() : () -> ()
    %420 = arith.addf %378, %419 : vector<2x16x32xf32>
    %c1_216 = arith.constant 1 : index
    %c0_217 = arith.constant 0 : index
    %c3_218 = arith.constant 3 : index
    %c0_219 = arith.constant 0 : index
    %c0_220 = arith.constant 0 : index
    %421 = vector.load %arg3[%c1_216, %c0_217, %c3_218, %c0_219, %c0_220] : memref<2x2x4x32x8xf32, #tpu.memory_space<vmem>>, vector<1x1x1x32x8xf32>
    %422 = vector.shape_cast %421 : vector<1x1x1x32x8xf32> to vector<32x8xf32>
    %cst_221 = arith.constant dense<0.000000e+00> : vector<32x8xf32>
    %423 = tpu.matmul %295, %422, %cst_221 {dimension_numbers = #tpu.dot_dimension_numbers<[1], [0], [0], [1], [0, 0, 1, 1], [], []>} : vector<32x32xf32>, vector<32x8xf32>, vector<32x8xf32> -> vector<32x8xf32>
    %c29 = arith.constant 29 : index
    %c0_222 = arith.constant 0 : index
    %424 = vector.load %arg2[%c29, %c0_222] : memref<48x128xf32, #tpu.memory_space<vmem>>, vector<1x8xf32>
    %425 = vector.shape_cast %424 : vector<1x8xf32> to vector<8xf32>
    %426 = vector.shape_cast %425 : vector<8xf32> to vector<1x8xf32>
    %427 = vector.broadcast %426 : vector<1x8xf32> to vector<32x8xf32>
    %428 = arith.addf %423, %427 : vector<32x8xf32>
    %c1_223 = arith.constant 1 : index
    %c1_224 = arith.constant 1 : index
    %c3_225 = arith.constant 3 : index
    %c0_226 = arith.constant 0 : index
    %c0_227 = arith.constant 0 : index
    %429 = vector.load %arg3[%c1_223, %c1_224, %c3_225, %c0_226, %c0_227] : memref<2x2x4x32x8xf32, #tpu.memory_space<vmem>>, vector<1x1x1x32x8xf32>
    %430 = vector.shape_cast %429 : vector<1x1x1x32x8xf32> to vector<32x8xf32>
    %cst_228 = arith.constant dense<0.000000e+00> : vector<32x8xf32>
    %431 = tpu.matmul %295, %430, %cst_228 {dimension_numbers = #tpu.dot_dimension_numbers<[1], [0], [0], [1], [0, 0, 1, 1], [], []>} : vector<32x32xf32>, vector<32x8xf32>, vector<32x8xf32> -> vector<32x8xf32>
    %c33 = arith.constant 33 : index
    %c0_229 = arith.constant 0 : index
    %432 = vector.load %arg2[%c33, %c0_229] : memref<48x128xf32, #tpu.memory_space<vmem>>, vector<1x8xf32>
    %433 = vector.shape_cast %432 : vector<1x8xf32> to vector<8xf32>
    %434 = vector.shape_cast %433 : vector<8xf32> to vector<1x8xf32>
    %435 = vector.broadcast %434 : vector<1x8xf32> to vector<32x8xf32>
    %436 = arith.addf %431, %435 : vector<32x8xf32>
    %c1_230 = arith.constant 1 : index
    %c1_231 = arith.constant 1 : index
    %c96_232 = arith.constant 96 : index
    %c0_233 = arith.constant 0 : index
    %437 = vector.load %arg5[%c1_230, %c1_231, %c96_232, %c0_233] : memref<2x2x128x32xf32, #tpu.memory_space<vmem>>, vector<1x1x32x32xf32>
    %438 = vector.shape_cast %437 : vector<1x1x32x32xf32> to vector<32x32xf32>
    %cst_234 = arith.constant dense<0.000000e+00> : vector<32x32xf32>
    %439 = tpu.matmul %295, %438, %cst_234 {dimension_numbers = #tpu.dot_dimension_numbers<[1], [0], [0], [1], [0, 0, 1, 1], [], []>} : vector<32x32xf32>, vector<32x32xf32>, vector<32x32xf32> -> vector<32x32xf32>
    %c37 = arith.constant 37 : index
    %c0_235 = arith.constant 0 : index
    %440 = vector.load %arg2[%c37, %c0_235] : memref<48x128xf32, #tpu.memory_space<vmem>>, vector<1x32xf32>
    %441 = vector.shape_cast %440 : vector<1x32xf32> to vector<32xf32>
    %442 = vector.shape_cast %441 : vector<32xf32> to vector<1x32xf32>
    %443 = vector.broadcast %442 : vector<1x32xf32> to vector<32x32xf32>
    %444 = arith.addf %439, %443 : vector<32x32xf32>
    %445 = vector.shape_cast %428 : vector<32x8xf32> to vector<2x16x8xf32>
    %446 = vector.shape_cast %436 : vector<32x8xf32> to vector<2x16x8xf32>
    %447 = vector.shape_cast %444 : vector<32x32xf32> to vector<2x16x32xf32>
    "tpu.trace_start"() <{level = 10 : i32, message = "bnd,bmd->bnm"}> : () -> ()
    %cst_236 = arith.constant dense<0.000000e+00> : vector<2x16x16xf32>
    %448 = tpu.matmul %445, %446, %cst_236 {dimension_numbers = #tpu.dot_dimension_numbers<[2], [2], [1], [1], [0, 0, 0, 1, 1, 1], [0], [0]>} : vector<2x16x8xf32>, vector<2x16x8xf32>, vector<2x16x16xf32> -> vector<2x16x16xf32>
    "tpu.trace_stop"() : () -> ()
    %cst_237 = arith.constant 0.353553385 : f32
    %449 = vector.broadcast %cst_237 : f32 to vector<2x16x16xf32>
    %450 = arith.mulf %448, %449 : vector<2x16x16xf32>
    %cst_238 = arith.constant dense<0xFF800000> : vector<2x16xf32>
    %451 = vector.multi_reduction <maximumf>, %450, %cst_238 [2] : vector<2x16x16xf32> to vector<2x16xf32>
    %452 = vector.shape_cast %451 : vector<2x16xf32> to vector<2x16x1xf32>
    %453 = vector.broadcast %452 : vector<2x16x1xf32> to vector<2x16x16xf32>
    %454 = arith.subf %450, %453 : vector<2x16x16xf32>
    %455 = math.exp %454 : vector<2x16x16xf32>
    %cst_239 = arith.constant dense<0.000000e+00> : vector<2x16xf32>
    %456 = vector.multi_reduction <add>, %455, %cst_239 [2] : vector<2x16x16xf32> to vector<2x16xf32>
    %457 = vector.shape_cast %456 : vector<2x16xf32> to vector<2x16x1xf32>
    %458 = tpu.reciprocal %457 {approx = true} : vector<2x16x1xf32> -> vector<2x16x1xf32>
    %459 = vector.broadcast %458 : vector<2x16x1xf32> to vector<2x16x16xf32>
    %460 = arith.mulf %455, %459 : vector<2x16x16xf32>
    "tpu.trace_start"() <{level = 10 : i32, message = "bnm,bmd->bnd"}> : () -> ()
    %cst_240 = arith.constant dense<0.000000e+00> : vector<2x16x32xf32>
    %461 = tpu.matmul %460, %447, %cst_240 {dimension_numbers = #tpu.dot_dimension_numbers<[2], [1], [1], [2], [0, 0, 0, 1, 1, 2], [0], [0]>} : vector<2x16x16xf32>, vector<2x16x32xf32>, vector<2x16x32xf32> -> vector<2x16x32xf32>
    "tpu.trace_stop"() : () -> ()
    %462 = arith.addf %420, %461 : vector<2x16x32xf32>
    %463 = vector.shape_cast %462 : vector<2x16x32xf32> to vector<32x32xf32>
    %464 = arith.addf %265, %463 : vector<32x32xf32>
    %c23 = arith.constant 23 : index
    %c0_241 = arith.constant 0 : index
    %465 = vector.load %arg2[%c23, %c0_241] : memref<48x128xf32, #tpu.memory_space<vmem>>, vector<1x32xf32>
    %466 = vector.shape_cast %465 : vector<1x32xf32> to vector<32xf32>
    %467 = vector.shape_cast %466 : vector<32xf32> to vector<1x32xf32>
    %468 = vector.broadcast %467 : vector<1x32xf32> to vector<32x32xf32>
    %469 = arith.addf %464, %468 : vector<32x32xf32>
    %c21 = arith.constant 21 : index
    %c0_242 = arith.constant 0 : index
    %470 = vector.load %arg2[%c21, %c0_242] : memref<48x128xf32, #tpu.memory_space<vmem>>, vector<1x32xf32>
    %471 = vector.shape_cast %470 : vector<1x32xf32> to vector<32xf32>
    %472 = vector.shape_cast %471 : vector<32xf32> to vector<1x32xf32>
    %c22 = arith.constant 22 : index
    %c0_243 = arith.constant 0 : index
    %473 = vector.load %arg2[%c22, %c0_243] : memref<48x128xf32, #tpu.memory_space<vmem>>, vector<1x32xf32>
    %474 = vector.shape_cast %473 : vector<1x32xf32> to vector<32xf32>
    %475 = vector.shape_cast %474 : vector<32xf32> to vector<1x32xf32>
    %cst_244 = arith.constant dense<0.000000e+00> : vector<32xf32>
    %476 = vector.multi_reduction <add>, %469, %cst_244 [1] : vector<32x32xf32> to vector<32xf32>
    %477 = vector.shape_cast %476 : vector<32xf32> to vector<32x1xf32>
    %cst_245 = arith.constant 3.200000e+01 : f32
    %478 = vector.broadcast %cst_245 : f32 to vector<32x1xf32>
    %479 = arith.divf %477, %478 : vector<32x1xf32>
    %480 = arith.mulf %469, %469 : vector<32x32xf32>
    %cst_246 = arith.constant dense<0.000000e+00> : vector<32xf32>
    %481 = vector.multi_reduction <add>, %480, %cst_246 [1] : vector<32x32xf32> to vector<32xf32>
    %482 = vector.shape_cast %481 : vector<32xf32> to vector<32x1xf32>
    %cst_247 = arith.constant 3.200000e+01 : f32
    %483 = vector.broadcast %cst_247 : f32 to vector<32x1xf32>
    %484 = arith.divf %482, %483 : vector<32x1xf32>
    %485 = arith.mulf %479, %479 : vector<32x1xf32>
    %486 = arith.subf %484, %485 : vector<32x1xf32>
    %cst_248 = arith.constant 0.000000e+00 : f32
    %487 = vector.broadcast %cst_248 : f32 to vector<32x1xf32>
    %488 = arith.maximumf %486, %487 : vector<32x1xf32>
    %489 = vector.broadcast %479 : vector<32x1xf32> to vector<32x32xf32>
    %490 = arith.subf %469, %489 : vector<32x32xf32>
    %cst_249 = arith.constant 9.99999997E-7 : f32
    %491 = vector.broadcast %cst_249 : f32 to vector<32x1xf32>
    %492 = arith.addf %488, %491 : vector<32x1xf32>
    %493 = math.rsqrt %492 : vector<32x1xf32>
    %494 = vector.broadcast %493 : vector<32x1xf32> to vector<32x32xf32>
    %495 = arith.mulf %490, %494 : vector<32x32xf32>
    %496 = vector.broadcast %472 : vector<1x32xf32> to vector<32x32xf32>
    %497 = arith.mulf %495, %496 : vector<32x32xf32>
    %498 = vector.broadcast %475 : vector<1x32xf32> to vector<32x32xf32>
    %499 = arith.addf %497, %498 : vector<32x32xf32>
    %c1_250 = arith.constant 1 : index
    %c0_251 = arith.constant 0 : index
    %c0_252 = arith.constant 0 : index
    %500 = vector.load %arg4[%c1_250, %c0_251, %c0_252] : memref<3x32x128xf32, #tpu.memory_space<vmem>>, vector<1x32x128xf32>
    %501 = vector.shape_cast %500 : vector<1x32x128xf32> to vector<32x128xf32>
    %cst_253 = arith.constant dense<0.000000e+00> : vector<32x128xf32>
    %502 = tpu.matmul %499, %501, %cst_253 {dimension_numbers = #tpu.dot_dimension_numbers<[1], [0], [0], [1], [0, 0, 1, 1], [], []>} : vector<32x32xf32>, vector<32x128xf32>, vector<32x128xf32> -> vector<32x128xf32>
    %c25 = arith.constant 25 : index
    %c0_254 = arith.constant 0 : index
    %503 = vector.load %arg2[%c25, %c0_254] : memref<48x128xf32, #tpu.memory_space<vmem>>, vector<1x128xf32>
    %504 = vector.shape_cast %503 : vector<1x128xf32> to vector<128xf32>
    %505 = vector.shape_cast %504 : vector<128xf32> to vector<1x128xf32>
    %506 = vector.broadcast %505 : vector<1x128xf32> to vector<32x128xf32>
    %507 = arith.addf %502, %506 : vector<32x128xf32>
    %cst_255 = arith.constant 5.000000e-01 : f32
    %508 = vector.broadcast %cst_255 : f32 to vector<32x128xf32>
    %509 = arith.mulf %508, %507 : vector<32x128xf32>
    %cst_256 = arith.constant 0.707106769 : f32
    %510 = vector.broadcast %cst_256 : f32 to vector<32x128xf32>
    %511 = arith.mulf %507, %510 : vector<32x128xf32>
    %512 = math.erf %511 : vector<32x128xf32>
    %cst_257 = arith.constant 1.000000e+00 : f32
    %513 = vector.broadcast %cst_257 : f32 to vector<32x128xf32>
    %514 = arith.addf %513, %512 : vector<32x128xf32>
    %515 = arith.mulf %509, %514 : vector<32x128xf32>
    %c1_258 = arith.constant 1 : index
    %c0_259 = arith.constant 0 : index
    %c0_260 = arith.constant 0 : index
    %c0_261 = arith.constant 0 : index
    %516 = vector.load %arg5[%c1_258, %c0_259, %c0_260, %c0_261] : memref<2x2x128x32xf32, #tpu.memory_space<vmem>>, vector<1x1x128x32xf32>
    %517 = vector.shape_cast %516 : vector<1x1x128x32xf32> to vector<128x32xf32>
    %cst_262 = arith.constant dense<0.000000e+00> : vector<32x32xf32>
    %518 = tpu.matmul %515, %517, %cst_262 {dimension_numbers = #tpu.dot_dimension_numbers<[1], [0], [0], [1], [0, 0, 1, 1], [], []>} : vector<32x128xf32>, vector<128x32xf32>, vector<32x32xf32> -> vector<32x32xf32>
    %c24 = arith.constant 24 : index
    %c0_263 = arith.constant 0 : index
    %519 = vector.load %arg2[%c24, %c0_263] : memref<48x128xf32, #tpu.memory_space<vmem>>, vector<1x32xf32>
    %520 = vector.shape_cast %519 : vector<1x32xf32> to vector<32xf32>
    %521 = vector.shape_cast %520 : vector<32xf32> to vector<1x32xf32>
    %522 = vector.broadcast %521 : vector<1x32xf32> to vector<32x32xf32>
    %523 = arith.addf %518, %522 : vector<32x32xf32>
    %524 = arith.addf %469, %523 : vector<32x32xf32>
    %c38 = arith.constant 38 : index
    %c0_264 = arith.constant 0 : index
    %525 = vector.load %arg2[%c38, %c0_264] : memref<48x128xf32, #tpu.memory_space<vmem>>, vector<1x32xf32>
    %526 = vector.shape_cast %525 : vector<1x32xf32> to vector<32xf32>
    %527 = vector.shape_cast %526 : vector<32xf32> to vector<1x32xf32>
    %c39 = arith.constant 39 : index
    %c0_265 = arith.constant 0 : index
    %528 = vector.load %arg2[%c39, %c0_265] : memref<48x128xf32, #tpu.memory_space<vmem>>, vector<1x32xf32>
    %529 = vector.shape_cast %528 : vector<1x32xf32> to vector<32xf32>
    %530 = vector.shape_cast %529 : vector<32xf32> to vector<1x32xf32>
    %cst_266 = arith.constant dense<0.000000e+00> : vector<32xf32>
    %531 = vector.multi_reduction <add>, %524, %cst_266 [1] : vector<32x32xf32> to vector<32xf32>
    %532 = vector.shape_cast %531 : vector<32xf32> to vector<32x1xf32>
    %cst_267 = arith.constant 3.200000e+01 : f32
    %533 = vector.broadcast %cst_267 : f32 to vector<32x1xf32>
    %534 = arith.divf %532, %533 : vector<32x1xf32>
    %535 = arith.mulf %524, %524 : vector<32x32xf32>
    %cst_268 = arith.constant dense<0.000000e+00> : vector<32xf32>
    %536 = vector.multi_reduction <add>, %535, %cst_268 [1] : vector<32x32xf32> to vector<32xf32>
    %537 = vector.shape_cast %536 : vector<32xf32> to vector<32x1xf32>
    %cst_269 = arith.constant 3.200000e+01 : f32
    %538 = vector.broadcast %cst_269 : f32 to vector<32x1xf32>
    %539 = arith.divf %537, %538 : vector<32x1xf32>
    %540 = arith.mulf %534, %534 : vector<32x1xf32>
    %541 = arith.subf %539, %540 : vector<32x1xf32>
    %cst_270 = arith.constant 0.000000e+00 : f32
    %542 = vector.broadcast %cst_270 : f32 to vector<32x1xf32>
    %543 = arith.maximumf %541, %542 : vector<32x1xf32>
    %544 = vector.broadcast %534 : vector<32x1xf32> to vector<32x32xf32>
    %545 = arith.subf %524, %544 : vector<32x32xf32>
    %cst_271 = arith.constant 9.99999997E-7 : f32
    %546 = vector.broadcast %cst_271 : f32 to vector<32x1xf32>
    %547 = arith.addf %543, %546 : vector<32x1xf32>
    %548 = math.rsqrt %547 : vector<32x1xf32>
    %549 = vector.broadcast %548 : vector<32x1xf32> to vector<32x32xf32>
    %550 = arith.mulf %545, %549 : vector<32x32xf32>
    %551 = vector.broadcast %527 : vector<1x32xf32> to vector<32x32xf32>
    %552 = arith.mulf %550, %551 : vector<32x32xf32>
    %553 = vector.broadcast %530 : vector<1x32xf32> to vector<32x32xf32>
    %554 = arith.addf %552, %553 : vector<32x32xf32>
    %c2_272 = arith.constant 2 : index
    %c0_273 = arith.constant 0 : index
    %c0_274 = arith.constant 0 : index
    %555 = vector.load %arg4[%c2_272, %c0_273, %c0_274] : memref<3x32x128xf32, #tpu.memory_space<vmem>>, vector<1x32x128xf32>
    %556 = vector.shape_cast %555 : vector<1x32x128xf32> to vector<32x128xf32>
    %cst_275 = arith.constant dense<0.000000e+00> : vector<32x128xf32>
    %557 = tpu.matmul %554, %556, %cst_275 {dimension_numbers = #tpu.dot_dimension_numbers<[1], [0], [0], [1], [0, 0, 1, 1], [], []>} : vector<32x32xf32>, vector<32x128xf32>, vector<32x128xf32> -> vector<32x128xf32>
    %c40 = arith.constant 40 : index
    %c0_276 = arith.constant 0 : index
    %558 = vector.load %arg2[%c40, %c0_276] : memref<48x128xf32, #tpu.memory_space<vmem>>, vector<1x128xf32>
    %559 = vector.shape_cast %558 : vector<1x128xf32> to vector<128xf32>
    %560 = vector.shape_cast %559 : vector<128xf32> to vector<1x128xf32>
    %561 = vector.broadcast %560 : vector<1x128xf32> to vector<32x128xf32>
    %562 = arith.addf %557, %561 : vector<32x128xf32>
    %c0_277 = arith.constant 0 : index
    %c0_278 = arith.constant 0 : index
    %563 = vector.load %arg6[%c0_277, %c0_278] : memref<32x128xf32, #tpu.memory_space<vmem>>, vector<32x128xf32>
    tpu.vector_store %arg6[%c0_277, %c0_278], %562 {strides = array<i32>} : memref<32x128xf32, #tpu.memory_space<vmem>>, vector<32x128xf32>,
    return
  }
}

</mosaic_0001>

<bundles_post_ra>
// kernel: _forward.1
= control target key start
LH: loop header
LB: loop body
LE: loop exit
PB: predicated region body
PF: predicated region fallthrough
CT: control target
= control target key end

     0   :  { %vm33_vm0 = vcmask 1040384   ;;  %vm52_vm1 = vcmask 1046528   ;;  %vm69_vm2 = vcmask 261120   ;;  %vm447_vm3 = vcmask 64512   ;;  %s9900_s0 = inlined_call_operand.vmem [shape: f32[2,17,32], index: 0, kind: input, shape index: {}]   ;;  %s9901_s1 = inlined_call_operand.vmem [shape: f32[16,32], index: 1, kind: input, shape index: {}]   ;;  %s9902_s3 = inlined_call_operand.vmem [shape: f32[2,2,4,32,8], index: 3, kind: input, shape index: {}]   ;;  %s9903_s5 = inlined_call_operand.vmem [shape: f32[2,2,128,32], index: 5, kind: input, shape index: {}]   ;;  %s9904_s2 = inlined_call_operand.vmem [shape: f32[48,128], index: 2, kind: input, shape index: {}]   ;;  %s9905_s4 = inlined_call_operand.vmem [shape: f32[3,32,128], index: 4, kind: input, shape index: {}]   ;;  %s9906_s6 = inlined_call_operand.vmem [shape: f32[32,128], index: 6, kind: output, shape index: {}]  }
   0x1   :  { %v27_v0 = vld [vmem:[%s9900_s0 + $0x20] sm:$0xff]  ;;  %v28_v2 = vld [vmem:[%s9900_s0 + $0x28] sm:$0x1]  ;;  %v25_v8 = vld [vmem:[%s9900_s0 + $0x10] sm:$0x1]  ;;  %vm626_vm5 = vcmask 130048  }
   0x2   :  { %v29_v1 = vld [vmem:[%s9901_s1] sm:$0xff]  ;;  %v30_v3 = vld [vmem:[%s9901_s1 + $0x8] sm:$0xff]  ;;  %v26_v9 = vld [vmem:[%s9900_s0 + $0x18] sm:$0xff] }
   0x3   :  { %v34_v4 = vrot.slane %v29_v1, 7  ;;  %v23_v5 = vld [vmem:[%s9900_s0] sm:$0xff]  ;;  %v35_v6 = vrot.slane %v30_v3, 7  ;;  %v24_v7 = vld [vmem:[%s9900_s0 + $0x8] sm:$0xff]  ;;  %v153_v45 = vld [vmem:[%s9902_s3 + $0x10] sm:$0xff] }
   0x4   :  { %v151_v39 = vld [vmem:[%s9902_s3] sm:$0xff]  ;;  %v152_v40 = vld [vmem:[%s9902_s3 + $0x8] sm:$0xff]  ;;  %v154_v46 = vld [vmem:[%s9902_s3 + $0x18] sm:$0xff] }
   0x5   :  { %v40_v10 = vadd.f32 %v34_v4, %v23_v5  ;;  %v36_v11 = vsel %vm33_vm0, %v34_v4, %v35_v6  ;;  %v45_v12 = vadd.f32 %v35_v6, %v28_v2  ;;  %v42_v13 = vadd.f32 %v35_v6, %v25_v8  ;;  %v6497_v41 = vld [vmem:[%s9903_s5 + $0x80] sm:$0xff]  ;;  %v6498_v43 = vld [vmem:[%s9903_s5 + $0x88] sm:$0xff]  ;;  %v6499_v47 = vld [vmem:[%s9903_s5 + $0x90] sm:$0xff] }
   0x6   :  { %v44_v14 = vadd.f32 %v36_v11, %v27_v0  ;;  %v41_v15 = vadd.f32 %v36_v11, %v24_v7  ;;  %v43_v17 = vadd.f32 %v34_v4, %v26_v9  ;;  %v7904_v42 = vpack.c.bf16 %v152_v40, %v151_v39  ;;  %v6500_v49 = vld [vmem:[%s9903_s5 + $0x98] sm:$0xff]  ;;  %v6488_v51 = vld [vmem:[%s9902_s3 + $0x80] sm:$0xff]  ;;  %v6489_v52 = vld [vmem:[%s9902_s3 + $0x88] sm:$0xff] }
   0x7   :  { %v53_v16 = vrot.slane %v40_v10, 1  ;;  %v61_v18 = vrot.slane %v45_v12, 1  ;;  %v56_v19 = vrot.slane %v42_v13, 1  ;;  %v7920_v44 = vpack.c.bf16 %v6498_v43, %v6497_v41  ;;  %vm8748_vm4 = vmpackc.low %vm447_vm3, %vm447_vm3 }
   0x8   :  { %v59_v20 = vrot.slane %v44_v14, 1  ;;  %v54_v21 = vrot.slane %v41_v15, 1  ;;  %v58_v25 = vrot.slane %v43_v17, 1  ;;  %7905 = vmatprep.subr.bf16.mxu1 %v7904_v42  ;;  %v7908_v48 = vpack.c.bf16 %v154_v46, %v153_v45 }
   0x9   :  { %7921 = vmatprep.subr.bf16.mxu0 %v7920_v44  ;;  %7907 = vmatpush3.bf16.msra.mxu1 %v7904_v42  ;;  %v7924_v50 = vpack.c.bf16 %v6500_v49, %v6499_v47  ;;  %v8673_v53 = vpack.c.bf16 %v6489_v52, %v6488_v51  ;;  %v6501_v51 = vld [vmem:[%s9904_s2 + $0xf] ss:$0 sm:$0xff]  ;;  %v6483_v52 = vld [vmem:[%s9904_s2 + $0x7] ss:$0 sm:$0xff] }
   0xa   :  { %v8612_v22 = vsel %vm52_vm1, %v59_v20, %v61_v18  ;;  %v8615_v23 = vsel %vm52_vm1, %v53_v16, %v54_v21  ;;  %v8618_v24 = vsel %vm52_vm1, %v54_v21, %v56_v19  ;;  %v8632_v32 = vsel %vm52_vm1, %v58_v25, %v59_v20  ;;  %7923 = vmatpush3.bf16.msra.mxu0 %v7920_v44 }
   0xb   :  { %v79_v26 = vsel %vm69_vm2, %v8612_v22, 0.0  ;;  %v70_v27 = vsel %vm69_vm2, %v8615_v23, 0.0  ;;  %v87_v28 = vmul.f32 %v8615_v23, %v8615_v23  ;;  %v73_v30 = vsel %vm69_vm2, %v8618_v24, 0.0  ;;  %7909 = vmatprep.subr.bf16.mxu1 %v7908_v48  ;;  %7925 = vmatprep.subr.bf16.mxu0 %v7924_v50 }
   0xc   :  { %80 = vadd.xlane.f32.xlu1 %v79_v26  ;;  %71 = vadd.xlane.f32.xlu0 %v70_v27  ;;  %v88_v31 = vmul.f32 %v8618_v24, %v8618_v24  ;;  %v76_v34 = vsel %vm69_vm2, %v8632_v32, 0.0  ;;  %v90_v35 = vmul.f32 %v8612_v22, %v8612_v22  ;;  %v89_v36 = vmul.f32 %v8632_v32, %v8632_v32  ;;  %v6481_v27 = vld [vmem:[%s9904_s2] ss:$0 sm:$0xff] }
   0xd   :  { %v91_v29 = vsel %vm69_vm2, %v87_v28, 0.0  ;;  %7911 = vmatpush3.bf16.msra.mxu1 %v7908_v48 }
   0xe   :  { %v94_v33 = vsel %vm69_vm2, %v88_v31, 0.0  ;;  %v100_v37 = vsel %vm69_vm2, %v90_v35, 0.0  ;;  %v97_v38 = vsel %vm69_vm2, %v89_v36, 0.0  ;;  %7927 = vmatpush3.bf16.msra.mxu0 %v7924_v50  ;;  %7913 = vmatprep.subr.bf16.mxu1 %v8673_v53  ;;  %v6490_v36 = vld [vmem:[%s9902_s3 + $0x90] sm:$0xff] }
  0x10   :  { %92 = vadd.xlane.f32.xlu1 %v91_v29  ;;  %74 = vadd.xlane.f32.xlu0 %v73_v30  ;;  %v6482_v29 = vld [vmem:[%s9904_s2 + $0x1] ss:$0 sm:$0xff] }
  0x14   :  { %95 = vadd.xlane.f32.xlu1 %v94_v33  ;;  %77 = vadd.xlane.f32.xlu0 %v76_v34 }
  0x18   :  { %101 = vadd.xlane.f32.xlu1 %v100_v37  ;;  %98 = vadd.xlane.f32.xlu0 %v97_v38  ;;  %v6491_v37 = vld [vmem:[%s9902_s3 + $0x98] sm:$0xff] }
  0x19   :  { %v7916_v45 = vpack.c.bf16 %v6491_v37, %v6490_v36 }
  0x99   :  { %v81_v54 = vpop.xlane.xlu1 %80  ;;  %v72_v55 = vpop.xlane.xlu0 %71 }
  0x9a   :  { %v83_v56 = vmul.f32 0.03125, %v72_v55  ;;  %v86_v63 = vmul.f32 0.03125, %v81_v54 }
  0x9c   :  { %v107_v59 = vmul.f32 %v83_v56, %v83_v56  ;;  %v110_v8 = vmul.f32 %v86_v63, %v86_v63  ;;  %v119_v25 = vsub.f32 %v8615_v23, %v83_v56  ;;  %v122_v38 = vsub.f32 %v8612_v22, %v86_v63 }
  0x9d   :  { %v93_v57 = vpop.xlane.xlu1 %92  ;;  %v75_v58 = vpop.xlane.xlu0 %74 }
  0x9e   :  { %v103_v60 = vmul.f32 0.03125, %v93_v57  ;;  %v84_v61 = vmul.f32 0.03125, %v75_v58 }
  0xa0   :  { %v111_v62 = vsub.f32 %v103_v60, %v107_v59  ;;  %v108_v3 = vmul.f32 %v84_v61, %v84_v61  ;;  %v120_v31 = vsub.f32 %v8618_v24, %v84_v61 }
  0xa1   :  { %v96_v0 = vpop.xlane.xlu1 %95  ;;  %v78_v1 = vpop.xlane.xlu0 %77 }
  0xa2   :  { %v115_v2 = vmax.f32 %v111_v62, 0.0  ;;  %v104_v4 = vmul.f32 0.03125, %v96_v0  ;;  %v85_v5 = vmul.f32 0.03125, %v78_v1 }
  0xa4   :  { %v123_v6 = vadd.f32 1e-06, %v115_v2  ;;  %v112_v7 = vsub.f32 %v104_v4, %v108_v3  ;;  %v109_v9 = vmul.f32 %v85_v5, %v85_v5  ;;  %v121_v41 = vsub.f32 %v8632_v32, %v85_v5  ;;  %v6492_v4 = vld [vmem:[%s9904_s2 + $0xb] ss:$0 sm:$0xff] }
  0xa5   :  { %v102_v10 = vpop.xlane.xlu1 %101  ;;  %v99_v11 = vpop.xlane.xlu0 %98 }
  0xa6   :  { %8368 = vrsqrt.f32 %v123_v6  ;;  %v116_v12 = vmax.f32 %v112_v7, 0.0  ;;  %v106_v13 = vmul.f32 0.03125, %v102_v10  ;;  %v105_v14 = vmul.f32 0.03125, %v99_v11  ;;  %v6515_v10 = vld [vmem:[%s9902_s3 + $0x28] sm:$0xff] }
  0xa8   :  { %v124_v15 = vadd.f32 1e-06, %v116_v12  ;;  %v114_v16 = vsub.f32 %v106_v13, %v110_v8  ;;  %v113_v17 = vsub.f32 %v105_v14, %v109_v9  ;;  %v6514_v9 = vld [vmem:[%s9902_s3 + $0x20] sm:$0xff] }
  0xaa   :  { %8370 = vrsqrt.f32 %v124_v15  ;;  %v118_v18 = vmax.f32 %v114_v16, 0.0  ;;  %v117_v19 = vmax.f32 %v113_v17, 0.0  ;;  %v7940_v15 = vpack.c.bf16 %v6515_v10, %v6514_v9 }
  0xac   :  { %v126_v20 = vadd.f32 1e-06, %v118_v18  ;;  %v125_v21 = vadd.f32 1e-06, %v117_v19  ;;  %v6523_v18 = vld [vmem:[%s9902_s3 + $0xa0] sm:$0xff]  ;;  %v6524_v19 = vld [vmem:[%s9902_s3 + $0xa8] sm:$0xff] }
  0xae   :  { %8372 = vrsqrt.f32 %v126_v20 }
  0xaf   :  { %8374 = vrsqrt.f32 %v125_v21 }
  0xb0   :  { %v8369_v26 = vpop.eup %8368 }
  0xb1   :  { %v131_v28 = vmul.f32 %v8369_v26, %v119_v25  ;;  %v7948_v25 = vpack.c.bf16 %v6524_v19, %v6523_v18  ;;  %v6516_v26 = vld [vmem:[%s9902_s3 + $0x30] sm:$0xff] }
  0xb3   :  { %v139_v30 = vmul.f32 %v6481_v27, %v131_v28 }
  0xb4   :  { %v8371_v33 = vpop.eup %8370 }
  0xb5   :  { %v8684_v34 = vadd.f32 %v6482_v29, %v139_v30  ;;  %v132_v35 = vmul.f32 %v8371_v33, %v120_v31  ;;  %v6525_v30 = vld [vmem:[%s9902_s3 + $0xb0] sm:$0xff]  ;;  %v6526_v31 = vld [vmem:[%s9902_s3 + $0xb8] sm:$0xff]  ;;  %v6532_v33 = vld [vmem:[%s9903_s5 + $0xa0] sm:$0xff] }
  0xb6   :  { %v7952_v37 = vpack.c.bf16 %v6526_v31, %v6525_v30 }
  0xb7   :  { %v140_v39 = vmul.f32 %v6481_v27, %v132_v35  ;;  %7234 = vmatprep.mubr.msk.f32.mxu1 %vm69_vm2, %v8684_v34  ;;  %7262 = vmatprep.mubr.msk.f32.mxu0 %vm69_vm2, %v8684_v34  ;;  %v6533_v35 = vld [vmem:[%s9903_s5 + $0xa8] sm:$0xff] }
  0xb8   :  { %v8373_v40 = vpop.eup %8372 }
  0xb9   :  { %v8375_v42 = vpop.eup %8374  ;;  %v8698_v43 = vadd.f32 %v6482_v29, %v140_v39  ;;  %v134_v44 = vmul.f32 %v8373_v40, %v122_v38  ;;  %v7956_v38 = vpack.c.bf16 %v6533_v35, %v6532_v33  ;;  %v6534_v39 = vld [vmem:[%s9903_s5 + $0xb0] sm:$0xff]  ;;  %v6535_v40 = vld [vmem:[%s9903_s5 + $0xb8] sm:$0xff] }
  0xba   :  { %v133_v46 = vmul.f32 %v8375_v42, %v121_v41  ;;  %v7960_v41 = vpack.c.bf16 %v6535_v40, %v6534_v39 }
  0xbb   :  { %v142_v47 = vmul.f32 %v6481_v27, %v134_v44  ;;  %7235 = vmatmul.mubr.msk.f32.vlgmr.msra.gmra.mrb[0].mxu1 %vm69_vm2, %v8698_v43  ;;  %7263 = vmatmul.mubr.msk.f32.vlgmr.msra.gmra.mrb[0].mxu0 %vm69_vm2, %v8698_v43 }
  0xbc   :  { %v141_v48 = vmul.f32 %v6481_v27, %v133_v46  ;;  %7915 = vmatpush3.bf16.msra.mxu1 %v8673_v53  ;;  %v6517_v27 = vld [vmem:[%s9902_s3 + $0x38] sm:$0xff] }
  0xbd   :  { %v8705_v49 = vadd.f32 %v6482_v29, %v142_v47  ;;  %7917 = vmatprep.subr.bf16.mxu1 %v7916_v45  ;;  %v6518_v47 = vld [vmem:[%s9904_s2 + $0x8] ss:$0 sm:$0xff] }
  0xbe   :  { %v8707_v50 = vadd.f32 %v6482_v29, %v141_v48  ;;  %v7944_v29 = vpack.c.bf16 %v6517_v27, %v6516_v26 }
  0xc0   :  { %7237 = vmatprep.mubr.msk.f32.mxu1 %vm69_vm2, %v8707_v50  ;;  %7265 = vmatprep.mubr.msk.f32.mxu0 %vm69_vm2, %v8707_v50 }
  0xc1   :  { %7238 = vmatmul.mubr.msk.f32.gmra.mrb[2].mxu1 %vm69_vm2, %v8705_v49  ;;  %7266 = vmatmul.mubr.msk.f32.gmra.mrb[2].mxu0 %vm69_vm2, %v8705_v49 }
  0xc2   :  { %7919 = vmatpush3.bf16.msra.mxu1 %v7916_v45  ;;  %7248 = vmatprep.mubr.msk.f32.mxu1 %vm69_vm2, %v8684_v34 }
  0xc5   :  { %7249 = vmatmul.mubr.msk.f32.vlgmr.msra.gmra.mrb[4].mxu1 %vm69_vm2, %v8698_v43 }
  0xc6   :  { %7251 = vmatprep.mubr.msk.f32.mxu1 %vm69_vm2, %v8707_v50 }
  0xc9   :  { %7252 = vmatmul.mubr.msk.f32.gmra.mrb[6].mxu1 %vm69_vm2, %v8705_v49 }
 0x18e   :  { %v7236_v53 = vpop.f32.mrb[0].mxu1  ;;  %v7264_v54 = vpop.f32.mrb[0].mxu0 }
 0x18f   :  { %v434_v55 = vadd.f32 %v7264_v54, %v6501_v51  ;;  %v238_v56 = vpop.f32.mrb[1].mxu1  ;;  %v428_v57 = vpop.f32.mrb[1].mxu0  ;;  %v244_v28 = vadd.f32 %v7236_v53, %v6483_v52  ;;  %v6527_v53 = vld [vmem:[%s9904_s2 + $0xc] ss:$0 sm:$0xff] }
 0x190   :  { %v239_v58 = vadd.f32 %v6483_v52, %v238_v56  ;;  %v429_v59 = vadd.f32 %v6501_v51, %v428_v57 }
 0x192   :  { %v8731_v60 = vpack.c.bf16 %v434_v55, %v429_v59  ;;  %7272 = vmatprep.mubr.msk.f32.mxu1 %vm447_vm3, %v239_v58 }
 0x194   :  { %v7239_v61 = vpop.f32.mrb[2].mxu1  ;;  %v7267_v62 = vpop.f32.mrb[2].mxu0 }
 0x195   :  { %v444_v63 = vadd.f32 %v7267_v62, %v6501_v51  ;;  %v248_v0 = vpop.f32.mrb[3].mxu1  ;;  %v438_v1 = vpop.f32.mrb[3].mxu0  ;;  %v254_v36 = vadd.f32 %v7239_v61, %v6483_v52  ;;  %v6536_v62 = vld [vmem:[%s9904_s2 + $0x10] ss:$0 sm:$0xff] }
 0x196   :  { %v249_v2 = vadd.f32 %v6483_v52, %v248_v0  ;;  %v439_v3 = vadd.f32 %v6501_v51, %v438_v1 }
 0x198   :  { %v8737_v5 = vpack.c.bf16 %v444_v63, %v439_v3  ;;  %v7250_v6 = vpop.f32.mrb[4].mxu1  ;;  %7279 = vmatprep.mubr.msk.f32.mxu0 %vm447_vm3, %v249_v2 }
 0x199   :  { %v339_v7 = vadd.f32 %v7250_v6, %v6492_v4  ;;  %v333_v8 = vpop.f32.mrb[5].mxu1 }
 0x19a   :  { %v334_v11 = vadd.f32 %v6492_v4, %v333_v8 }
 0x19c   :  { %v7928_v13 = vpack.c.bf16 %v339_v7, %v334_v11  ;;  %v7253_v14 = vpop.f32.mrb[6].mxu1 }
 0x19d   :  { %v349_v16 = vadd.f32 %v7253_v14, %v6492_v4  ;;  %v343_v17 = vpop.f32.mrb[7].mxu1 }
 0x19e   :  { %v344_v20 = vadd.f32 %v6492_v4, %v343_v17  ;;  %7930 = vmatprep.subr.msk.bf16.mxu1 %vm8748_vm4, %v7928_v13 }
 0x19f   :  { %7933 = vmatpush3.bf16.xpose.msk.msra.mxu1 %vm8748_vm4, %v7928_v13 }
 0x1a0   :  { %v7934_v21 = vpack.c.bf16 %v349_v16, %v344_v20  ;;  %7941 = vmatprep.subr.bf16.mxu1 %v7940_v15 }
 0x1a2   :  { %7936 = vmatprep.subr.msk.bf16.mxu0 %vm8748_vm4, %v7934_v21 }
 0x1a3   :  { %7939 = vmatpush3.bf16.xpose.msk.msra.mxu0 %vm8748_vm4, %v7934_v21 }
 0x1a4   :  { %7949 = vmatprep.subr.bf16.mxu0 %v7948_v25 }
 0x1a6   :  { %7273 = vmatmul.mubr.msk.f32.vlgmr.msra.gmra.mrb[8].mxu1 %vm447_vm3, %v244_v28 }
 0x1a7   :  { %7943 = vmatpush3.bf16.msra.mxu1 %v7940_v15  ;;  %7290 = vmatprep.mubr.msk.f32.mxu1 %vm69_vm2, %v8684_v34 }
 0x1a8   :  { %7945 = vmatprep.subr.bf16.mxu1 %v7944_v29 }
 0x1aa   :  { %7280 = vmatmul.mubr.msk.f32.vlgmr.msra.gmra.mrb[4].mxu0 %vm447_vm3, %v254_v36 }
 0x1ab   :  { %7947 = vmatpush3.bf16.msra.mxu1 %v7944_v29  ;;  %7951 = vmatpush3.bf16.msra.mxu0 %v7948_v25 }
 0x1ac   :  { %7304 = vmatprep.mubr.msk.f32.mxu0 %vm69_vm2, %v8684_v34  ;;  %7953 = vmatprep.subr.bf16.mxu0 %v7952_v37 }
 0x1ad   :  { %7957 = vmatprep.subr.bf16.mxu1 %v7956_v38 }
 0x1ae   :  { %7291 = vmatmul.mubr.msk.f32.vlgmr.msra.gmra.mrb[10].mxu1 %vm69_vm2, %v8698_v43 }
 0x1af   :  { %7293 = vmatprep.mubr.msk.f32.mxu1 %vm69_vm2, %v8707_v50  ;;  %7955 = vmatpush3.bf16.msra.mxu0 %v7952_v37 }
 0x1b0   :  { %7959 = vmatpush3.bf16.msra.mxu1 %v7956_v38 }
 0x1b1   :  { %7961 = vmatprep.subr.bf16.mxu1 %v7960_v41 }
 0x1b2   :  { %7294 = vmatmul.mubr.msk.f32.gmra.mrb[12].mxu1 %vm69_vm2, %v8705_v49  ;;  %7305 = vmatmul.mubr.msk.f32.vlgmr.msra.gmra.mrb[6].mxu0 %vm69_vm2, %v8698_v43 }
 0x1b3   :  { %7307 = vmatprep.mubr.msk.f32.mxu0 %vm69_vm2, %v8707_v50  ;;  %7318 = vmatprep.mubr.msk.f32.mxu1 %vm69_vm2, %v8684_v34 }
 0x1b4   :  { %7963 = vmatpush3.bf16.msra.mxu1 %v7960_v41 }
 0x1b6   :  { %7308 = vmatmul.mubr.msk.f32.gmra.mrb[8].mxu0 %vm69_vm2, %v8705_v49 }
 0x1b7   :  { %7319 = vmatmul.mubr.msk.f32.vlgmr.msra.gmra.mrb[14].mxu1 %vm69_vm2, %v8698_v43 }
 0x1b8   :  { %7321 = vmatprep.mubr.msk.f32.mxu1 %vm69_vm2, %v8707_v50 }
 0x1bb   :  { %7322 = vmatmul.mubr.msk.f32.gmra.mrb[16].mxu1 %vm69_vm2, %v8705_v49 }
 0x279   :  { %v8816_v42 = vpop.f32.mrb[8].mxu1 }
 0x27a   :  { %v8818_v44 = vpop.f32.mrb[9].mxu1  ;;  %v623_v37 = vmul.f32 0.35355338, %v8816_v42 }
 0x27b   :  { %v622_v39 = vmul.f32 0.35355338, %v8818_v44 }
 0x27c   :  { %v630_v41 = vsel %vm626_vm5, %v623_v37, -inf }
 0x27d   :  { %v7281_v45 = vpop.f32.mrb[4].mxu0 }
 0x27e   :  { %v613_v46 = vpop.f32.mrb[5].mxu0  ;;  %v625_v31 = vmul.f32 0.35355338, %v7281_v45  ;;  %v627_v45 = vsel %vm626_vm5, %v622_v39, -inf }
 0x27f   :  { %v624_v35 = vmul.f32 0.35355338, %v613_v46 }
 0x280   :  { %v636_v38 = vsel %vm626_vm5, %v625_v31, -inf }
 0x281   :  { %v7292_v48 = vpop.f32.mrb[10].mxu1  ;;  %v633_v40 = vsel %vm626_vm5, %v624_v35, -inf }
 0x282   :  { %v747_v51 = vpop.f32.mrb[11].mxu1  ;;  %v753_v16 = vadd.f32 %v7292_v48, %v6518_v47 }
 0x283   :  { %v748_v52 = vadd.f32 %v6518_v47, %v747_v51 }
 0x285   :  { %v7295_v54 = vpop.f32.mrb[12].mxu1  ;;  %v7306_v55 = vpop.f32.mrb[6].mxu0  ;;  %7328 = vmatprep.mubr.msk.f32.mxu0 %vm447_vm3, %v748_v52 }
 0x286   :  { %v848_v56 = vadd.f32 %v7306_v55, %v6527_v53  ;;  %v757_v57 = vpop.f32.mrb[13].mxu1  ;;  %v842_v58 = vpop.f32.mrb[7].mxu0  ;;  %v763_v18 = vadd.f32 %v7295_v54, %v6518_v47 }
 0x287   :  { %v758_v59 = vadd.f32 %v6518_v47, %v757_v57  ;;  %v843_v61 = vadd.f32 %v6527_v53, %v842_v58 }
 0x289   :  { %v7964_v63 = vpack.c.bf16 %v848_v56, %v843_v61  ;;  %v7309_v0 = vpop.f32.mrb[8].mxu0  ;;  %7335 = vmatprep.mubr.msk.f32.mxu1 %vm447_vm3, %v758_v59 }
 0x28a   :  { %v858_v1 = vadd.f32 %v7309_v0, %v6527_v53  ;;  %v7320_v2 = vpop.f32.mrb[14].mxu1  ;;  %v852_v3 = vpop.f32.mrb[9].mxu0 }
 0x28b   :  { %v942_v4 = vadd.f32 %v7320_v2, %v6536_v62  ;;  %v853_v6 = vadd.f32 %v6527_v53, %v852_v3  ;;  %v936_v7 = vpop.f32.mrb[15].mxu1  ;;  %7966 = vmatprep.subr.msk.bf16.mxu0 %vm8748_vm4, %v7964_v63 }
 0x28c   :  { %v937_v8 = vadd.f32 %v6536_v62, %v936_v7  ;;  %7969 = vmatpush3.bf16.xpose.msk.msra.mxu0 %vm8748_vm4, %v7964_v63 }
 0x28d   :  { %v7970_v9 = vpack.c.bf16 %v858_v1, %v853_v6  ;;  %7985 = vmatprep.subr.bf16.mxu0 %v8731_v60 }
 0x28e   :  { %v7976_v10 = vpack.c.bf16 %v942_v4, %v937_v8  ;;  %v7323_v11 = vpop.f32.mrb[16].mxu1 }
 0x28f   :  { %v952_v13 = vadd.f32 %v7323_v11, %v6536_v62  ;;  %v946_v14 = vpop.f32.mrb[17].mxu1  ;;  %7972 = vmatprep.subr.msk.bf16.mxu1 %vm8748_vm4, %v7970_v9 }
 0x290   :  { %v947_v15 = vadd.f32 %v6536_v62, %v946_v14  ;;  %7975 = vmatpush3.bf16.xpose.msk.msra.mxu1 %vm8748_vm4, %v7970_v9 }
 0x291   :  { %7977 = vmatprep.subr.bf16.mxu1 %v7976_v10 }
 0x292   :  { %v8840_v17 = vpack.c.bf16 %v952_v13, %v947_v15 }
 0x293   :  { %7329 = vmatmul.mubr.msk.f32.vlgmr.msra.gmra.mrb[10].mxu0 %vm447_vm3, %v753_v16 }
 0x294   :  { %7987 = vmatpush3.bf16.msra.mxu0 %v8731_v60 }
 0x297   :  { %7336 = vmatmul.mubr.msk.f32.vlgmr.msra.gmra.mrb[18].mxu1 %vm447_vm3, %v763_v18 }
 0x298   :  { %7979 = vmatpush3.bf16.msra.mxu1 %v7976_v10 }
 0x299   :  { %7981 = vmatprep.subr.bf16.mxu1 %v8840_v17 }
 0x366   :  { %v7330_v19 = vpop.f32.mrb[10].mxu0 }
 0x367   :  { %v1130_v20 = vmul.f32 0.35355338, %v7330_v19  ;;  %v1033_v21 = vpop.f32.mrb[11].mxu0 }
 0x368   :  { %v1129_v25 = vmul.f32 0.35355338, %v1033_v21 }
 0x369   :  { %v1136_v26 = vsel %vm626_vm5, %v1130_v20, -inf }
 0x36a   :  { %v7337_v27 = vpop.f32.mrb[18].mxu1  ;;  %1137 = vmax.xlane.f32.xlu1 %v1136_v26  ;;  %v1133_v28 = vsel %vm626_vm5, %v1129_v25, -inf }
 0x36b   :  { %v1132_v29 = vmul.f32 0.35355338, %v7337_v27  ;;  %v1120_v30 = vpop.f32.mrb[19].mxu1  ;;  %1134 = vmax.xlane.f32.xlu0 %v1133_v28 }
 0x36c   :  { %v1131_v60 = vmul.f32 0.35355338, %v1120_v30  ;;  %v6558_v30 = vld [vmem:[%s9902_s3 + $0x48] sm:$0xff] }
 0x36d   :  { %v1142_v33 = vsel %vm626_vm5, %v1132_v29, -inf }
 0x36e   :  { %1143 = vmax.xlane.f32.xlu1 %v1142_v33  ;;  %v1139_v36 = vsel %vm626_vm5, %v1131_v60, -inf }
 0x36f   :  { %1140 = vmax.xlane.f32.xlu0 %v1139_v36 }
 0x372   :  { %637 = vmax.xlane.f32.xlu1 %v636_v38 }
 0x373   :  { %634 = vmax.xlane.f32.xlu0 %v633_v40 }
 0x376   :  { %631 = vmax.xlane.f32.xlu1 %v630_v41 }
 0x377   :  { %628 = vmax.xlane.f32.xlu0 %v627_v45 }
 0x3f7   :  { %v1138_v46 = vpop.xlane.xlu1 %1137 }
 0x3f8   :  { %v1146_v47 = vsub.f32 %v1130_v20, %v1138_v46  ;;  %v1135_v48 = vpop.xlane.xlu0 %1134 }
 0x3f9   :  { %v1145_v51 = vsub.f32 %v1129_v25, %v1135_v48 }
 0x3fa   :  { %v1151_v52 = vmul.f32 1.442695, %v1146_v47 }
 0x3fb   :  { %v1149_v42 = vmul.f32 1.442695, %v1145_v51  ;;  %v1144_v53 = vpop.xlane.xlu1 %1143  ;;  %v6566_v51 = vld [vmem:[%s9902_s3 + $0xc0] sm:$0xff] }
 0x3fc   :  { %8376 = vpow2.f32 %v1151_v52  ;;  %v1148_v54 = vsub.f32 %v1132_v29, %v1144_v53  ;;  %v1141_v44 = vpop.xlane.xlu0 %1140  ;;  %v6557_v29 = vld [vmem:[%s9902_s3 + $0x40] sm:$0xff]  ;;  %v6567_v52 = vld [vmem:[%s9902_s3 + $0xc8] sm:$0xff] }
 0x3fd   :  { %8378 = vpow2.f32 %v1149_v42  ;;  %v1147_v55 = vsub.f32 %v1131_v60, %v1141_v44  ;;  %v7992_v60 = vpack.c.bf16 %v6558_v30, %v6557_v29  ;;  %v8000_v44 = vpack.c.bf16 %v6567_v52, %v6566_v51 }
 0x3fe   :  { %v1155_v56 = vmul.f32 1.442695, %v1148_v54 }
 0x3ff   :  { %v1153_v57 = vmul.f32 1.442695, %v1147_v55  ;;  %v638_v58 = vpop.xlane.xlu1 %637  ;;  %7993 = vmatprep.subr.bf16.mxu0 %v7992_v60 }
 0x400   :  { %8380 = vpow2.f32 %v1155_v56  ;;  %v642_v59 = vsub.f32 %v625_v31, %v638_v58  ;;  %v635_v61 = vpop.xlane.xlu0 %634 }
 0x401   :  { %8382 = vpow2.f32 %v1153_v57  ;;  %v641_v62 = vsub.f32 %v624_v35, %v635_v61  ;;  %v6560_v61 = vld [vmem:[%s9902_s3 + $0x58] sm:$0xff] }
 0x402   :  { %v649_v63 = vmul.f32 1.442695, %v642_v59 }
 0x403   :  { %v647_v0 = vmul.f32 1.442695, %v641_v62  ;;  %v632_v1 = vpop.xlane.xlu1 %631  ;;  %v6568_v62 = vld [vmem:[%s9902_s3 + $0xd0] sm:$0xff] }
 0x404   :  { %8384 = vpow2.f32 %v649_v63  ;;  %v640_v2 = vsub.f32 %v623_v37, %v632_v1  ;;  %v629_v3 = vpop.xlane.xlu0 %628 }
 0x405   :  { %8386 = vpow2.f32 %v647_v0  ;;  %v639_v4 = vsub.f32 %v622_v39, %v629_v3 }
 0x406   :  { %v8377_v6 = vpop.eup %8376  ;;  %v645_v7 = vmul.f32 1.442695, %v640_v2 }
 0x407   :  { %v8379_v8 = vpop.eup %8378  ;;  %v643_v9 = vmul.f32 1.442695, %v639_v4  ;;  %v1160_v10 = vsel %vm626_vm5, %v8377_v6, 0.0  ;;  %v6575_v4 = vld [vmem:[%s9903_s5 + $0xc0] sm:$0xff] }
 0x408   :  { %8388 = vpow2.f32 %v645_v7  ;;  %1161 = vadd.xlane.f32.xlu1 %v1160_v10  ;;  %v1157_v11 = vsel %vm626_vm5, %v8379_v8, 0.0 }
 0x409   :  { %8390 = vpow2.f32 %v643_v9  ;;  %1158 = vadd.xlane.f32.xlu0 %v1157_v11  ;;  %v6578_v9 = vld [vmem:[%s9903_s5 + $0xd8] sm:$0xff] }
 0x40a   :  { %v8381_v13 = vpop.eup %8380 }
 0x40b   :  { %v8383_v14 = vpop.eup %8382  ;;  %v1166_v15 = vsel %vm626_vm5, %v8381_v13, 0.0 }
 0x40c   :  { %1167 = vadd.xlane.f32.xlu1 %v1166_v15  ;;  %v1163_v16 = vsel %vm626_vm5, %v8383_v14, 0.0  ;;  %v6561_v15 = vld [vmem:[%s9904_s2 + $0x9] ss:$0 sm:$0xff] }
 0x40d   :  { %1164 = vadd.xlane.f32.xlu0 %v1163_v16 }
 0x40e   :  { %v8385_v18 = vpop.eup %8384 }
 0x40f   :  { %v8387_v19 = vpop.eup %8386  ;;  %v660_v20 = vsel %vm626_vm5, %v8385_v18, 0.0 }
 0x410   :  { %661 = vadd.xlane.f32.xlu1 %v660_v20  ;;  %v657_v21 = vsel %vm626_vm5, %v8387_v19, 0.0 }
 0x411   :  { %658 = vadd.xlane.f32.xlu0 %v657_v21 }
 0x412   :  { %v8389_v25 = vpop.eup %8388 }
 0x413   :  { %v8391_v26 = vpop.eup %8390  ;;  %v654_v27 = vsel %vm626_vm5, %v8389_v25, 0.0 }
 0x414   :  { %655 = vadd.xlane.f32.xlu1 %v654_v27  ;;  %v651_v28 = vsel %vm626_vm5, %v8391_v26, 0.0 }
 0x415   :  { %652 = vadd.xlane.f32.xlu0 %v651_v28 }
 0x495   :  { %v1162_v31 = vpop.xlane.xlu1 %1161 }
 0x496   :  { %8392 = vrcp.f32 %v1162_v31  ;;  %v1159_v33 = vpop.xlane.xlu0 %1158 }
 0x497   :  { %8394 = vrcp.f32 %v1159_v33 }
 0x499   :  { %v1168_v35 = vpop.xlane.xlu1 %1167 }
 0x49a   :  { %8396 = vrcp.f32 %v1168_v35  ;;  %v1165_v36 = vpop.xlane.xlu0 %1164 }
 0x49b   :  { %8398 = vrcp.f32 %v1165_v36  ;;  %v6579_v36 = vld [vmem:[%s9904_s2 + $0x11] ss:$0 sm:$0xff] }
 0x49d   :  { %v662_v37 = vpop.xlane.xlu1 %661 }
 0x49e   :  { %v659_v38 = vpop.xlane.xlu0 %658 }
 0x49f   :  { %8400 = vrcp.f32 %v659_v38 }
 0x4a0   :  { %v8393_v39 = vpop.eup %8392  ;;  %8402 = vrcp.f32 %v662_v37 }
 0x4a1   :  { %v8395_v40 = vpop.eup %8394  ;;  %v656_v41 = vpop.xlane.xlu1 %655  ;;  %v1174_v47 = vmul.f32 %v8393_v39, %v8377_v6  ;;  %v6576_v6 = vld [vmem:[%s9903_s5 + $0xc8] sm:$0xff] }
 0x4a2   :  { %8404 = vrcp.f32 %v656_v41  ;;  %v653_v45 = vpop.xlane.xlu0 %652  ;;  %v1173_v46 = vmul.f32 %v8395_v40, %v8379_v8  ;;  %v8008_v7 = vpack.c.bf16 %v6576_v6, %v6575_v4  ;;  %v6577_v8 = vld [vmem:[%s9903_s5 + $0xd0] sm:$0xff] }
 0x4a3   :  { %8406 = vrcp.f32 %v653_v45  ;;  %v8012_v10 = vpack.c.bf16 %v6578_v9, %v6577_v8 }
 0x4a4   :  { %v8397_v48 = vpop.eup %8396  ;;  %7342 = vmatprep.mubr.msk.f32.mxu1 %vm626_vm5, %v1173_v46 }
 0x4a5   :  { %v8399_v42 = vpop.eup %8398  ;;  %7343 = vmatmul.mubr.msk.f32.vlgmr.msra.gmra.mrb[20].mxu1 %vm626_vm5, %v1174_v47  ;;  %v1176_v54 = vmul.f32 %v8397_v48, %v8381_v13 }
 0x4a6   :  { %7983 = vmatpush3.bf16.msra.mxu1 %v8840_v17  ;;  %v1175_v53 = vmul.f32 %v8399_v42, %v8383_v14  ;;  %v6559_v17 = vld [vmem:[%s9902_s3 + $0x50] sm:$0xff]  ;;  %v6570_v14 = vld [vmem:[%s9904_s2 + $0xd] ss:$0 sm:$0xff] }
 0x4a7   :  { %7989 = vmatprep.subr.bf16.mxu1 %v8737_v5  ;;  %v7996_v2 = vpack.c.bf16 %v6560_v61, %v6559_v17 }
 0x4a8   :  { %7349 = vmatprep.mubr.msk.f32.mxu1 %vm626_vm5, %v1175_v53 }
 0x4a9   :  { %v8401_v55 = vpop.eup %8400  ;;  %7350 = vmatmul.mubr.msk.f32.vlgmr.msra.gmra.mrb[22].mxu1 %vm626_vm5, %v1176_v54 }
 0x4aa   :  { %7991 = vmatpush3.bf16.msra.mxu1 %v8737_v5  ;;  %v669_v56 = vmul.f32 %v8401_v55, %v8387_v19  ;;  %v8403_v57 = vpop.eup %8402  ;;  %v6569_v5 = vld [vmem:[%s9902_s3 + $0xd8] sm:$0xff] }
 0x4ab   :  { %8001 = vmatprep.subr.bf16.mxu1 %v8000_v44  ;;  %v670_v0 = vmul.f32 %v8403_v57, %v8385_v18  ;;  %v8004_v3 = vpack.c.bf16 %v6569_v5, %v6568_v62 }
 0x4ac   :  { %v8405_v58 = vpop.eup %8404  ;;  %7363 = vmatprep.mubr.msk.f32.mxu1 %vm626_vm5, %v669_v56 }
 0x4ad   :  { %v8407_v59 = vpop.eup %8406  ;;  %v668_v1 = vmul.f32 %v8405_v58, %v8389_v25 }
 0x4ae   :  { %v667_v63 = vmul.f32 %v8407_v59, %v8391_v26 }
 0x4b0   :  { %7356 = vmatprep.mubr.msk.f32.mxu0 %vm626_vm5, %v667_v63 }
 0x4b1   :  { %7357 = vmatmul.mubr.msk.f32.vlgmr.msra.gmra.mrb[12].mxu0 %vm626_vm5, %v668_v1  ;;  %7364 = vmatmul.mubr.msk.f32.vlgmr.msra.gmra.mrb[22].mxu1 %vm626_vm5, %v670_v0 }
 0x4b2   :  { %7995 = vmatpush3.bf16.msra.mxu0 %v7992_v60  ;;  %8003 = vmatpush3.bf16.msra.mxu1 %v8000_v44 }
 0x4b3   :  { %7374 = vmatprep.mubr.msk.f32.mxu0 %vm69_vm2, %v8684_v34  ;;  %7388 = vmatprep.mubr.msk.f32.mxu1 %vm69_vm2, %v8684_v34 }
 0x4b4   :  { %7997 = vmatprep.subr.bf16.mxu0 %v7996_v2  ;;  %8005 = vmatprep.subr.bf16.mxu1 %v8004_v3 }
 0x4b6   :  { %7999 = vmatpush3.bf16.msra.mxu0 %v7996_v2  ;;  %8007 = vmatpush3.bf16.msra.mxu1 %v8004_v3 }
 0x4b7   :  { %8009 = vmatprep.subr.bf16.mxu0 %v8008_v7 }
 0x4b9   :  { %7375 = vmatmul.mubr.msk.f32.vlgmr.msra.gmra.mrb[14].mxu0 %vm69_vm2, %v8698_v43  ;;  %7389 = vmatmul.mubr.msk.f32.vlgmr.msra.gmra.mrb[24].mxu1 %vm69_vm2, %v8698_v43 }
 0x4ba   :  { %7377 = vmatprep.mubr.msk.f32.mxu0 %vm69_vm2, %v8707_v50  ;;  %7391 = vmatprep.mubr.msk.f32.mxu1 %vm69_vm2, %v8707_v50 }
 0x4bb   :  { %8011 = vmatpush3.bf16.msra.mxu0 %v8008_v7 }
 0x4bc   :  { %8013 = vmatprep.subr.bf16.mxu0 %v8012_v10 }
 0x4bd   :  { %7378 = vmatmul.mubr.msk.f32.gmra.mrb[16].mxu0 %vm69_vm2, %v8705_v49  ;;  %7392 = vmatmul.mubr.msk.f32.gmra.mrb[26].mxu1 %vm69_vm2, %v8705_v49 }
 0x4be   :  { %7402 = vmatprep.mubr.msk.f32.mxu0 %vm69_vm2, %v8684_v34 }
 0x4bf   :  { %8015 = vmatpush3.bf16.msra.mxu0 %v8012_v10 }
 0x4c2   :  { %7403 = vmatmul.mubr.msk.f32.vlgmr.msra.gmra.mrb[18].mxu0 %vm69_vm2, %v8698_v43 }
 0x4c3   :  { %7405 = vmatprep.mubr.msk.f32.mxu0 %vm69_vm2, %v8707_v50 }
 0x4c6   :  { %7406 = vmatmul.mubr.msk.f32.gmra.mrb[20].mxu0 %vm69_vm2, %v8705_v49 }
 0x578   :  { %v8935_v11 = vpop.f32.mrb[20].mxu1 }
 0x579   :  { %v8937_v13 = vpop.f32.mrb[21].mxu1 }
 0x58c   :  { %v7376_v16 = vpop.f32.mrb[14].mxu0  ;;  %v7390_v18 = vpop.f32.mrb[24].mxu1 }
 0x58d   :  { %v1678_v19 = vadd.f32 %v7390_v18, %v6570_v14  ;;  %v1577_v20 = vpop.f32.mrb[15].mxu0  ;;  %v1672_v21 = vpop.f32.mrb[25].mxu1  ;;  %v1583_v45 = vadd.f32 %v7376_v16, %v6561_v15 }
 0x58e   :  { %v1578_v25 = vadd.f32 %v6561_v15, %v1577_v20  ;;  %v1673_v26 = vadd.f32 %v6570_v14, %v1672_v21 }
 0x590   :  { %v8016_v27 = vpack.c.bf16 %v1678_v19, %v1673_v26  ;;  %v7379_v28 = vpop.f32.mrb[16].mxu0  ;;  %v7393_v29 = vpop.f32.mrb[26].mxu1  ;;  %7412 = vmatprep.mubr.msk.f32.mxu1 %vm447_vm3, %v1578_v25 }
 0x591   :  { %v1688_v30 = vadd.f32 %v7393_v29, %v6570_v14  ;;  %v1587_v60 = vpop.f32.mrb[17].mxu0  ;;  %v1682_v31 = vpop.f32.mrb[27].mxu1  ;;  %v1593_v42 = vadd.f32 %v7379_v28, %v6561_v15  ;;  %v6605_v28 = vld [vmem:[%s9902_s3 + $0xe0] sm:$0xff]  ;;  %v6606_v29 = vld [vmem:[%s9902_s3 + $0xe8] sm:$0xff] }
 0x592   :  { %v1588_v33 = vadd.f32 %v6561_v15, %v1587_v60  ;;  %v1683_v35 = vadd.f32 %v6570_v14, %v1682_v31  ;;  %8018 = vmatprep.subr.msk.bf16.mxu1 %vm8748_vm4, %v8016_v27  ;;  %v6596_v60 = vld [vmem:[%s9902_s3 + $0x60] sm:$0xff]  ;;  %v6597_v31 = vld [vmem:[%s9902_s3 + $0x68] sm:$0xff] }
 0x593   :  { %8021 = vmatpush3.bf16.xpose.msk.msra.mxu1 %vm8748_vm4, %v8016_v27 }
 0x594   :  { %v8022_v37 = vpack.c.bf16 %v1688_v30, %v1683_v35  ;;  %7419 = vmatprep.mubr.msk.f32.mxu0 %vm447_vm3, %v1588_v33  ;;  %v8044_v30 = vpack.c.bf16 %v6606_v29, %v6605_v28  ;;  %v8036_v33 = vpack.c.bf16 %v6597_v31, %v6596_v60 }
 0x595   :  { %v7404_v38 = vpop.f32.mrb[18].mxu0 }
 0x596   :  { %v1772_v39 = vadd.f32 %v7404_v38, %v6579_v36  ;;  %v1766_v40 = vpop.f32.mrb[19].mxu0  ;;  %8024 = vmatprep.subr.msk.bf16.mxu0 %vm8748_vm4, %v8022_v37 }
 0x597   :  { %v1767_v41 = vadd.f32 %v6579_v36, %v1766_v40  ;;  %8027 = vmatpush3.bf16.xpose.msk.msra.mxu0 %vm8748_vm4, %v8022_v37  ;;  %v6607_v40 = vld [vmem:[%s9902_s3 + $0xf0] sm:$0xff] }
 0x599   :  { %v8028_v46 = vpack.c.bf16 %v1772_v39, %v1767_v41  ;;  %v7407_v47 = vpop.f32.mrb[20].mxu0  ;;  %v6608_v41 = vld [vmem:[%s9902_s3 + $0xf8] sm:$0xff] }
 0x59a   :  { %v1782_v48 = vadd.f32 %v7407_v47, %v6579_v36  ;;  %v1776_v51 = vpop.f32.mrb[21].mxu0  ;;  %7413 = vmatmul.mubr.msk.f32.vlgmr.msra.gmra.mrb[28].mxu1 %vm447_vm3, %v1583_v45 }
 0x59b   :  { %v1777_v52 = vadd.f32 %v6579_v36, %v1776_v51  ;;  %8029 = vmatprep.subr.bf16.mxu0 %v8028_v46 }
 0x59d   :  { %v8032_v53 = vpack.c.bf16 %v1782_v48, %v1777_v52  ;;  %v8048_v48 = vpack.c.bf16 %v6608_v41, %v6607_v40  ;;  %v6598_v52 = vld [vmem:[%s9902_s3 + $0x70] sm:$0xff] }
 0x59e   :  { %7420 = vmatmul.mubr.msk.f32.vlgmr.msra.gmra.mrb[22].mxu0 %vm447_vm3, %v1593_v42  ;;  %v6599_v42 = vld [vmem:[%s9902_s3 + $0x78] sm:$0xff] }
 0x59f   :  { %8033 = vmatprep.subr.bf16.mxu1 %v8032_v53  ;;  %8031 = vmatpush3.bf16.msra.mxu0 %v8028_v46 }
 0x5a0   :  { %8035 = vmatpush3.bf16.msra.mxu1 %v8032_v53  ;;  %8045 = vmatprep.subr.bf16.mxu0 %v8044_v30 }
 0x5a1   :  { %8037 = vmatprep.subr.bf16.mxu1 %v8036_v33 }
 0x66d   :  { %v7414_v54 = vpop.f32.mrb[28].mxu1 }
 0x66e   :  { %v1960_v44 = vmul.f32 0.35355338, %v7414_v54  ;;  %v1863_v55 = vpop.f32.mrb[29].mxu1 }
 0x66f   :  { %v1959_v56 = vmul.f32 0.35355338, %v1863_v55  ;;  %v8040_v55 = vpack.c.bf16 %v6599_v42, %v6598_v52 }
 0x670   :  { %v1966_v57 = vsel %vm626_vm5, %v1960_v44, -inf }
 0x671   :  { %v7421_v58 = vpop.f32.mrb[22].mxu0  ;;  %1967 = vmax.xlane.f32.xlu1 %v1966_v57  ;;  %v1963_v17 = vsel %vm626_vm5, %v1959_v56, -inf  ;;  %v6615_v57 = vld [vmem:[%s9903_s5 + $0xe8] sm:$0xff] }
 0x672   :  { %v1962_v59 = vmul.f32 0.35355338, %v7421_v58  ;;  %v1950_v61 = vpop.f32.mrb[23].mxu0  ;;  %1964 = vmax.xlane.f32.xlu0 %v1963_v17  ;;  %v6616_v17 = vld [vmem:[%s9903_s5 + $0xf0] sm:$0xff] }
 0x673   :  { %v1961_v62 = vmul.f32 0.35355338, %v1950_v61 }
 0x674   :  { %v1972_v5 = vsel %vm626_vm5, %v1962_v59, -inf }
 0x675   :  { %1973 = vmax.xlane.f32.xlu1 %v1972_v5  ;;  %v1969_v63 = vsel %vm626_vm5, %v1961_v62, -inf }
 0x676   :  { %1970 = vmax.xlane.f32.xlu0 %v1969_v63 }
 0x6fe   :  { %v1968_v0 = vpop.xlane.xlu1 %1967 }
 0x6ff   :  { %v1976_v1 = vsub.f32 %v1960_v44, %v1968_v0  ;;  %v1965_v2 = vpop.xlane.xlu0 %1964 }
 0x700   :  { %v1975_v3 = vsub.f32 %v1959_v56, %v1965_v2  ;;  %v6614_v56 = vld [vmem:[%s9903_s5 + $0xe0] sm:$0xff] }
 0x701   :  { %v1981_v4 = vmul.f32 1.442695, %v1976_v1  ;;  %v8052_v58 = vpack.c.bf16 %v6615_v57, %v6614_v56 }
 0x702   :  { %v1979_v6 = vmul.f32 1.442695, %v1975_v3  ;;  %v1974_v7 = vpop.xlane.xlu1 %1973 }
 0x703   :  { %8408 = vpow2.f32 %v1981_v4  ;;  %v1978_v8 = vsub.f32 %v1962_v59, %v1974_v7  ;;  %v1971_v9 = vpop.xlane.xlu0 %1970  ;;  %v6617_v59 = vld [vmem:[%s9903_s5 + $0xf8] sm:$0xff] }
 0x704   :  { %8410 = vpow2.f32 %v1979_v6  ;;  %v1977_v10 = vsub.f32 %v1961_v62, %v1971_v9  ;;  %v8056_v61 = vpack.c.bf16 %v6617_v59, %v6616_v17  ;;  %v6609_v62 = vld [vmem:[%s9904_s2 + $0xe] ss:$0 sm:$0xff] }
 0x705   :  { %v1985_v14 = vmul.f32 1.442695, %v1978_v8 }
 0x706   :  { %v1983_v15 = vmul.f32 1.442695, %v1977_v10 }
 0x707   :  { %8412 = vpow2.f32 %v1985_v14 }
 0x708   :  { %8414 = vpow2.f32 %v1983_v15  ;;  %v6618_v15 = vld [vmem:[%s9904_s2 + $0x12] ss:$0 sm:$0xff] }
 0x70d   :  { %v8409_v16 = vpop.eup %8408 }
 0x70e   :  { %v8411_v18 = vpop.eup %8410  ;;  %v1990_v19 = vsel %vm626_vm5, %v8409_v16, 0.0 }
 0x70f   :  { %1991 = vadd.xlane.f32.xlu1 %v1990_v19  ;;  %v1987_v20 = vsel %vm626_vm5, %v8411_v18, 0.0 }
 0x710   :  { %1988 = vadd.xlane.f32.xlu0 %v1987_v20 }
 0x711   :  { %v8413_v21 = vpop.eup %8412 }
 0x712   :  { %v8415_v25 = vpop.eup %8414  ;;  %v1996_v26 = vsel %vm626_vm5, %v8413_v21, 0.0 }
 0x713   :  { %1997 = vadd.xlane.f32.xlu1 %v1996_v26  ;;  %v1993_v27 = vsel %vm626_vm5, %v8415_v25, 0.0 }
 0x714   :  { %1994 = vadd.xlane.f32.xlu0 %v1993_v27 }
 0x79c   :  { %v1992_v35 = vpop.xlane.xlu1 %1991 }
 0x79d   :  { %8416 = vrcp.f32 %v1992_v35  ;;  %v1989_v36 = vpop.xlane.xlu0 %1988 }
 0x79e   :  { %8418 = vrcp.f32 %v1989_v36 }
 0x7a0   :  { %v1998_v37 = vpop.xlane.xlu1 %1997 }
 0x7a1   :  { %8420 = vrcp.f32 %v1998_v37  ;;  %v1995_v38 = vpop.xlane.xlu0 %1994 }
 0x7a2   :  { %8422 = vrcp.f32 %v1995_v38 }
 0x7a7   :  { %v8417_v39 = vpop.eup %8416 }
 0x7a8   :  { %v8419_v45 = vpop.eup %8418  ;;  %v2004_v47 = vmul.f32 %v8417_v39, %v8409_v16 }
 0x7a9   :  { %v2003_v46 = vmul.f32 %v8419_v45, %v8411_v18 }
 0x7ab   :  { %v8421_v51 = vpop.eup %8420  ;;  %7426 = vmatprep.mubr.msk.f32.mxu0 %vm626_vm5, %v2003_v46 }
 0x7ac   :  { %v8423_v53 = vpop.eup %8422  ;;  %7427 = vmatmul.mubr.msk.f32.vlgmr.msra.gmra.mrb[12].mxu0 %vm626_vm5, %v2004_v47  ;;  %v2006_v44 = vmul.f32 %v8421_v51, %v8413_v21 }
 0x7ad   :  { %8047 = vmatpush3.bf16.msra.mxu0 %v8044_v30  ;;  %7458 = vmatprep.mubr.msk.f32.mxu0 %vm69_vm2, %v8684_v34  ;;  %v2005_v54 = vmul.f32 %v8423_v53, %v8415_v25 }
 0x7ae   :  { %8049 = vmatprep.subr.bf16.mxu0 %v8048_v48 }
 0x7af   :  { %7433 = vmatprep.mubr.msk.f32.mxu1 %vm626_vm5, %v2005_v54 }
 0x7b0   :  { %7434 = vmatmul.mubr.msk.f32.vlgmr.msra.gmra.mrb[22].mxu1 %vm626_vm5, %v2006_v44 }
 0x7b1   :  { %8039 = vmatpush3.bf16.msra.mxu1 %v8036_v33  ;;  %8051 = vmatpush3.bf16.msra.mxu0 %v8048_v48 }
 0x7b2   :  { %7444 = vmatprep.mubr.msk.f32.mxu1 %vm69_vm2, %v8684_v34  ;;  %8041 = vmatprep.subr.bf16.mxu1 %v8040_v55 }
 0x7b4   :  { %7459 = vmatmul.mubr.msk.f32.vlgmr.msra.gmra.mrb[24].mxu0 %vm69_vm2, %v8698_v43 }
 0x7b5   :  { %8043 = vmatpush3.bf16.msra.mxu1 %v8040_v55  ;;  %7461 = vmatprep.mubr.msk.f32.mxu0 %vm69_vm2, %v8707_v50 }
 0x7b6   :  { %8053 = vmatprep.subr.bf16.mxu1 %v8052_v58 }
 0x7b8   :  { %7445 = vmatmul.mubr.msk.f32.vlgmr.msra.gmra.mrb[30].mxu1 %vm69_vm2, %v8698_v43  ;;  %7462 = vmatmul.mubr.msk.f32.gmra.mrb[26].mxu0 %vm69_vm2, %v8705_v49 }
 0x7b9   :  { %7447 = vmatprep.mubr.msk.f32.mxu1 %vm69_vm2, %v8707_v50  ;;  %8055 = vmatpush3.bf16.msra.mxu1 %v8052_v58 }
 0x7ba   :  { %8057 = vmatprep.subr.bf16.mxu1 %v8056_v61 }
 0x7bc   :  { %7448 = vmatmul.mubr.msk.f32.gmra.mrb[32].mxu1 %vm69_vm2, %v8705_v49 }
 0x7bd   :  { %8059 = vmatpush3.bf16.msra.mxu1 %v8056_v61  ;;  %7472 = vmatprep.mubr.msk.f32.mxu1 %vm69_vm2, %v8684_v34  ;;  %v6600_v34 = vld [vmem:[%s9904_s2 + $0xa] ss:$0 sm:$0xff] }
 0x7c0   :  { %7473 = vmatmul.mubr.msk.f32.vlgmr.msra.gmra.mrb[34].mxu1 %vm69_vm2, %v8698_v43 }
 0x7c1   :  { %7475 = vmatprep.mubr.msk.f32.mxu1 %vm69_vm2, %v8707_v50 }
 0x7c4   :  { %7476 = vmatmul.mubr.msk.f32.gmra.mrb[36].mxu1 %vm69_vm2, %v8705_v49 }
 0x887   :  { %v7460_v5 = vpop.f32.mrb[24].mxu0 }
 0x888   :  { %v2350_v63 = vadd.f32 %v7460_v5, %v6609_v62  ;;  %v2344_v0 = vpop.f32.mrb[25].mxu0 }
 0x889   :  { %v2345_v1 = vadd.f32 %v6609_v62, %v2344_v0 }
 0x88b   :  { %v8060_v2 = vpack.c.bf16 %v2350_v63, %v2345_v1  ;;  %v7446_v43 = vpop.f32.mrb[30].mxu1  ;;  %v7463_v3 = vpop.f32.mrb[26].mxu0 }
 0x88c   :  { %v2360_v4 = vadd.f32 %v7463_v3, %v6609_v62  ;;  %v2249_v50 = vpop.f32.mrb[31].mxu1  ;;  %v2354_v6 = vpop.f32.mrb[27].mxu0  ;;  %v2255_v16 = vadd.f32 %v7446_v43, %v6600_v34 }
 0x88d   :  { %v2250_v7 = vadd.f32 %v6600_v34, %v2249_v50  ;;  %v2355_v49 = vadd.f32 %v6609_v62, %v2354_v6  ;;  %8062 = vmatprep.subr.msk.bf16.mxu0 %vm8748_vm4, %v8060_v2 }
 0x88e   :  { %8065 = vmatpush3.bf16.xpose.msk.msra.mxu0 %vm8748_vm4, %v8060_v2 }
 0x88f   :  { %v8066_v8 = vpack.c.bf16 %v2360_v4, %v2355_v49  ;;  %v7449_v9 = vpop.f32.mrb[32].mxu1  ;;  %7482 = vmatprep.mubr.msk.f32.mxu0 %vm447_vm3, %v2250_v7 }
 0x890   :  { %v2259_v10 = vpop.f32.mrb[33].mxu1  ;;  %v2265_v25 = vadd.f32 %v7449_v9, %v6600_v34 }
 0x891   :  { %v2260_v14 = vadd.f32 %v6600_v34, %v2259_v10  ;;  %8068 = vmatprep.subr.msk.bf16.mxu1 %vm8748_vm4, %v8066_v8 }
 0x892   :  { %8071 = vmatpush3.bf16.xpose.msk.msra.mxu1 %vm8748_vm4, %v8066_v8 }
 0x893   :  { %v7474_v18 = vpop.f32.mrb[34].mxu1  ;;  %7489 = vmatprep.mubr.msk.f32.mxu1 %vm447_vm3, %v2260_v14 }
 0x894   :  { %v2444_v19 = vadd.f32 %v7474_v18, %v6618_v15  ;;  %v2438_v20 = vpop.f32.mrb[35].mxu1 }
 0x895   :  { %v2439_v21 = vadd.f32 %v6618_v15, %v2438_v20  ;;  %7483 = vmatmul.mubr.msk.f32.vlgmr.msra.gmra.mrb[28].mxu0 %vm447_vm3, %v2255_v16 }
 0x897   :  { %v8072_v26 = vpack.c.bf16 %v2444_v19, %v2439_v21  ;;  %v7477_v27 = vpop.f32.mrb[36].mxu1  ;;  %v6635_v19 = vld [vmem:[%s9904_s2 + $0x4] ss:$0 sm:$0xff] }
 0x898   :  { %v2454_v28 = vadd.f32 %v7477_v27, %v6618_v15  ;;  %v2448_v29 = vpop.f32.mrb[37].mxu1 }
 0x899   :  { %v2449_v30 = vadd.f32 %v6618_v15, %v2448_v29  ;;  %7490 = vmatmul.mubr.msk.f32.vlgmr.msra.gmra.mrb[38].mxu1 %vm447_vm3, %v2265_v25  ;;  %8073 = vmatprep.subr.bf16.mxu0 %v8072_v26 }
 0x89a   :  { %8075 = vmatpush3.bf16.msra.mxu0 %v8072_v26 }
 0x89b   :  { %v8076_v60 = vpack.c.bf16 %v2454_v28, %v2449_v30 }
 0x89d   :  { %8077 = vmatprep.subr.bf16.mxu1 %v8076_v60 }
 0x89e   :  { %8079 = vmatpush3.bf16.msra.mxu1 %v8076_v60 }
 0x968   :  { %v7484_v31 = vpop.f32.mrb[28].mxu0 }
 0x969   :  { %v2632_v33 = vmul.f32 0.35355338, %v7484_v31  ;;  %v2535_v35 = vpop.f32.mrb[29].mxu0 }
 0x96a   :  { %v2631_v36 = vmul.f32 0.35355338, %v2535_v35 }
 0x96b   :  { %v2638_v37 = vsel %vm626_vm5, %v2632_v33, -inf }
 0x96c   :  { %v7491_v38 = vpop.f32.mrb[38].mxu1  ;;  %2639 = vmax.xlane.f32.xlu1 %v2638_v37  ;;  %v2635_v39 = vsel %vm626_vm5, %v2631_v36, -inf }
 0x96d   :  { %v2634_v40 = vmul.f32 0.35355338, %v7491_v38  ;;  %v2622_v41 = vpop.f32.mrb[39].mxu1  ;;  %2636 = vmax.xlane.f32.xlu0 %v2635_v39 }
 0x96e   :  { %v2633_v45 = vmul.f32 0.35355338, %v2622_v41  ;;  %v2940_v41 = vld [vmem:[%s9905_s4] sm:$0xff] }
 0x96f   :  { %v2644_v46 = vsel %vm626_vm5, %v2634_v40, -inf }
 0x970   :  { %2645 = vmax.xlane.f32.xlu1 %v2644_v46  ;;  %v2641_v47 = vsel %vm626_vm5, %v2633_v45, -inf }
 0x971   :  { %2642 = vmax.xlane.f32.xlu0 %v2641_v47  ;;  %v2942_v47 = vld [vmem:[%s9905_s4 + $0x10] sm:$0xff] }
 0x9f9   :  { %v2640_v48 = vpop.xlane.xlu1 %2639 }
 0x9fa   :  { %v2648_v51 = vsub.f32 %v2632_v33, %v2640_v48  ;;  %v2637_v52 = vpop.xlane.xlu0 %2636  ;;  %v2943_v48 = vld [vmem:[%s9905_s4 + $0x18] sm:$0xff] }
 0x9fb   :  { %v2647_v42 = vsub.f32 %v2631_v36, %v2637_v52  ;;  %v3066_v52 = vld [vmem:[%s9903_s5] sm:$0xff] }
 0x9fc   :  { %v2653_v53 = vmul.f32 1.442695, %v2648_v51  ;;  %v8084_v51 = vpack.c.bf16 %v2943_v48, %v2942_v47 }
 0x9fd   :  { %v2651_v54 = vmul.f32 1.442695, %v2647_v42  ;;  %v2646_v44 = vpop.xlane.xlu1 %2645  ;;  %v3067_v42 = vld [vmem:[%s9903_s5 + $0x8] sm:$0xff] }
 0x9fe   :  { %8424 = vpow2.f32 %v2653_v53  ;;  %v2650_v55 = vsub.f32 %v2634_v40, %v2646_v44  ;;  %v2643_v56 = vpop.xlane.xlu0 %2642  ;;  %v3068_v53 = vld [vmem:[%s9903_s5 + $0x10] sm:$0xff]  ;;  %v3069_v44 = vld [vmem:[%s9903_s5 + $0x18] sm:$0xff] }
 0x9ff   :  { %8426 = vpow2.f32 %v2651_v54  ;;  %v2649_v57 = vsub.f32 %v2633_v45, %v2643_v56  ;;  %v2941_v45 = vld [vmem:[%s9905_s4 + $0x8] sm:$0xff]  ;;  %v8088_v54 = vpack.c.bf16 %v3067_v42, %v3066_v52  ;;  %v3070_v56 = vld [vmem:[%s9903_s5 + $0x20] sm:$0xff] }
 0xa00   :  { %v2657_v58 = vmul.f32 1.442695, %v2650_v55  ;;  %v8080_v46 = vpack.c.bf16 %v2941_v45, %v2940_v41  ;;  %v8092_v55 = vpack.c.bf16 %v3069_v44, %v3068_v53  ;;  %v3072_v44 = vld [vmem:[%s9903_s5 + $0x30] sm:$0xff] }
 0xa01   :  { %v2655_v17 = vmul.f32 1.442695, %v2649_v57  ;;  %v3071_v57 = vld [vmem:[%s9903_s5 + $0x28] sm:$0xff]  ;;  %8089 = vmatprep.subr.bf16.mxu1 %v8088_v54 }
 0xa02   :  { %8428 = vpow2.f32 %v2657_v58  ;;  %8081 = vmatprep.subr.bf16.mxu0 %v8080_v46  ;;  %v8096_v58 = vpack.c.bf16 %v3071_v57, %v3070_v56  ;;  %v3074_v57 = vld [vmem:[%s9903_s5 + $0x40] sm:$0xff] }
 0xa03   :  { %8430 = vpow2.f32 %v2655_v17 }
 0xa08   :  { %v8425_v59 = vpop.eup %8424 }
 0xa09   :  { %v8427_v61 = vpop.eup %8426  ;;  %v2662_v62 = vsel %vm626_vm5, %v8425_v59, 0.0 }
 0xa0a   :  { %2663 = vadd.xlane.f32.xlu1 %v2662_v62  ;;  %v2659_v5 = vsel %vm626_vm5, %v8427_v61, 0.0 }
 0xa0b   :  { %2660 = vadd.xlane.f32.xlu0 %v2659_v5 }
 0xa0c   :  { %v8429_v63 = vpop.eup %8428 }
 0xa0d   :  { %v8431_v0 = vpop.eup %8430  ;;  %v2668_v1 = vsel %vm626_vm5, %v8429_v63, 0.0 }
 0xa0e   :  { %2669 = vadd.xlane.f32.xlu1 %v2668_v1  ;;  %v2665_v34 = vsel %vm626_vm5, %v8431_v0, 0.0 }
 0xa0f   :  { %2666 = vadd.xlane.f32.xlu0 %v2665_v34 }
 0xa97   :  { %v2664_v2 = vpop.xlane.xlu1 %2663 }
 0xa98   :  { %8432 = vrcp.f32 %v2664_v2  ;;  %v2661_v43 = vpop.xlane.xlu0 %2660 }
 0xa99   :  { %8434 = vrcp.f32 %v2661_v43 }
 0xa9b   :  { %v2670_v3 = vpop.xlane.xlu1 %2669 }
 0xa9c   :  { %8436 = vrcp.f32 %v2670_v3  ;;  %v2667_v4 = vpop.xlane.xlu0 %2666 }
 0xa9d   :  { %8438 = vrcp.f32 %v2667_v4 }
 0xaa2   :  { %v8433_v50 = vpop.eup %8432 }
 0xaa3   :  { %v8435_v6 = vpop.eup %8434  ;;  %v2676_v49 = vmul.f32 %v8433_v50, %v8425_v59 }
 0xaa4   :  { %v2675_v7 = vmul.f32 %v8435_v6, %v8427_v61 }
 0xaa6   :  { %v8437_v8 = vpop.eup %8436  ;;  %7496 = vmatprep.mubr.msk.f32.mxu0 %vm626_vm5, %v2675_v7 }
 0xaa7   :  { %v8439_v9 = vpop.eup %8438  ;;  %7497 = vmatmul.mubr.msk.f32.vlgmr.msra.gmra.mrb[12].mxu0 %vm626_vm5, %v2676_v49  ;;  %v2678_v14 = vmul.f32 %v8437_v8, %v8429_v63 }
 0xaa8   :  { %v2677_v10 = vmul.f32 %v8439_v9, %v8431_v0  ;;  %8083 = vmatpush3.bf16.msra.mxu0 %v8080_v46 }
 0xaa9   :  { %8085 = vmatprep.subr.bf16.mxu0 %v8084_v51 }
 0xaaa   :  { %7503 = vmatprep.mubr.msk.f32.mxu1 %vm626_vm5, %v2677_v10 }
 0xaab   :  { %7504 = vmatmul.mubr.msk.f32.vlgmr.msra.gmra.mrb[22].mxu1 %vm626_vm5, %v2678_v14 }
 0xaac   :  { %8087 = vmatpush3.bf16.msra.mxu0 %v8084_v51  ;;  %8091 = vmatpush3.bf16.msra.mxu1 %v8088_v54 }
 0xaad   :  { %8093 = vmatprep.subr.bf16.mxu1 %v8092_v55 }
 0xab0   :  { %8095 = vmatpush3.bf16.msra.mxu1 %v8092_v55  ;;  %v3073_v55 = vld [vmem:[%s9903_s5 + $0x38] sm:$0xff] }
 0xab1   :  { %8097 = vmatprep.subr.bf16.mxu1 %v8096_v58  ;;  %v8100_v56 = vpack.c.bf16 %v3073_v55, %v3072_v44 }
 0xab4   :  { %8099 = vmatpush3.bf16.msra.mxu1 %v8096_v58  ;;  %v3075_v58 = vld [vmem:[%s9903_s5 + $0x48] sm:$0xff] }
 0xab5   :  { %8101 = vmatprep.subr.bf16.mxu1 %v8100_v56 }
 0xab8   :  { %8103 = vmatpush3.bf16.msra.mxu1 %v8100_v56 }
 0xb7a   :  { %v7498_v15 = vpop.f32.mrb[12].mxu0 }
 0xb7b   :  { %v8344_v16 = vadd.f32 %v7498_v15, %v8935_v11  ;;  %v2751_v18 = vpop.f32.mrb[13].mxu0 }
 0xb7c   :  { %v8345_v20 = vadd.f32 %v2751_v18, %v8937_v13 }
 0xb7d   :  { %v2846_v21 = vadd.f32 %v8344_v16, %v8618_v24 }
 0xb7e   :  { %v2845_v25 = vadd.f32 %v8345_v20, %v8615_v23  ;;  %v7505_v26 = vpop.f32.mrb[22].mxu1 }
 0xb7f   :  { %v9072_v27 = vadd.f32 %v6635_v19, %v2846_v21  ;;  %v2832_v28 = vpop.f32.mrb[23].mxu1  ;;  %v2848_v30 = vadd.f32 %v7505_v26, %v8612_v22 }
 0xb80   :  { %v9074_v29 = vadd.f32 %v6635_v19, %v2845_v25  ;;  %v2847_v13 = vadd.f32 %v2832_v28, %v8632_v32 }
 0xb81   :  { %v2863_v11 = vsel %vm69_vm2, %v9072_v27, 0.0  ;;  %v2877_v60 = vmul.f32 %v9072_v27, %v9072_v27  ;;  %v9086_v31 = vadd.f32 %v6635_v19, %v2848_v30 }
 0xb82   :  { %2864 = vadd.xlane.f32.xlu1 %v2863_v11  ;;  %v2860_v23 = vsel %vm69_vm2, %v9074_v29, 0.0  ;;  %v2876_v24 = vmul.f32 %v9074_v29, %v9074_v29  ;;  %v9089_v33 = vadd.f32 %v6635_v19, %v2847_v13 }
 0xb83   :  { %2861 = vadd.xlane.f32.xlu0 %v2860_v23  ;;  %v2883_v22 = vsel %vm69_vm2, %v2877_v60, 0.0  ;;  %v2869_v32 = vsel %vm69_vm2, %v9086_v31, 0.0  ;;  %v2879_v36 = vmul.f32 %v9086_v31, %v9086_v31 }
 0xb84   :  { %v2880_v35 = vsel %vm69_vm2, %v2876_v24, 0.0  ;;  %v2866_v37 = vsel %vm69_vm2, %v9089_v33, 0.0  ;;  %v2878_v38 = vmul.f32 %v9089_v33, %v9089_v33  ;;  %v6636_v24 = vld [vmem:[%s9904_s2 + $0x2] ss:$0 sm:$0xff] }
 0xb85   :  { %v2889_v39 = vsel %vm69_vm2, %v2879_v36, 0.0  ;;  %v6637_v36 = vld [vmem:[%s9904_s2 + $0x3] ss:$0 sm:$0xff] }
 0xb86   :  { %2884 = vadd.xlane.f32.xlu1 %v2883_v22  ;;  %v2886_v40 = vsel %vm69_vm2, %v2878_v38, 0.0 }
 0xb87   :  { %2881 = vadd.xlane.f32.xlu0 %v2880_v35 }
 0xb8a   :  { %2870 = vadd.xlane.f32.xlu1 %v2869_v32 }
 0xb8b   :  { %2867 = vadd.xlane.f32.xlu0 %v2866_v37 }
 0xb8e   :  { %2890 = vadd.xlane.f32.xlu1 %v2889_v39 }
 0xb8f   :  { %2887 = vadd.xlane.f32.xlu0 %v2886_v40 }
 0xc0f   :  { %v2865_v17 = vpop.xlane.xlu1 %2864 }
 0xc10   :  { %v2873_v59 = vmul.f32 0.03125, %v2865_v17  ;;  %v2862_v61 = vpop.xlane.xlu0 %2861  ;;  %v8104_v17 = vpack.c.bf16 %v3075_v58, %v3074_v57 }
 0xc11   :  { %v2872_v62 = vmul.f32 0.03125, %v2862_v61  ;;  %v3077_v61 = vld [vmem:[%s9903_s5 + $0x58] sm:$0xff] }
 0xc12   :  { %v2897_v63 = vmul.f32 %v2873_v59, %v2873_v59  ;;  %v2909_v60 = vsub.f32 %v9072_v27, %v2873_v59  ;;  %8105 = vmatprep.subr.bf16.mxu1 %v8104_v17  ;;  %v3076_v59 = vld [vmem:[%s9903_s5 + $0x50] sm:$0xff] }
 0xc13   :  { %v2885_v5 = vpop.xlane.xlu1 %2884  ;;  %v2896_v34 = vmul.f32 %v2872_v62, %v2872_v62  ;;  %v2908_v23 = vsub.f32 %v9074_v29, %v2872_v62  ;;  %8107 = vmatpush3.bf16.msra.mxu1 %v8104_v17  ;;  %v8108_v62 = vpack.c.bf16 %v3077_v61, %v3076_v59  ;;  %v6646_v59 = vld [vmem:[%s9902_s3 + $0x100] sm:$0xff]  ;;  %v6647_v61 = vld [vmem:[%s9902_s3 + $0x108] sm:$0xff] }
 0xc14   :  { %v2893_v0 = vmul.f32 0.03125, %v2885_v5  ;;  %v2882_v1 = vpop.xlane.xlu0 %2881  ;;  %v3078_v5 = vld [vmem:[%s9903_s5 + $0x60] sm:$0xff] }
 0xc15   :  { %v2892_v2 = vmul.f32 0.03125, %v2882_v1  ;;  %8109 = vmatprep.subr.bf16.mxu1 %v8108_v62  ;;  %v3080_v1 = vld [vmem:[%s9903_s5 + $0x70] sm:$0xff] }
 0xc16   :  { %v2901_v43 = vsub.f32 %v2893_v0, %v2897_v63  ;;  %v3079_v63 = vld [vmem:[%s9903_s5 + $0x68] sm:$0xff] }
 0xc17   :  { %v2900_v3 = vsub.f32 %v2892_v2, %v2896_v34  ;;  %v2871_v4 = vpop.xlane.xlu1 %2870  ;;  %8111 = vmatpush3.bf16.msra.mxu1 %v8108_v62  ;;  %v8112_v0 = vpack.c.bf16 %v3079_v63, %v3078_v5  ;;  %v3081_v34 = vld [vmem:[%s9903_s5 + $0x78] sm:$0xff]  ;;  %v8120_v62 = vpack.c.bf16 %v6647_v61, %v6646_v59  ;;  %v6648_v5 = vld [vmem:[%s9902_s3 + $0x110] sm:$0xff]  ;;  %v6664_v59 = vld [vmem:[%s9903_s5 + $0x180] sm:$0xff] }
 0xc18   :  { %v2905_v50 = vmax.f32 %v2901_v43, 0.0  ;;  %v2875_v6 = vmul.f32 0.03125, %v2871_v4  ;;  %v2868_v7 = vpop.xlane.xlu0 %2867  ;;  %v8116_v2 = vpack.c.bf16 %v3081_v34, %v3080_v1  ;;  %v6638_v43 = vld [vmem:[%s9904_s2 + $0x6] ss:$0 sm:$0xff]  ;;  %v6649_v63 = vld [vmem:[%s9902_s3 + $0x118] sm:$0xff]  ;;  %v6656_v34 = vld [vmem:[%s9902_s3 + $0x188] sm:$0xff] }
 0xc19   :  { %v2904_v49 = vmax.f32 %v2900_v3, 0.0  ;;  %v2874_v8 = vmul.f32 0.03125, %v2868_v7  ;;  %8113 = vmatprep.subr.bf16.mxu1 %v8112_v0  ;;  %8121 = vmatprep.subr.bf16.mxu0 %v8120_v62  ;;  %v6655_v1 = vld [vmem:[%s9902_s3 + $0x180] sm:$0xff]  ;;  %v6665_v61 = vld [vmem:[%s9903_s5 + $0x188] sm:$0xff] }
 0xc1a   :  { %v2913_v9 = vadd.f32 1e-06, %v2905_v50  ;;  %v2899_v15 = vmul.f32 %v2875_v6, %v2875_v6  ;;  %v2911_v40 = vsub.f32 %v9086_v31, %v2875_v6 }
 0xc1b   :  { %v2912_v10 = vadd.f32 1e-06, %v2904_v49  ;;  %v2891_v14 = vpop.xlane.xlu1 %2890  ;;  %v2898_v19 = vmul.f32 %v2874_v8, %v2874_v8  ;;  %v2910_v46 = vsub.f32 %v9089_v33, %v2874_v8  ;;  %8115 = vmatpush3.bf16.msra.mxu1 %v8112_v0  ;;  %v8124_v0 = vpack.c.bf16 %v6649_v63, %v6648_v5 }
 0xc1c   :  { %8440 = vrsqrt.f32 %v2913_v9  ;;  %v2895_v16 = vmul.f32 0.03125, %v2891_v14  ;;  %v2888_v18 = vpop.xlane.xlu0 %2887  ;;  %8117 = vmatprep.subr.bf16.mxu1 %v8116_v2 }
 0xc1d   :  { %8442 = vrsqrt.f32 %v2912_v10  ;;  %v2894_v20 = vmul.f32 0.03125, %v2888_v18 }
 0xc1e   :  { %v2903_v21 = vsub.f32 %v2895_v16, %v2899_v15 }
 0xc1f   :  { %v2902_v25 = vsub.f32 %v2894_v20, %v2898_v19  ;;  %8119 = vmatpush3.bf16.msra.mxu1 %v8116_v2  ;;  %v9232_v2 = vpack.c.bf16 %v6656_v34, %v6655_v1  ;;  %v8136_v1 = vpack.c.bf16 %v6665_v61, %v6664_v59 }
 0xc20   :  { %v2907_v26 = vmax.f32 %v2903_v21, 0.0 }
 0xc21   :  { %v2906_v28 = vmax.f32 %v2902_v25, 0.0 }
 0xc22   :  { %v2915_v30 = vadd.f32 1e-06, %v2907_v26 }
 0xc23   :  { %v2914_v11 = vadd.f32 1e-06, %v2906_v28 }
 0xc24   :  { %8444 = vrsqrt.f32 %v2915_v30 }
 0xc25   :  { %8446 = vrsqrt.f32 %v2914_v11 }
 0xc26   :  { %v8441_v13 = vpop.eup %8440 }
 0xc27   :  { %v8443_v22 = vpop.eup %8442  ;;  %v2921_v35 = vmul.f32 %v8441_v13, %v2909_v60 }
 0xc28   :  { %v2920_v32 = vmul.f32 %v8443_v22, %v2908_v23 }
 0xc29   :  { %v2929_v37 = vmul.f32 %v6636_v24, %v2921_v35 }
 0xc2a   :  { %v2928_v38 = vmul.f32 %v6636_v24, %v2920_v32 }
 0xc2b   :  { %v2937_v41 = vadd.f32 %v6637_v36, %v2929_v37 }
 0xc2c   :  { %v2936_v39 = vadd.f32 %v6637_v36, %v2928_v38 }
 0xc2e   :  { %v8445_v45 = vpop.eup %8444  ;;  %7514 = vmatprep.mubr.msk.f32.mxu0 %vm69_vm2, %v2936_v39 }
 0xc2f   :  { %v8447_v47 = vpop.eup %8446  ;;  %7515 = vmatmul.mubr.msk.f32.vlgmr.msra.gmra.mrb[30].mxu0 %vm69_vm2, %v2937_v41  ;;  %v2923_v48 = vmul.f32 %v8445_v45, %v2911_v40 }
 0xc30   :  { %v2922_v51 = vmul.f32 %v8447_v47, %v2910_v46  ;;  %8123 = vmatpush3.bf16.msra.mxu0 %v8120_v62 }
 0xc31   :  { %v2931_v52 = vmul.f32 %v6636_v24, %v2923_v48  ;;  %8125 = vmatprep.subr.bf16.mxu0 %v8124_v0 }
 0xc32   :  { %v2930_v42 = vmul.f32 %v6636_v24, %v2922_v51 }
 0xc33   :  { %v2939_v54 = vadd.f32 %v6637_v36, %v2931_v52 }
 0xc34   :  { %v2938_v53 = vadd.f32 %v6637_v36, %v2930_v42  ;;  %v6643_v36 = vld [vmem:[%s9904_s2 + $0x5] ss:$0 sm:$0xff]  ;;  %8127 = vmatpush3.bf16.msra.mxu0 %v8124_v0 }
 0xc35   :  { %8129 = vmatprep.subr.bf16.mxu0 %v9232_v2 }
 0xc36   :  { %7517 = vmatprep.mubr.msk.f32.mxu0 %vm69_vm2, %v2938_v53 }
 0xc37   :  { %7518 = vmatmul.mubr.msk.f32.gmra.mrb[32].mxu0 %vm69_vm2, %v2939_v54 }
 0xd02   :  { %v7516_v3 = vpop.f32.mrb[30].mxu0 }
 0xd03   :  { %v3033_v4 = vadd.f32 %v7516_v3, %v6638_v43  ;;  %v3027_v50 = vpop.f32.mrb[31].mxu0 }
 0xd04   :  { %v3028_v6 = vadd.f32 %v6638_v43, %v3027_v50 }
 0xd05   :  { %v3051_v7 = vmul.f32 0.70710677, %v3033_v4  ;;  %v3047_v26 = vmul.f32 0.5, %v3033_v4 }
 0xd06   :  { %v3050_v49 = vmul.f32 0.70710677, %v3028_v6  ;;  %v3046_v21 = vmul.f32 0.5, %v3028_v6 }
 0xd07   :  { %8448 = verf.f32 %v3051_v7 }
 0xd08   :  { %8450 = verf.f32 %v3050_v49 }
 0xd0a   :  { %v7519_v8 = vpop.f32.mrb[32].mxu0 }
 0xd0b   :  { %v3043_v9 = vadd.f32 %v7519_v8, %v6638_v43  ;;  %v3037_v10 = vpop.f32.mrb[33].mxu0 }
 0xd0c   :  { %v3038_v14 = vadd.f32 %v6638_v43, %v3037_v10 }
 0xd0d   :  { %v3053_v15 = vmul.f32 0.70710677, %v3043_v9  ;;  %v3049_v22 = vmul.f32 0.5, %v3043_v9 }
 0xd0e   :  { %v3052_v16 = vmul.f32 0.70710677, %v3038_v14  ;;  %v3048_v23 = vmul.f32 0.5, %v3038_v14 }
 0xd0f   :  { %8452 = verf.f32 %v3053_v15 }
 0xd10   :  { %8454 = verf.f32 %v3052_v16 }
 0xd11   :  { %v8449_v18 = vpop.eup %8448 }
 0xd12   :  { %v8451_v19 = vpop.eup %8450  ;;  %v3059_v20 = vadd.f32 1.0, %v8449_v18 }
 0xd13   :  { %v3058_v25 = vadd.f32 1.0, %v8451_v19 }
 0xd14   :  { %v3063_v30 = vmul.f32 %v3059_v20, %v3047_v26 }
 0xd15   :  { %v3062_v28 = vmul.f32 %v3058_v25, %v3046_v21 }
 0xd17   :  { %7552 = vmatprep.mubr.f32.mxu1 %v3062_v28 }
 0xd18   :  { %7553 = vmatmul.mubr.f32.vlgmr.msra.gmra.mrb[40].mxu1 %v3063_v30 }
 0xd19   :  { %v8453_v11 = vpop.eup %8452 }
 0xd1a   :  { %v8455_v60 = vpop.eup %8454  ;;  %v3061_v13 = vadd.f32 1.0, %v8453_v11 }
 0xd1b   :  { %v3060_v24 = vadd.f32 1.0, %v8455_v60 }
 0xd1c   :  { %v3065_v32 = vmul.f32 %v3061_v13, %v3049_v22 }
 0xd1d   :  { %v3064_v35 = vmul.f32 %v3060_v24, %v3048_v23 }
 0xd1f   :  { %7555 = vmatprep.mubr.f32.mxu1 %v3064_v35 }
 0xd20   :  { %7556 = vmatmul.mubr.f32.gmra.mrb[42].mxu1 %v3065_v32 }
 0xdeb   :  { %v7554_v37 = vpop.f32.mrb[40].mxu1 }
 0xdec   :  { %v3159_v38 = vadd.f32 %v7554_v37, %v6643_v36  ;;  %v3153_v39 = vpop.f32.mrb[41].mxu1 }
 0xded   :  { %v3154_v40 = vadd.f32 %v6643_v36, %v3153_v39 }
 0xdee   :  { %v9183_v41 = vadd.f32 %v3159_v38, %v9072_v27 }
 0xdef   :  { %v9186_v45 = vadd.f32 %v3154_v40, %v9074_v29 }
 0xdf0   :  { %v3181_v46 = vsel %vm69_vm2, %v9183_v41, 0.0  ;;  %v3195_v47 = vmul.f32 %v9183_v41, %v9183_v41 }
 0xdf1   :  { %3182 = vadd.xlane.f32.xlu1 %v3181_v46  ;;  %v3178_v48 = vsel %vm69_vm2, %v9186_v45, 0.0  ;;  %v3194_v51 = vmul.f32 %v9186_v45, %v9186_v45 }
 0xdf2   :  { %3179 = vadd.xlane.f32.xlu0 %v3178_v48  ;;  %v3201_v29 = vsel %vm69_vm2, %v3195_v47, 0.0  ;;  %v6644_v47 = vld [vmem:[%s9904_s2 + $0x13] ss:$0 sm:$0xff] }
 0xdf3   :  { %v7557_v52 = vpop.f32.mrb[42].mxu1  ;;  %v3198_v54 = vsel %vm69_vm2, %v3194_v51, 0.0 }
 0xdf4   :  { %v3169_v27 = vadd.f32 %v7557_v52, %v6643_v36  ;;  %v3163_v42 = vpop.f32.mrb[43].mxu1 }
 0xdf5   :  { %v3164_v53 = vadd.f32 %v6643_v36, %v3163_v42  ;;  %3202 = vadd.xlane.f32.xlu1 %v3201_v29 }
 0xdf6   :  { %v9199_v44 = vadd.f32 %v3169_v27, %v9086_v31  ;;  %3199 = vadd.xlane.f32.xlu0 %v3198_v54  ;;  %v6645_v27 = vld [vmem:[%s9904_s2 + $0x14] ss:$0 sm:$0xff]  ;;  %v6658_v54 = vld [vmem:[%s9902_s3 + $0x198] sm:$0xff] }
 0xdf7   :  { %v9202_v55 = vadd.f32 %v3164_v53, %v9089_v33  ;;  %v6657_v53 = vld [vmem:[%s9902_s3 + $0x190] sm:$0xff] }
 0xdf8   :  { %v3187_v56 = vsel %vm69_vm2, %v9199_v44, 0.0  ;;  %v3197_v57 = vmul.f32 %v9199_v44, %v9199_v44 }
 0xdf9   :  { %3188 = vadd.xlane.f32.xlu1 %v3187_v56  ;;  %v3184_v58 = vsel %vm69_vm2, %v9202_v55, 0.0  ;;  %v3196_v17 = vmul.f32 %v9202_v55, %v9202_v55 }
 0xdfa   :  { %3185 = vadd.xlane.f32.xlu0 %v3184_v58  ;;  %v3207_v31 = vsel %vm69_vm2, %v3197_v57, 0.0 }
 0xdfb   :  { %v3204_v33 = vsel %vm69_vm2, %v3196_v17, 0.0  ;;  %v8132_v17 = vpack.c.bf16 %v6658_v54, %v6657_v53  ;;  %v6693_v53 = vld [vmem:[%s9902_s3 + $0x1b8] sm:$0xff] }
 0xdfd   :  { %3208 = vadd.xlane.f32.xlu1 %v3207_v31 }
 0xdfe   :  { %3205 = vadd.xlane.f32.xlu0 %v3204_v33 }
 0xe7e   :  { %v3183_v43 = vpop.xlane.xlu1 %3182 }
 0xe7f   :  { %v3191_v3 = vmul.f32 0.03125, %v3183_v43  ;;  %v3180_v4 = vpop.xlane.xlu0 %3179 }
 0xe80   :  { %v3190_v50 = vmul.f32 0.03125, %v3180_v4  ;;  %v6666_v4 = vld [vmem:[%s9903_s5 + $0x190] sm:$0xff] }
 0xe81   :  { %v3215_v7 = vmul.f32 %v3191_v3, %v3191_v3  ;;  %v3227_v39 = vsub.f32 %v9183_v41, %v3191_v3 }
 0xe82   :  { %v3203_v6 = vpop.xlane.xlu1 %3202  ;;  %v3214_v9 = vmul.f32 %v3190_v50, %v3190_v50  ;;  %v3226_v46 = vsub.f32 %v9186_v45, %v3190_v50 }
 0xe83   :  { %v3211_v49 = vmul.f32 0.03125, %v3203_v6  ;;  %v3200_v8 = vpop.xlane.xlu0 %3199  ;;  %v6650_v6 = vld [vmem:[%s9904_s2 + $0x1a] ss:$0 sm:$0xff] }
 0xe84   :  { %v3210_v10 = vmul.f32 0.03125, %v3200_v8 }
 0xe85   :  { %v3219_v14 = vsub.f32 %v3211_v49, %v3215_v7 }
 0xe86   :  { %v3218_v15 = vsub.f32 %v3210_v10, %v3214_v9  ;;  %v3189_v16 = vpop.xlane.xlu1 %3188 }
 0xe87   :  { %v3223_v18 = vmax.f32 %v3219_v14, 0.0  ;;  %v3193_v19 = vmul.f32 0.03125, %v3189_v16  ;;  %v3186_v20 = vpop.xlane.xlu0 %3185 }
 0xe88   :  { %v3222_v21 = vmax.f32 %v3218_v15, 0.0  ;;  %v3192_v25 = vmul.f32 0.03125, %v3186_v20  ;;  %v6659_v15 = vld [vmem:[%s9904_s2 + $0x1e] ss:$0 sm:$0xff]  ;;  %v6681_v20 = vld [vmem:[%s9902_s3 + $0x120] sm:$0xff] }
 0xe89   :  { %v3231_v26 = vadd.f32 1e-06, %v3223_v18  ;;  %v3217_v11 = vmul.f32 %v3193_v19, %v3193_v19  ;;  %v3229_v58 = vsub.f32 %v9199_v44, %v3193_v19 }
 0xe8a   :  { %v3230_v28 = vadd.f32 1e-06, %v3222_v21  ;;  %v3209_v30 = vpop.xlane.xlu1 %3208  ;;  %v3216_v23 = vmul.f32 %v3192_v25, %v3192_v25  ;;  %v3228_v33 = vsub.f32 %v9202_v55, %v3192_v25  ;;  %v6682_v21 = vld [vmem:[%s9902_s3 + $0x128] sm:$0xff] }
 0xe8b   :  { %8456 = vrsqrt.f32 %v3231_v26  ;;  %v3213_v60 = vmul.f32 0.03125, %v3209_v30  ;;  %v3206_v13 = vpop.xlane.xlu0 %3205  ;;  %v8156_v30 = vpack.c.bf16 %v6682_v21, %v6681_v20 }
 0xe8c   :  { %8458 = vrsqrt.f32 %v3230_v28  ;;  %v3212_v24 = vmul.f32 0.03125, %v3206_v13  ;;  %v6690_v13 = vld [vmem:[%s9902_s3 + $0x1a0] sm:$0xff] }
 0xe8d   :  { %v3221_v22 = vsub.f32 %v3213_v60, %v3217_v11 }
 0xe8e   :  { %v3220_v35 = vsub.f32 %v3212_v24, %v3216_v23  ;;  %v6691_v23 = vld [vmem:[%s9902_s3 + $0x1a8] sm:$0xff] }
 0xe8f   :  { %v3225_v32 = vmax.f32 %v3221_v22, 0.0  ;;  %v6668_v22 = vld [vmem:[%s9904_s2 + $0x22] ss:$0 sm:$0xff] }
 0xe90   :  { %v3224_v36 = vmax.f32 %v3220_v35, 0.0 }
 0xe91   :  { %v3233_v37 = vadd.f32 1e-06, %v3225_v32 }
 0xe92   :  { %v3232_v38 = vadd.f32 1e-06, %v3224_v36  ;;  %v8164_v36 = vpack.c.bf16 %v6691_v23, %v6690_v13 }
 0xe93   :  { %8460 = vrsqrt.f32 %v3233_v37 }
 0xe94   :  { %8462 = vrsqrt.f32 %v3232_v38 }
 0xe95   :  { %v8457_v40 = vpop.eup %8456 }
 0xe96   :  { %v8459_v48 = vpop.eup %8458  ;;  %v3239_v51 = vmul.f32 %v8457_v40, %v3227_v39  ;;  %v6683_v39 = vld [vmem:[%s9902_s3 + $0x130] sm:$0xff]  ;;  %v6684_v40 = vld [vmem:[%s9902_s3 + $0x138] sm:$0xff] }
 0xe97   :  { %v3238_v52 = vmul.f32 %v8459_v48, %v3226_v46 }
 0xe98   :  { %v3247_v42 = vmul.f32 %v6644_v47, %v3239_v51 }
 0xe99   :  { %v3246_v29 = vmul.f32 %v6644_v47, %v3238_v52  ;;  %v8160_v52 = vpack.c.bf16 %v6684_v40, %v6683_v39 }
 0xe9a   :  { %v9251_v57 = vadd.f32 %v6645_v27, %v3247_v42 }
 0xe9b   :  { %v9249_v56 = vadd.f32 %v6645_v27, %v3246_v29  ;;  %v6692_v29 = vld [vmem:[%s9902_s3 + $0x1b0] sm:$0xff] }
 0xe9c   :  { %v8168_v59 = vpack.c.bf16 %v6693_v53, %v6692_v29  ;;  %v6734_v29 = vld [vmem:[%s9902_s3 + $0x1c8] sm:$0xff] }
 0xe9d   :  { %v8461_v31 = vpop.eup %8460  ;;  %7566 = vmatprep.mubr.msk.f32.mxu0 %vm69_vm2, %v9249_v56 }
 0xe9e   :  { %v8463_v62 = vpop.eup %8462  ;;  %v3241_v5 = vmul.f32 %v8461_v31, %v3229_v58  ;;  %7567 = vmatmul.mubr.msk.f32.vlgmr.msra.gmra.mrb[34].mxu0 %vm69_vm2, %v9251_v57  ;;  %v6699_v58 = vld [vmem:[%s9903_s5 + $0x1a0] sm:$0xff] }
 0xe9f   :  { %v3240_v63 = vmul.f32 %v8463_v62, %v3228_v33  ;;  %8131 = vmatpush3.bf16.msra.mxu0 %v9232_v2  ;;  %v6667_v2 = vld [vmem:[%s9903_s5 + $0x198] sm:$0xff]  ;;  %v6701_v62 = vld [vmem:[%s9903_s5 + $0x1b0] sm:$0xff] }
 0xea0   :  { %v3249_v0 = vmul.f32 %v6644_v47, %v3241_v5  ;;  %8133 = vmatprep.subr.bf16.mxu0 %v8132_v17  ;;  %v8140_v50 = vpack.c.bf16 %v6667_v2, %v6666_v4  ;;  %v6702_v5 = vld [vmem:[%s9903_s5 + $0x1b8] sm:$0xff] }
 0xea1   :  { %v3248_v34 = vmul.f32 %v6644_v47, %v3240_v63  ;;  %v8176_v63 = vpack.c.bf16 %v6702_v5, %v6701_v62  ;;  %v6685_v2 = vld [vmem:[%s9904_s2 + $0x1b] ss:$0 sm:$0xff] }
 0xea2   :  { %v9268_v3 = vadd.f32 %v6645_v27, %v3249_v0 }
 0xea3   :  { %v9266_v43 = vadd.f32 %v6645_v27, %v3248_v34  ;;  %8135 = vmatpush3.bf16.msra.mxu0 %v8132_v17  ;;  %v6700_v17 = vld [vmem:[%s9903_s5 + $0x1a8] sm:$0xff] }
 0xea4   :  { %8137 = vmatprep.subr.bf16.mxu0 %v8136_v1  ;;  %v8172_v61 = vpack.c.bf16 %v6700_v17, %v6699_v58  ;;  %v6736_v58 = vld [vmem:[%s9902_s3 + $0x1d8] sm:$0xff] }
 0xea5   :  { %7569 = vmatprep.mubr.msk.f32.mxu0 %vm69_vm2, %v9266_v43 }
 0xea6   :  { %7570 = vmatmul.mubr.msk.f32.gmra.mrb[36].mxu0 %vm69_vm2, %v9268_v3 }
 0xea7   :  { %7580 = vmatprep.mubr.msk.f32.mxu0 %vm69_vm2, %v9249_v56 }
 0xeaa   :  { %7581 = vmatmul.mubr.msk.f32.vlgmr.msra.gmra.mrb[38].mxu0 %vm69_vm2, %v9251_v57 }
 0xeab   :  { %7583 = vmatprep.mubr.msk.f32.mxu0 %vm69_vm2, %v9266_v43  ;;  %8139 = vmatpush3.bf16.msra.mxu0 %v8136_v1 }
 0xeac   :  { %8141 = vmatprep.subr.bf16.mxu0 %v8140_v50 }
 0xeae   :  { %7584 = vmatmul.mubr.msk.f32.gmra.mrb[40].mxu0 %vm69_vm2, %v9268_v3 }
 0xeaf   :  { %8143 = vmatpush3.bf16.msra.mxu0 %v8140_v50  ;;  %7594 = vmatprep.mubr.msk.f32.mxu0 %vm69_vm2, %v9249_v56 }
 0xeb2   :  { %7595 = vmatmul.mubr.msk.f32.vlgmr.msra.gmra.mrb[42].mxu0 %vm69_vm2, %v9251_v57 }
 0xeb3   :  { %7597 = vmatprep.mubr.msk.f32.mxu0 %vm69_vm2, %v9266_v43 }
 0xeb6   :  { %7598 = vmatmul.mubr.msk.f32.gmra.mrb[44].mxu0 %vm69_vm2, %v9268_v3 }
 0xf71   :  { %v7568_v7 = vpop.f32.mrb[34].mxu0 }
 0xf72   :  { %v3346_v49 = vpop.f32.mrb[35].mxu0  ;;  %v3352_v47 = vadd.f32 %v7568_v7, %v6650_v6 }
 0xf73   :  { %v3347_v8 = vadd.f32 %v6650_v6, %v3346_v49  ;;  %v6694_v49 = vld [vmem:[%s9904_s2 + $0x1f] ss:$0 sm:$0xff] }
 0xf75   :  { %7604 = vmatprep.mubr.msk.f32.mxu0 %vm447_vm3, %v3347_v8 }
 0xf79   :  { %v7571_v9 = vpop.f32.mrb[36].mxu0 }
 0xf7a   :  { %v3356_v10 = vpop.f32.mrb[37].mxu0  ;;  %v3362_v31 = vadd.f32 %v7571_v9, %v6650_v6 }
 0xf7b   :  { %v3357_v14 = vadd.f32 %v6650_v6, %v3356_v10 }
 0xf7d   :  { %v7582_v16 = vpop.f32.mrb[38].mxu0  ;;  %7611 = vmatprep.mubr.msk.f32.mxu1 %vm447_vm3, %v3357_v14 }
 0xf7e   :  { %v3447_v18 = vadd.f32 %v7582_v16, %v6659_v15  ;;  %v3441_v19 = vpop.f32.mrb[39].mxu0 }
 0xf7f   :  { %v3442_v25 = vadd.f32 %v6659_v15, %v3441_v19  ;;  %v6703_v19 = vld [vmem:[%s9904_s2 + $0x23] ss:$0 sm:$0xff] }
 0xf81   :  { %v8144_v26 = vpack.c.bf16 %v3447_v18, %v3442_v25  ;;  %v7585_v28 = vpop.f32.mrb[40].mxu0 }
 0xf82   :  { %v3457_v11 = vadd.f32 %v7585_v28, %v6659_v15  ;;  %v3451_v60 = vpop.f32.mrb[41].mxu0 }
 0xf83   :  { %v3452_v24 = vadd.f32 %v6659_v15, %v3451_v60  ;;  %8146 = vmatprep.subr.msk.bf16.mxu0 %vm8748_vm4, %v8144_v26 }
 0xf84   :  { %8149 = vmatpush3.bf16.xpose.msk.msra.mxu0 %vm8748_vm4, %v8144_v26 }
 0xf85   :  { %v8150_v35 = vpack.c.bf16 %v3457_v11, %v3452_v24  ;;  %v7596_v32 = vpop.f32.mrb[42].mxu0  ;;  %8157 = vmatprep.subr.bf16.mxu0 %v8156_v30  ;;  %v6725_v11 = vld [vmem:[%s9902_s3 + $0x148] sm:$0xff] }
 0xf86   :  { %v3542_v37 = vadd.f32 %v7596_v32, %v6668_v22  ;;  %v3536_v38 = vpop.f32.mrb[43].mxu0 }
 0xf87   :  { %v3537_v46 = vadd.f32 %v6668_v22, %v3536_v38  ;;  %8152 = vmatprep.subr.msk.bf16.mxu1 %vm8748_vm4, %v8150_v35 }
 0xf88   :  { %8155 = vmatpush3.bf16.xpose.msk.msra.mxu1 %vm8748_vm4, %v8150_v35 }
 0xf89   :  { %v9333_v48 = vpack.c.bf16 %v3542_v37, %v3537_v46  ;;  %v7599_v51 = vpop.f32.mrb[44].mxu0  ;;  %8165 = vmatprep.subr.bf16.mxu1 %v8164_v36 }
 0xf8a   :  { %v3552_v27 = vadd.f32 %v7599_v51, %v6668_v22  ;;  %v3546_v42 = vpop.f32.mrb[45].mxu0  ;;  %v6727_v51 = vld [vmem:[%s9902_s3 + $0x158] sm:$0xff] }
 0xf8b   :  { %v3547_v54 = vadd.f32 %v6668_v22, %v3546_v42  ;;  %7605 = vmatmul.mubr.msk.f32.vlgmr.msra.gmra.mrb[46].mxu0 %vm447_vm3, %v3352_v47  ;;  %v6726_v47 = vld [vmem:[%s9902_s3 + $0x150] sm:$0xff]  ;;  %v6733_v42 = vld [vmem:[%s9902_s3 + $0x1c0] sm:$0xff] }
 0xf8c   :  { %8159 = vmatpush3.bf16.msra.mxu0 %v8156_v30  ;;  %7622 = vmatprep.mubr.msk.f32.mxu0 %vm69_vm2, %v9249_v56  ;;  %v6724_v30 = vld [vmem:[%s9902_s3 + $0x140] sm:$0xff]  ;;  %v8216_v53 = vpack.c.bf16 %v6734_v29, %v6733_v42  ;;  %v6773_v29 = vld [vmem:[%s9902_s3 + $0x1e8] sm:$0xff] }
 0xf8d   :  { %v9350_v33 = vpack.c.bf16 %v3552_v27, %v3547_v54  ;;  %8161 = vmatprep.subr.bf16.mxu0 %v8160_v52  ;;  %v8208_v35 = vpack.c.bf16 %v6725_v11, %v6724_v30  ;;  %v8212_v27 = vpack.c.bf16 %v6727_v51, %v6726_v47  ;;  %v6735_v54 = vld [vmem:[%s9902_s3 + $0x1d0] sm:$0xff]  ;;  %v6737_v30 = vld [vmem:[%s9904_s2 + $0x20] ss:$0 sm:$0xff]  ;;  %v6766_v51 = vld [vmem:[%s9902_s3 + $0x178] sm:$0xff] }
 0xf8e   :  { %v8220_v17 = vpack.c.bf16 %v6736_v58, %v6735_v54  ;;  %v6765_v47 = vld [vmem:[%s9902_s3 + $0x170] sm:$0xff]  ;;  %v6772_v42 = vld [vmem:[%s9902_s3 + $0x1e0] sm:$0xff]  ;;  %v6775_v58 = vld [vmem:[%s9902_s3 + $0x1f8] sm:$0xff] }
 0xf8f   :  { %7612 = vmatmul.mubr.msk.f32.vlgmr.msra.gmra.mrb[44].mxu1 %vm447_vm3, %v3362_v31  ;;  %v6774_v54 = vld [vmem:[%s9902_s3 + $0x1f0] sm:$0xff] }
 0xf90   :  { %8163 = vmatpush3.bf16.msra.mxu0 %v8160_v52  ;;  %8167 = vmatpush3.bf16.msra.mxu1 %v8164_v36 }
 0xf91   :  { %7636 = vmatprep.mubr.msk.f32.mxu1 %vm69_vm2, %v9249_v56  ;;  %8169 = vmatprep.subr.bf16.mxu1 %v8168_v59 }
 0xf92   :  { %8173 = vmatprep.subr.bf16.mxu0 %v8172_v61 }
 0xf93   :  { %7623 = vmatmul.mubr.msk.f32.vlgmr.msra.gmra.mrb[48].mxu0 %vm69_vm2, %v9251_v57 }
 0xf94   :  { %7625 = vmatprep.mubr.msk.f32.mxu0 %vm69_vm2, %v9266_v43  ;;  %8171 = vmatpush3.bf16.msra.mxu1 %v8168_v59 }
 0xf95   :  { %8175 = vmatpush3.bf16.msra.mxu0 %v8172_v61 }
 0xf96   :  { %8177 = vmatprep.subr.bf16.mxu0 %v8176_v63 }
 0xf97   :  { %7626 = vmatmul.mubr.msk.f32.gmra.mrb[50].mxu0 %vm69_vm2, %v9268_v3  ;;  %7637 = vmatmul.mubr.msk.f32.vlgmr.msra.gmra.mrb[46].mxu1 %vm69_vm2, %v9251_v57 }
 0xf98   :  { %7639 = vmatprep.mubr.msk.f32.mxu1 %vm69_vm2, %v9266_v43  ;;  %7650 = vmatprep.mubr.msk.f32.mxu0 %vm69_vm2, %v9249_v56 }
 0xf99   :  { %8179 = vmatpush3.bf16.msra.mxu0 %v8176_v63 }
 0xf9b   :  { %7640 = vmatmul.mubr.msk.f32.gmra.mrb[48].mxu1 %vm69_vm2, %v9268_v3 }
 0xf9c   :  { %7651 = vmatmul.mubr.msk.f32.vlgmr.msra.gmra.mrb[52].mxu0 %vm69_vm2, %v9251_v57 }
 0xf9d   :  { %7653 = vmatprep.mubr.msk.f32.mxu0 %vm69_vm2, %v9266_v43 }
 0xfa0   :  { %7654 = vmatmul.mubr.msk.f32.gmra.mrb[54].mxu0 %vm69_vm2, %v9268_v3 }
0x105e   :  { %v9381_v0 = vpop.f32.mrb[46].mxu0 }
0x105f   :  { %v9383_v1 = vpop.f32.mrb[47].mxu0 }
0x1062   :  { %v9385_v34 = vpop.f32.mrb[44].mxu1 }
0x1063   :  { %v9387_v4 = vpop.f32.mrb[45].mxu1 }
0x1066   :  { %v7624_v50 = vpop.f32.mrb[48].mxu0 }
0x1067   :  { %v3853_v6 = vpop.f32.mrb[49].mxu0  ;;  %v3859_v40 = vadd.f32 %v7624_v50, %v6685_v2 }
0x1068   :  { %v3854_v7 = vadd.f32 %v6685_v2, %v3853_v6 }
0x106a   :  { %v7627_v8 = vpop.f32.mrb[50].mxu0  ;;  %v7638_v9 = vpop.f32.mrb[46].mxu1  ;;  %7660 = vmatprep.mubr.msk.f32.mxu1 %vm447_vm3, %v3854_v7 }
0x106b   :  { %v3954_v10 = vadd.f32 %v7638_v9, %v6694_v49  ;;  %v3863_v14 = vpop.f32.mrb[51].mxu0  ;;  %v3948_v15 = vpop.f32.mrb[47].mxu1  ;;  %v3869_v52 = vadd.f32 %v7627_v8, %v6685_v2  ;;  %v9471_v9 = vmul.f32 0.35355338, %v9383_v1 }
0x106c   :  { %v3864_v16 = vadd.f32 %v6685_v2, %v3863_v14  ;;  %v3949_v18 = vadd.f32 %v6694_v49, %v3948_v15  ;;  %v9476_v14 = vmul.f32 0.35355338, %v9385_v34  ;;  %v6728_v15 = vld [vmem:[%s9904_s2 + $0x1c] ss:$0 sm:$0xff] }
0x106e   :  { %v8180_v20 = vpack.c.bf16 %v3954_v10, %v3949_v18  ;;  %v7641_v21 = vpop.f32.mrb[48].mxu1  ;;  %7667 = vmatprep.mubr.msk.f32.mxu0 %vm447_vm3, %v3864_v16  ;;  %v9484_v16 = vmul.f32 0.35355338, %v9387_v4  ;;  %v3733_v18 = vsel %vm626_vm5, %v9471_v9, -inf  ;;  %v3742_v34 = vsel %vm626_vm5, %v9476_v14, -inf }
0x106f   :  { %v3964_v25 = vadd.f32 %v7641_v21, %v6694_v49  ;;  %v7652_v26 = vpop.f32.mrb[52].mxu0  ;;  %v3958_v28 = vpop.f32.mrb[49].mxu1 }
0x1070   :  { %v4048_v60 = vadd.f32 %v7652_v26, %v6703_v19  ;;  %v3959_v13 = vadd.f32 %v6694_v49, %v3958_v28  ;;  %v4042_v23 = vpop.f32.mrb[53].mxu0  ;;  %8182 = vmatprep.subr.msk.bf16.mxu1 %vm8748_vm4, %v8180_v20  ;;  %v9466_v49 = vmul.f32 0.35355338, %v9381_v0 }
0x1071   :  { %v4043_v24 = vadd.f32 %v6703_v19, %v4042_v23  ;;  %8185 = vmatpush3.bf16.xpose.msk.msra.mxu1 %vm8748_vm4, %v8180_v20  ;;  %v6763_v23 = vld [vmem:[%s9902_s3 + $0x160] sm:$0xff] }
0x1072   :  { %v8186_v22 = vpack.c.bf16 %v3964_v25, %v3959_v13  ;;  %v3736_v0 = vsel %vm626_vm5, %v9466_v49, -inf  ;;  %v3739_v25 = vsel %vm626_vm5, %v9484_v16, -inf }
0x1073   :  { %v8192_v32 = vpack.c.bf16 %v4048_v60, %v4043_v24  ;;  %v7655_v36 = vpop.f32.mrb[54].mxu0  ;;  %v6764_v24 = vld [vmem:[%s9902_s3 + $0x168] sm:$0xff] }
0x1074   :  { %v4058_v37 = vadd.f32 %v7655_v36, %v6703_v19  ;;  %v4052_v38 = vpop.f32.mrb[55].mxu0  ;;  %8188 = vmatprep.subr.msk.bf16.mxu0 %vm8748_vm4, %v8186_v22  ;;  %v8252_v36 = vpack.c.bf16 %v6764_v24, %v6763_v23 }
0x1075   :  { %v4053_v39 = vadd.f32 %v6703_v19, %v4052_v38  ;;  %8193 = vmatprep.subr.bf16.mxu1 %v8192_v32  ;;  %8191 = vmatpush3.bf16.xpose.msk.msra.mxu0 %vm8748_vm4, %v8186_v22 }
0x1076   :  { %8209 = vmatprep.subr.bf16.mxu0 %v8208_v35 }
0x1077   :  { %v9414_v46 = vpack.c.bf16 %v4058_v37, %v4053_v39 }
0x1078   :  { %7661 = vmatmul.mubr.msk.f32.vlgmr.msra.gmra.mrb[50].mxu1 %vm447_vm3, %v3859_v40 }
0x1079   :  { %8195 = vmatpush3.bf16.msra.mxu1 %v8192_v32 }
0x107a   :  { %8197 = vmatprep.subr.bf16.mxu1 %v9414_v46 }
0x107c   :  { %7668 = vmatmul.mubr.msk.f32.vlgmr.msra.gmra.mrb[56].mxu0 %vm447_vm3, %v3869_v52 }
0x107d   :  { %8211 = vmatpush3.bf16.msra.mxu0 %v8208_v35  ;;  %7706 = vmatprep.mubr.msk.f32.mxu0 %vm69_vm2, %v9249_v56 }
0x107e   :  { %8213 = vmatprep.subr.bf16.mxu0 %v8212_v27 }
0x1081   :  { %8215 = vmatpush3.bf16.msra.mxu0 %v8212_v27  ;;  %v8256_v27 = vpack.c.bf16 %v6766_v51, %v6765_v47 }
0x1082   :  { %8217 = vmatprep.subr.bf16.mxu0 %v8216_v53 }
0x1084   :  { %7707 = vmatmul.mubr.msk.f32.vlgmr.msra.gmra.mrb[58].mxu0 %vm69_vm2, %v9251_v57 }
0x1085   :  { %7709 = vmatprep.mubr.msk.f32.mxu0 %vm69_vm2, %v9266_v43  ;;  %8219 = vmatpush3.bf16.msra.mxu0 %v8216_v53  ;;  %v8260_v53 = vpack.c.bf16 %v6773_v29, %v6772_v42 }
0x1086   :  { %8221 = vmatprep.subr.bf16.mxu0 %v8220_v17 }
0x1088   :  { %7710 = vmatmul.mubr.msk.f32.gmra.mrb[60].mxu0 %vm69_vm2, %v9268_v3 }
0x1089   :  { %8223 = vmatpush3.bf16.msra.mxu0 %v8220_v17  ;;  %7720 = vmatprep.mubr.msk.f32.mxu0 %vm69_vm2, %v9249_v56  ;;  %v8264_v17 = vpack.c.bf16 %v6775_v58, %v6774_v54  ;;  %v6767_v54 = vld [vmem:[%s9904_s2 + $0x1d] ss:$0 sm:$0xff] }
0x108c   :  { %7721 = vmatmul.mubr.msk.f32.vlgmr.msra.gmra.mrb[62].mxu0 %vm69_vm2, %v9251_v57 }
0x108d   :  { %7723 = vmatprep.mubr.msk.f32.mxu0 %vm69_vm2, %v9266_v43 }
0x1090   :  { %7724 = vmatmul.mubr.msk.f32.gmra.mrb[64].mxu0 %vm69_vm2, %v9268_v3 }
0x114b   :  { %v7662_v31 = vpop.f32.mrb[50].mxu1 }
0x114c   :  { %v9453_v59 = vmul.f32 0.35355338, %v7662_v31  ;;  %v4139_v61 = vpop.f32.mrb[51].mxu1 }
0x114d   :  { %v9455_v62 = vmul.f32 0.35355338, %v4139_v61 }
0x114e   :  { %v4242_v5 = vsel %vm626_vm5, %v9453_v59, -inf }
0x114f   :  { %v7669_v63 = vpop.f32.mrb[56].mxu0  ;;  %4243 = vmax.xlane.f32.xlu1 %v4242_v5  ;;  %v4239_v2 = vsel %vm626_vm5, %v9455_v62, -inf }
0x1150   :  { %v9461_v50 = vmul.f32 0.35355338, %v7669_v63  ;;  %v4226_v6 = vpop.f32.mrb[57].mxu0  ;;  %4240 = vmax.xlane.f32.xlu0 %v4239_v2 }
0x1151   :  { %v9463_v7 = vmul.f32 0.35355338, %v4226_v6 }
0x1152   :  { %v4248_v8 = vsel %vm626_vm5, %v9461_v50, -inf }
0x1153   :  { %4249 = vmax.xlane.f32.xlu1 %v4248_v8  ;;  %v4245_v10 = vsel %vm626_vm5, %v9463_v7, -inf }
0x1154   :  { %4246 = vmax.xlane.f32.xlu0 %v4245_v10 }
0x1157   :  { %v7708_v1 = vpop.f32.mrb[58].mxu0  ;;  %3737 = vmax.xlane.f32.xlu1 %v3736_v0 }
0x1158   :  { %v4683_v19 = vpop.f32.mrb[59].mxu0  ;;  %3734 = vmax.xlane.f32.xlu0 %v3733_v18  ;;  %v4689_v52 = vadd.f32 %v7708_v1, %v6728_v15 }
0x1159   :  { %v4684_v20 = vadd.f32 %v6728_v15, %v4683_v19 }
0x115b   :  { %v7711_v21 = vpop.f32.mrb[60].mxu0  ;;  %7744 = vmatprep.mubr.msk.f32.mxu0 %vm447_vm3, %v4684_v20  ;;  %3743 = vmax.xlane.f32.xlu1 %v3742_v34 }
0x115c   :  { %v9493_v4 = vadd.f32 %v7711_v21, %v6728_v15  ;;  %v4693_v26 = vpop.f32.mrb[61].mxu0  ;;  %3740 = vmax.xlane.f32.xlu0 %v3739_v25 }
0x115d   :  { %v9495_v28 = vadd.f32 %v6728_v15, %v4693_v26 }
0x115f   :  { %v7722_v11 = vpop.f32.mrb[62].mxu0 }
0x1160   :  { %v4784_v60 = vadd.f32 %v7722_v11, %v6737_v30  ;;  %v4778_v13 = vpop.f32.mrb[63].mxu0 }
0x1161   :  { %v4779_v22 = vadd.f32 %v6737_v30, %v4778_v13 }
0x1163   :  { %v8232_v35 = vpack.c.bf16 %v4784_v60, %v4779_v22  ;;  %v7725_v32 = vpop.f32.mrb[64].mxu0 }
0x1164   :  { %v4794_v37 = vadd.f32 %v7725_v32, %v6737_v30  ;;  %v4788_v38 = vpop.f32.mrb[65].mxu0 }
0x1165   :  { %v4789_v39 = vadd.f32 %v6737_v30, %v4788_v38  ;;  %8234 = vmatprep.subr.msk.bf16.mxu0 %vm8748_vm4, %v8232_v35 }
0x1166   :  { %8237 = vmatpush3.bf16.xpose.msk.msra.mxu0 %vm8748_vm4, %v8232_v35 }
0x1167   :  { %v9510_v40 = vpack.c.bf16 %v4794_v37, %v4789_v39  ;;  %8253 = vmatprep.subr.bf16.mxu0 %v8252_v36 }
0x116d   :  { %7745 = vmatmul.mubr.msk.f32.vlgmr.msra.gmra.mrb[66].mxu0 %vm447_vm3, %v4689_v52 }
0x116e   :  { %8255 = vmatpush3.bf16.msra.mxu0 %v8252_v36  ;;  %7776 = vmatprep.mubr.msk.f32.mxu0 %vm69_vm2, %v9249_v56 }
0x116f   :  { %8257 = vmatprep.subr.bf16.mxu0 %v8256_v27 }
0x1172   :  { %8259 = vmatpush3.bf16.msra.mxu0 %v8256_v27 }
0x1173   :  { %8261 = vmatprep.subr.bf16.mxu0 %v8260_v53 }
0x1175   :  { %7777 = vmatmul.mubr.msk.f32.vlgmr.msra.gmra.mrb[68].mxu0 %vm69_vm2, %v9251_v57 }
0x1176   :  { %7779 = vmatprep.mubr.msk.f32.mxu0 %vm69_vm2, %v9266_v43  ;;  %8263 = vmatpush3.bf16.msra.mxu0 %v8260_v53 }
0x1177   :  { %8265 = vmatprep.subr.bf16.mxu0 %v8264_v17 }
0x1179   :  { %7780 = vmatmul.mubr.msk.f32.gmra.mrb[70].mxu0 %vm69_vm2, %v9268_v3 }
0x117a   :  { %8267 = vmatpush3.bf16.msra.mxu0 %v8264_v17  ;;  %7790 = vmatprep.mubr.msk.f32.mxu0 %vm69_vm2, %v9249_v56 }
0x117d   :  { %7791 = vmatmul.mubr.msk.f32.vlgmr.msra.gmra.mrb[72].mxu0 %vm69_vm2, %v9251_v57 }
0x117e   :  { %7793 = vmatprep.mubr.msk.f32.mxu0 %vm69_vm2, %v9266_v43 }
0x1181   :  { %7794 = vmatmul.mubr.msk.f32.gmra.mrb[74].mxu0 %vm69_vm2, %v9268_v3 }
0x11dc   :  { %v4244_v31 = vpop.xlane.xlu1 %4243 }
0x11dd   :  { %v4252_v61 = vsub.f32 %v9453_v59, %v4244_v31  ;;  %v4241_v5 = vpop.xlane.xlu0 %4240 }
0x11de   :  { %v4251_v63 = vsub.f32 %v9455_v62, %v4241_v5 }
0x11df   :  { %v4257_v2 = vmul.f32 1.442695, %v4252_v61 }
0x11e0   :  { %v4255_v6 = vmul.f32 1.442695, %v4251_v63  ;;  %v4250_v8 = vpop.xlane.xlu1 %4249 }
0x11e1   :  { %8464 = vpow2.f32 %v4257_v2  ;;  %v4254_v10 = vsub.f32 %v9461_v50, %v4250_v8  ;;  %v4247_v15 = vpop.xlane.xlu0 %4246 }
0x11e2   :  { %8466 = vpow2.f32 %v4255_v6  ;;  %v4253_v0 = vsub.f32 %v9463_v7, %v4247_v15  ;;  %v6776_v6 = vld [vmem:[%s9904_s2 + $0x21] ss:$0 sm:$0xff] }
0x11e3   :  { %v4261_v1 = vmul.f32 1.442695, %v4254_v10 }
0x11e4   :  { %v4259_v18 = vmul.f32 1.442695, %v4253_v0  ;;  %v3738_v19 = vpop.xlane.xlu1 %3737 }
0x11e5   :  { %8468 = vpow2.f32 %v4261_v1  ;;  %v3746_v20 = vsub.f32 %v9466_v49, %v3738_v19  ;;  %v3735_v59 = vpop.xlane.xlu0 %3734 }
0x11e6   :  { %8470 = vpow2.f32 %v4259_v18  ;;  %v3745_v62 = vsub.f32 %v9471_v9, %v3735_v59 }
0x11e7   :  { %v3751_v34 = vmul.f32 1.442695, %v3746_v20 }
0x11e8   :  { %v3749_v21 = vmul.f32 1.442695, %v3745_v62  ;;  %v3744_v25 = vpop.xlane.xlu1 %3743 }
0x11e9   :  { %8472 = vpow2.f32 %v3751_v34  ;;  %v3748_v50 = vsub.f32 %v9476_v14, %v3744_v25  ;;  %v3741_v26 = vpop.xlane.xlu0 %3740 }
0x11ea   :  { %8474 = vpow2.f32 %v3749_v21  ;;  %v3747_v7 = vsub.f32 %v9484_v16, %v3741_v26 }
0x11eb   :  { %v9555_v30 = vpop.eup %8464  ;;  %v3755_v11 = vmul.f32 1.442695, %v3748_v50 }
0x11ec   :  { %v9557_v60 = vpop.eup %8466  ;;  %v3753_v49 = vmul.f32 1.442695, %v3747_v7  ;;  %v4266_v13 = vsel %vm626_vm5, %v9555_v30, 0.0 }
0x11ed   :  { %8476 = vpow2.f32 %v3755_v11  ;;  %4267 = vadd.xlane.f32.xlu1 %v4266_v13  ;;  %v4263_v9 = vsel %vm626_vm5, %v9557_v60, 0.0 }
0x11ee   :  { %8478 = vpow2.f32 %v3753_v49  ;;  %4264 = vadd.xlane.f32.xlu0 %v4263_v9 }
0x11ef   :  { %v9563_v14 = vpop.eup %8468 }
0x11f0   :  { %v9565_v23 = vpop.eup %8470  ;;  %v4272_v16 = vsel %vm626_vm5, %v9563_v14, 0.0 }
0x11f1   :  { %4273 = vadd.xlane.f32.xlu1 %v4272_v16  ;;  %v4269_v24 = vsel %vm626_vm5, %v9565_v23, 0.0 }
0x11f2   :  { %4270 = vadd.xlane.f32.xlu0 %v4269_v24 }
0x11f3   :  { %v9571_v22 = vpop.eup %8472 }
0x11f4   :  { %v9573_v35 = vpop.eup %8474  ;;  %v3760_v32 = vsel %vm626_vm5, %v9571_v22, 0.0 }
0x11f5   :  { %3761 = vadd.xlane.f32.xlu1 %v3760_v32  ;;  %v3757_v36 = vsel %vm626_vm5, %v9573_v35, 0.0 }
0x11f6   :  { %3758 = vadd.xlane.f32.xlu0 %v3757_v36 }
0x11f7   :  { %v9579_v37 = vpop.eup %8476 }
0x11f8   :  { %v9581_v38 = vpop.eup %8478  ;;  %v3766_v39 = vsel %vm626_vm5, %v9579_v37, 0.0 }
0x11f9   :  { %3767 = vadd.xlane.f32.xlu1 %v3766_v39  ;;  %v3763_v47 = vsel %vm626_vm5, %v9581_v38, 0.0 }
0x11fa   :  { %3764 = vadd.xlane.f32.xlu0 %v3763_v47 }
0x1240   :  { %v7746_v51 = vpop.f32.mrb[66].mxu0 }
0x1241   :  { %v9587_v52 = vmul.f32 0.35355338, %v7746_v51  ;;  %v4969_v27 = vpop.f32.mrb[67].mxu0 }
0x1242   :  { %v9589_v42 = vmul.f32 0.35355338, %v4969_v27 }
0x1243   :  { %v5072_v29 = vsel %vm626_vm5, %v9587_v52, -inf }
0x1244   :  { %5073 = vmax.xlane.f32.xlu1 %v5072_v29  ;;  %v5069_v53 = vsel %vm626_vm5, %v9589_v42, -inf }
0x1245   :  { %5070 = vmax.xlane.f32.xlu0 %v5069_v53 }
0x1248   :  { %v7778_v58 = vpop.f32.mrb[68].mxu0 }
0x1249   :  { %v5355_v17 = vpop.f32.mrb[69].mxu0  ;;  %v5361_v34 = vadd.f32 %v7778_v58, %v6767_v54  ;;  %v6745_v58 = vld [vmem:[%s9903_s5 + $0x1d8] sm:$0xff] }
0x124a   :  { %v5356_v31 = vadd.f32 %v6767_v54, %v5355_v17 }
0x124c   :  { %v7781_v61 = vpop.f32.mrb[70].mxu0  ;;  %7814 = vmatprep.mubr.msk.f32.mxu0 %vm447_vm3, %v5356_v31 }
0x124d   :  { %v9599_v5 = vadd.f32 %v7781_v61, %v6767_v54  ;;  %v5365_v63 = vpop.f32.mrb[71].mxu0  ;;  %v6746_v61 = vld [vmem:[%s9904_s2 + $0x24] ss:$0 sm:$0xff] }
0x124e   :  { %v9601_v2 = vadd.f32 %v6767_v54, %v5365_v63  ;;  %v6744_v54 = vld [vmem:[%s9903_s5 + $0x1d0] sm:$0xff] }
0x1250   :  { %v7792_v8 = vpop.f32.mrb[72].mxu0 }
0x1251   :  { %v5456_v10 = vadd.f32 %v7792_v8, %v6776_v6  ;;  %v5450_v15 = vpop.f32.mrb[73].mxu0 }
0x1252   :  { %v5451_v0 = vadd.f32 %v6776_v6, %v5450_v15 }
0x1254   :  { %v8276_v1 = vpack.c.bf16 %v5456_v10, %v5451_v0  ;;  %v7795_v18 = vpop.f32.mrb[74].mxu0 }
0x1255   :  { %v5466_v19 = vadd.f32 %v7795_v18, %v6776_v6  ;;  %v5460_v20 = vpop.f32.mrb[75].mxu0 }
0x1256   :  { %v5461_v59 = vadd.f32 %v6776_v6, %v5460_v20  ;;  %8278 = vmatprep.subr.msk.bf16.mxu0 %vm8748_vm4, %v8276_v1 }
0x1257   :  { %8281 = vmatpush3.bf16.xpose.msk.msra.mxu0 %vm8748_vm4, %v8276_v1 }
0x1258   :  { %v9610_v62 = vpack.c.bf16 %v5466_v19, %v5461_v59 }
0x125e   :  { %7815 = vmatmul.mubr.msk.f32.vlgmr.msra.gmra.mrb[76].mxu0 %vm447_vm3, %v5361_v34 }
0x127a   :  { %v4268_v21 = vpop.xlane.xlu1 %4267 }
0x127b   :  { %8480 = vrcp.f32 %v4268_v21  ;;  %v4265_v25 = vpop.xlane.xlu0 %4264 }
0x127c   :  { %8482 = vrcp.f32 %v4265_v25 }
0x127e   :  { %v4274_v50 = vpop.xlane.xlu1 %4273 }
0x127f   :  { %8484 = vrcp.f32 %v4274_v50  ;;  %v4271_v26 = vpop.xlane.xlu0 %4270 }
0x1280   :  { %8486 = vrcp.f32 %v4271_v26 }
0x1282   :  { %v3762_v7 = vpop.xlane.xlu1 %3761 }
0x1283   :  { %8488 = vrcp.f32 %v3762_v7  ;;  %v3759_v11 = vpop.xlane.xlu0 %3758 }
0x1284   :  { %8490 = vrcp.f32 %v3759_v11 }
0x1285   :  { %v8481_v49 = vpop.eup %8480 }
0x1286   :  { %v8483_v13 = vpop.eup %8482  ;;  %v3768_v9 = vpop.xlane.xlu1 %3767  ;;  %v4280_v32 = vmul.f32 %v8481_v49, %v9555_v30  ;;  %v6742_v30 = vld [vmem:[%s9903_s5 + $0x1c0] sm:$0xff] }
0x1287   :  { %8492 = vrcp.f32 %v3768_v9  ;;  %v3765_v16 = vpop.xlane.xlu0 %3764  ;;  %v4279_v24 = vmul.f32 %v8483_v13, %v9557_v60  ;;  %v6743_v60 = vld [vmem:[%s9903_s5 + $0x1c8] sm:$0xff] }
0x1288   :  { %8494 = vrcp.f32 %v3765_v16 }
0x1289   :  { %v8485_v36 = vpop.eup %8484  ;;  %7674 = vmatprep.mubr.msk.f32.mxu1 %vm626_vm5, %v4279_v24 }
0x128a   :  { %v8487_v39 = vpop.eup %8486  ;;  %7675 = vmatmul.mubr.msk.f32.vlgmr.msra.gmra.mrb[52].mxu1 %vm626_vm5, %v4280_v32  ;;  %v4282_v51 = vmul.f32 %v8485_v36, %v9563_v14 }
0x128b   :  { %8199 = vmatpush3.bf16.msra.mxu1 %v9414_v46  ;;  %v4281_v47 = vmul.f32 %v8487_v39, %v9565_v23  ;;  %v8224_v23 = vpack.c.bf16 %v6743_v60, %v6742_v30 }
0x128c   :  { %8201 = vmatprep.subr.bf16.mxu1 %v9333_v48 }
0x128d   :  { %v8489_v27 = vpop.eup %8488  ;;  %7681 = vmatprep.mubr.msk.f32.mxu1 %vm626_vm5, %v4281_v47 }
0x128e   :  { %v8491_v29 = vpop.eup %8490  ;;  %7682 = vmatmul.mubr.msk.f32.vlgmr.msra.gmra.mrb[54].mxu1 %vm626_vm5, %v4282_v51  ;;  %v3774_v14 = vmul.f32 %v8489_v27, %v9571_v22 }
0x128f   :  { %8203 = vmatpush3.bf16.msra.mxu1 %v9333_v48  ;;  %v3773_v46 = vmul.f32 %v8491_v29, %v9573_v35  ;;  %v8228_v35 = vpack.c.bf16 %v6745_v58, %v6744_v54 }
0x1290   :  { %8205 = vmatprep.subr.bf16.mxu1 %v9350_v33 }
0x1291   :  { %v8493_v53 = vpop.eup %8492  ;;  %7688 = vmatprep.mubr.msk.f32.mxu1 %vm626_vm5, %v3773_v46 }
0x1292   :  { %v8495_v17 = vpop.eup %8494  ;;  %7689 = vmatmul.mubr.msk.f32.vlgmr.msra.gmra.mrb[52].mxu1 %vm626_vm5, %v3774_v14  ;;  %v3776_v22 = vmul.f32 %v8493_v53, %v9579_v37 }
0x1293   :  { %8207 = vmatpush3.bf16.msra.mxu1 %v9350_v33  ;;  %v3775_v48 = vmul.f32 %v8495_v17, %v9581_v38 }
0x1294   :  { %8225 = vmatprep.subr.bf16.mxu1 %v8224_v23 }
0x1295   :  { %7695 = vmatprep.mubr.msk.f32.mxu1 %vm626_vm5, %v3775_v48  ;;  %v6781_v48 = vld [vmem:[%s9903_s5 + $0x1e0] sm:$0xff] }
0x1296   :  { %7696 = vmatmul.mubr.msk.f32.vlgmr.msra.gmra.mrb[54].mxu1 %vm626_vm5, %v3776_v22  ;;  %v6782_v22 = vld [vmem:[%s9903_s5 + $0x1e8] sm:$0xff] }
0x1297   :  { %8227 = vmatpush3.bf16.msra.mxu1 %v8224_v23  ;;  %7734 = vmatprep.mubr.msk.f32.mxu1 %vm69_vm2, %v9249_v56 }
0x1298   :  { %8229 = vmatprep.subr.bf16.mxu1 %v8228_v35 }
0x129b   :  { %8231 = vmatpush3.bf16.msra.mxu1 %v8228_v35  ;;  %v8268_v35 = vpack.c.bf16 %v6782_v22, %v6781_v48 }
0x129c   :  { %8240 = vmatprep.subr.msk.bf16.mxu1 %vm8748_vm4, %v9510_v40 }
0x129e   :  { %7735 = vmatmul.mubr.msk.f32.vlgmr.msra.gmra.mrb[56].mxu1 %vm69_vm2, %v9251_v57 }
0x129f   :  { %7737 = vmatprep.mubr.msk.f32.mxu1 %vm69_vm2, %v9266_v43 }
0x12a2   :  { %7738 = vmatmul.mubr.msk.f32.gmra.mrb[58].mxu1 %vm69_vm2, %v9268_v3 }
0x12a3   :  { %7751 = vmatprep.mubr.msk.f32.mxu1 %vm447_vm3, %v9495_v28 }
0x12a4   :  { %8243 = vmatpush3.bf16.xpose.msk.msra.mxu1 %vm8748_vm4, %v9510_v40 }
0x12ab   :  { %7752 = vmatmul.mubr.msk.f32.vlgmr.msra.gmra.mrb[60].mxu1 %vm447_vm3, %v9493_v4 }
0x12d1   :  { %v5074_v38 = vpop.xlane.xlu1 %5073 }
0x12d2   :  { %v5071_v31 = vpop.xlane.xlu0 %5070  ;;  %v5082_v63 = vsub.f32 %v9587_v52, %v5074_v38 }
0x12d3   :  { %v5081_v6 = vsub.f32 %v9589_v42, %v5071_v31  ;;  %v6783_v31 = vld [vmem:[%s9903_s5 + $0x1f0] sm:$0xff] }
0x12d4   :  { %v5087_v40 = vmul.f32 1.442695, %v5082_v63 }
0x12d5   :  { %v5085_v0 = vmul.f32 1.442695, %v5081_v6 }
0x12d6   :  { %8496 = vpow2.f32 %v5087_v40 }
0x12d7   :  { %8498 = vpow2.f32 %v5085_v0 }
0x12e0   :  { %v8497_v50 = vpop.eup %8496 }
0x12e1   :  { %v8499_v7 = vpop.eup %8498  ;;  %v5096_v11 = vsel %vm626_vm5, %v8497_v50, 0.0 }
0x12e2   :  { %v5093_v49 = vsel %vm626_vm5, %v8499_v7, 0.0 }
0x1331   :  { %v7816_v33 = vpop.f32.mrb[76].mxu0 }
0x1332   :  { %v5641_v37 = vpop.f32.mrb[77].mxu0  ;;  %v5738_v30 = vmul.f32 0.35355338, %v7816_v33 }
0x1333   :  { %v5737_v46 = vmul.f32 0.35355338, %v5641_v37 }
0x1334   :  { %v5744_v58 = vsel %vm626_vm5, %v5738_v30, -inf }
0x1335   :  { %v5741_v17 = vsel %vm626_vm5, %v5737_v46, -inf }
0x1371   :  { %v7736_v28 = vpop.f32.mrb[56].mxu1 }
0x1372   :  { %v4878_v8 = vadd.f32 %v7736_v28, %v6746_v61  ;;  %v4872_v10 = vpop.f32.mrb[57].mxu1 }
0x1373   :  { %v4873_v15 = vadd.f32 %v6746_v61, %v4872_v10 }
0x1375   :  { %v8244_v1 = vpack.c.bf16 %v4878_v8, %v4873_v15  ;;  %v7739_v4 = vpop.f32.mrb[58].mxu1 }
0x1376   :  { %v4888_v18 = vadd.f32 %v7739_v4, %v6746_v61  ;;  %v4882_v19 = vpop.f32.mrb[59].mxu1 }
0x1377   :  { %v4883_v20 = vadd.f32 %v6746_v61, %v4882_v19  ;;  %8245 = vmatprep.subr.bf16.mxu1 %v8244_v1  ;;  %v6784_v61 = vld [vmem:[%s9903_s5 + $0x1f8] sm:$0xff] }
0x1378   :  { %8247 = vmatpush3.bf16.msra.mxu1 %v8244_v1  ;;  %v8272_v8 = vpack.c.bf16 %v6784_v61, %v6783_v31 }
0x1379   :  { %v8248_v59 = vpack.c.bf16 %v4888_v18, %v4883_v20 }
0x137b   :  { %8249 = vmatprep.subr.bf16.mxu1 %v8248_v59 }
0x137e   :  { %v7753_v52 = vpop.f32.mrb[60].mxu1 }
0x137f   :  { %v5068_v34 = vmul.f32 0.35355338, %v7753_v52  ;;  %v5056_v42 = vpop.f32.mrb[61].mxu1 }
0x1380   :  { %v5067_v21 = vmul.f32 0.35355338, %v5056_v42 }
0x1381   :  { %v5078_v25 = vsel %vm626_vm5, %v5068_v34, -inf }
0x1382   :  { %5079 = vmax.xlane.f32.xlu1 %v5078_v25  ;;  %v5075_v26 = vsel %vm626_vm5, %v5067_v21, -inf }
0x1383   :  { %5076 = vmax.xlane.f32.xlu0 %v5075_v26 }
0x1386   :  { %5097 = vadd.xlane.f32.xlu1 %v5096_v11 }
0x1387   :  { %5094 = vadd.xlane.f32.xlu0 %v5093_v49 }
0x140f   :  { %v5080_v13 = vpop.xlane.xlu1 %5079 }
0x1410   :  { %v5084_v9 = vsub.f32 %v5068_v34, %v5080_v13  ;;  %v5077_v16 = vpop.xlane.xlu0 %5076 }
0x1411   :  { %v5083_v24 = vsub.f32 %v5067_v21, %v5077_v16 }
0x1412   :  { %v5091_v32 = vmul.f32 1.442695, %v5084_v9 }
0x1413   :  { %v5089_v36 = vmul.f32 1.442695, %v5083_v24  ;;  %v5098_v39 = vpop.xlane.xlu1 %5097 }
0x1414   :  { %8500 = vpow2.f32 %v5091_v32  ;;  %v5095_v47 = vpop.xlane.xlu0 %5094 }
0x1415   :  { %8502 = vpow2.f32 %v5089_v36 }
0x1416   :  { %8504 = vrcp.f32 %v5098_v39 }
0x1417   :  { %8506 = vrcp.f32 %v5095_v47 }
0x141e   :  { %v8501_v51 = vpop.eup %8500 }
0x141f   :  { %v8503_v27 = vpop.eup %8502  ;;  %v5102_v60 = vsel %vm626_vm5, %v8501_v51, 0.0 }
0x1420   :  { %v8505_v29 = vpop.eup %8504  ;;  %5103 = vadd.xlane.f32.xlu1 %v5102_v60  ;;  %v5099_v14 = vsel %vm626_vm5, %v8503_v27, 0.0 }
0x1421   :  { %v8507_v23 = vpop.eup %8506  ;;  %5100 = vadd.xlane.f32.xlu0 %v5099_v14  ;;  %v5110_v54 = vmul.f32 %v8505_v29, %v8497_v50 }
0x1422   :  { %v5109_v53 = vmul.f32 %v8507_v23, %v8499_v7 }
0x1424   :  { %7758 = vmatprep.mubr.msk.f32.mxu1 %vm626_vm5, %v5109_v53  ;;  %5745 = vmax.xlane.f32.xlu1 %v5744_v58 }
0x1425   :  { %7759 = vmatmul.mubr.msk.f32.vlgmr.msra.gmra.mrb[52].mxu1 %vm626_vm5, %v5110_v54  ;;  %5742 = vmax.xlane.f32.xlu0 %v5741_v17 }
0x1426   :  { %8251 = vmatpush3.bf16.msra.mxu1 %v8248_v59 }
0x1427   :  { %8269 = vmatprep.subr.bf16.mxu1 %v8268_v35 }
0x14ad   :  { %v5104_v33 = vpop.xlane.xlu1 %5103 }
0x14ae   :  { %8508 = vrcp.f32 %v5104_v33  ;;  %v5101_v37 = vpop.xlane.xlu0 %5100 }
0x14af   :  { %8510 = vrcp.f32 %v5101_v37 }
0x14b2   :  { %v5743_v10 = vpop.xlane.xlu0 %5742 }
0x14b3   :  { %v5753_v15 = vsub.f32 %v5737_v46, %v5743_v10  ;;  %v6806_v10 = vld [vmem:[%s9905_s4 + $0x28] sm:$0xff] }
0x14b5   :  { %v5757_v4 = vmul.f32 1.442695, %v5753_v15  ;;  %v6808_v15 = vld [vmem:[%s9905_s4 + $0x38] sm:$0xff] }
0x14b8   :  { %v8509_v38 = vpop.eup %8508 }
0x14b9   :  { %v8511_v63 = vpop.eup %8510  ;;  %v5112_v28 = vmul.f32 %v8509_v38, %v8501_v51 }
0x14ba   :  { %v5111_v6 = vmul.f32 %v8511_v63, %v8503_v27 }
0x14bc   :  { %7765 = vmatprep.mubr.msk.f32.mxu1 %vm626_vm5, %v5111_v6 }
0x14bd   :  { %7766 = vmatmul.mubr.msk.f32.vlgmr.msra.gmra.mrb[54].mxu1 %vm626_vm5, %v5112_v28 }
0x14be   :  { %8271 = vmatpush3.bf16.msra.mxu1 %v8268_v35  ;;  %7804 = vmatprep.mubr.msk.f32.mxu1 %vm69_vm2, %v9249_v56  ;;  %v5746_v56 = vpop.xlane.xlu1 %5745  ;;  %v6802_v35 = vld [vmem:[%s9904_s2 + $0x17] ss:$0 sm:$0xff] }
0x14bf   :  { %8273 = vmatprep.subr.bf16.mxu1 %v8272_v8 }
0x14c2   :  { %8275 = vmatpush3.bf16.msra.mxu1 %v8272_v8 }
0x14c3   :  { %8284 = vmatprep.subr.msk.bf16.mxu1 %vm8748_vm4, %v9610_v62 }
0x14c5   :  { %7805 = vmatmul.mubr.msk.f32.vlgmr.msra.gmra.mrb[62].mxu1 %vm69_vm2, %v9251_v57  ;;  %v6785_v57 = vld [vmem:[%s9904_s2 + $0x25] ss:$0 sm:$0xff] }
0x14c6   :  { %7807 = vmatprep.mubr.msk.f32.mxu1 %vm69_vm2, %v9266_v43  ;;  %v5754_v43 = vsub.f32 %v5738_v30, %v5746_v56  ;;  %v6805_v56 = vld [vmem:[%s9905_s4 + $0x20] sm:$0xff] }
0x14c9   :  { %7808 = vmatmul.mubr.msk.f32.gmra.mrb[64].mxu1 %vm69_vm2, %v9268_v3 }
0x14ca   :  { %7821 = vmatprep.mubr.msk.f32.mxu1 %vm447_vm3, %v9601_v2  ;;  %v5759_v2 = vmul.f32 1.442695, %v5754_v43  ;;  %v6807_v43 = vld [vmem:[%s9905_s4 + $0x30] sm:$0xff] }
0x14cb   :  { %8287 = vmatpush3.bf16.xpose.msk.msra.mxu1 %vm8748_vm4, %v9610_v62 }
0x14cc   :  { %8512 = vpow2.f32 %v5759_v2 }
0x14cd   :  { %8514 = vpow2.f32 %v5757_v4 }
0x14d2   :  { %7822 = vmatmul.mubr.msk.f32.vlgmr.msra.gmra.mrb[66].mxu1 %vm447_vm3, %v9599_v5 }
0x14d6   :  { %v8513_v25 = vpop.eup %8512 }
0x14d7   :  { %v8515_v26 = vpop.eup %8514  ;;  %v5768_v7 = vsel %vm626_vm5, %v8513_v25, 0.0 }
0x14d8   :  { %v5765_v11 = vsel %vm626_vm5, %v8515_v26, 0.0 }
0x1598   :  { %v7806_v40 = vpop.f32.mrb[62].mxu1 }
0x1599   :  { %v5550_v3 = vadd.f32 %v7806_v40, %v6785_v57  ;;  %v5544_v0 = vpop.f32.mrb[63].mxu1  ;;  %v8300_v40 = vpack.c.bf16 %v6808_v15, %v6807_v43  ;;  %v6827_v43 = vld [vmem:[%s9903_s5 + $0x168] sm:$0xff] }
0x159a   :  { %v5545_v1 = vadd.f32 %v6785_v57, %v5544_v0 }
0x159c   :  { %v8288_v18 = vpack.c.bf16 %v5550_v3, %v5545_v1  ;;  %v7809_v12 = vpop.f32.mrb[64].mxu1 }
0x159d   :  { %v5560_v62 = vadd.f32 %v7809_v12, %v6785_v57  ;;  %v5554_v19 = vpop.f32.mrb[65].mxu1 }
0x159e   :  { %v5555_v20 = vadd.f32 %v6785_v57, %v5554_v19  ;;  %8289 = vmatprep.subr.bf16.mxu1 %v8288_v18  ;;  %v8296_v57 = vpack.c.bf16 %v6806_v10, %v6805_v56  ;;  %v6825_v56 = vld [vmem:[%s9903_s5 + $0x158] sm:$0xff] }
0x159f   :  { %8291 = vmatpush3.bf16.msra.mxu1 %v8288_v18 }
0x15a0   :  { %v8292_v5 = vpack.c.bf16 %v5560_v62, %v5555_v20  ;;  %8297 = vmatprep.subr.bf16.mxu0 %v8296_v57 }
0x15a1   :  { %8299 = vmatpush3.bf16.msra.mxu0 %v8296_v57  ;;  %v6826_v57 = vld [vmem:[%s9903_s5 + $0x160] sm:$0xff] }
0x15a2   :  { %8293 = vmatprep.subr.bf16.mxu1 %v8292_v5  ;;  %8301 = vmatprep.subr.bf16.mxu0 %v8300_v40  ;;  %v8328_v15 = vpack.c.bf16 %v6827_v43, %v6826_v57  ;;  %v6830_v43 = vld [vmem:[%s9904_s2 + $0x18] ss:$0 sm:$0xff] }
0x15a5   :  { %v7823_v59 = vpop.f32.mrb[66].mxu1  ;;  %8303 = vmatpush3.bf16.msra.mxu0 %v8300_v40  ;;  %v6828_v40 = vld [vmem:[%s9903_s5 + $0x170] sm:$0xff] }
0x15a6   :  { %v5740_v52 = vmul.f32 0.35355338, %v7823_v59  ;;  %v5728_v34 = vpop.f32.mrb[67].mxu1 }
0x15a7   :  { %v5739_v42 = vmul.f32 0.35355338, %v5728_v34 }
0x15a8   :  { %v5750_v21 = vsel %vm626_vm5, %v5740_v52, -inf }
0x15a9   :  { %5751 = vmax.xlane.f32.xlu1 %v5750_v21  ;;  %v5747_v50 = vsel %vm626_vm5, %v5739_v42, -inf }
0x15aa   :  { %5748 = vmax.xlane.f32.xlu0 %v5747_v50 }
0x15ad   :  { %5769 = vadd.xlane.f32.xlu1 %v5768_v7 }
0x15ae   :  { %5766 = vadd.xlane.f32.xlu0 %v5765_v11 }
0x1636   :  { %v5752_v49 = vpop.xlane.xlu1 %5751 }
0x1637   :  { %v5756_v13 = vsub.f32 %v5740_v52, %v5752_v49  ;;  %v5749_v9 = vpop.xlane.xlu0 %5748 }
0x1638   :  { %v5755_v16 = vsub.f32 %v5739_v42, %v5749_v9 }
0x1639   :  { %v5763_v24 = vmul.f32 1.442695, %v5756_v13 }
0x163a   :  { %v5761_v32 = vmul.f32 1.442695, %v5755_v16  ;;  %v5770_v36 = vpop.xlane.xlu1 %5769 }
0x163b   :  { %8516 = vpow2.f32 %v5763_v24  ;;  %v5767_v39 = vpop.xlane.xlu0 %5766 }
0x163c   :  { %8518 = vpow2.f32 %v5761_v32 }
0x163d   :  { %8520 = vrcp.f32 %v5770_v36 }
0x163e   :  { %8522 = vrcp.f32 %v5767_v39 }
0x1645   :  { %v8517_v47 = vpop.eup %8516 }
0x1646   :  { %v8519_v51 = vpop.eup %8518  ;;  %v5774_v27 = vsel %vm626_vm5, %v8517_v47, 0.0 }
0x1647   :  { %v8521_v30 = vpop.eup %8520  ;;  %5775 = vadd.xlane.f32.xlu1 %v5774_v27  ;;  %v5771_v60 = vsel %vm626_vm5, %v8519_v51, 0.0 }
0x1648   :  { %v8523_v29 = vpop.eup %8522  ;;  %5772 = vadd.xlane.f32.xlu0 %v5771_v60  ;;  %v5782_v14 = vmul.f32 %v8521_v30, %v8513_v25  ;;  %v9781_v60 = vld [vmem:[%s9904_s2 + $0x16] ss:$0 sm:$0xff] }
0x1649   :  { %v5781_v46 = vmul.f32 %v8523_v29, %v8515_v26 }
0x164b   :  { %7828 = vmatprep.mubr.msk.f32.mxu1 %vm626_vm5, %v5781_v46 }
0x164c   :  { %7829 = vmatmul.mubr.msk.f32.vlgmr.msra.gmra.mrb[52].mxu1 %vm626_vm5, %v5782_v14 }
0x164d   :  { %8295 = vmatpush3.bf16.msra.mxu1 %v8292_v5 }
0x16d4   :  { %v5776_v23 = vpop.xlane.xlu1 %5775 }
0x16d5   :  { %8524 = vrcp.f32 %v5776_v23  ;;  %v5773_v53 = vpop.xlane.xlu0 %5772 }
0x16d6   :  { %8526 = vrcp.f32 %v5773_v53  ;;  %v6814_v53 = vld [vmem:[%s9903_s5 + $0x100] sm:$0xff] }
0x16df   :  { %v8525_v54 = vpop.eup %8524 }
0x16e0   :  { %v8527_v58 = vpop.eup %8526  ;;  %v5784_v48 = vmul.f32 %v8525_v54, %v8517_v47  ;;  %v9776_v47 = vld [vmem:[%s9904_s2 + $0x15] ss:$0 sm:$0xff]  ;;  %v6815_v54 = vld [vmem:[%s9903_s5 + $0x108] sm:$0xff] }
0x16e1   :  { %v5783_v17 = vmul.f32 %v8527_v58, %v8519_v51  ;;  %v6816_v58 = vld [vmem:[%s9903_s5 + $0x110] sm:$0xff] }
0x16e3   :  { %7835 = vmatprep.mubr.msk.f32.mxu1 %vm626_vm5, %v5783_v17  ;;  %v8304_v17 = vpack.c.bf16 %v6815_v54, %v6814_v53 }
0x16e4   :  { %7836 = vmatmul.mubr.msk.f32.vlgmr.msra.gmra.mrb[54].mxu1 %vm626_vm5, %v5784_v48  ;;  %v6817_v48 = vld [vmem:[%s9903_s5 + $0x118] sm:$0xff] }
0x16e5   :  { %8305 = vmatprep.subr.bf16.mxu0 %v8304_v17 }
0x171f   :  { %v7830_v22 = vpop.f32.mrb[52].mxu1 }
0x1720   :  { %v5952_v33 = vadd.f32 %v7830_v22, %v9183_v41  ;;  %v5857_v37 = vpop.f32.mrb[53].mxu1  ;;  %v8308_v22 = vpack.c.bf16 %v6817_v48, %v6816_v58 }
0x1721   :  { %v5951_v38 = vadd.f32 %v5857_v37, %v9186_v45 }
0x1722   :  { %v9729_v31 = vadd.f32 %v6802_v35, %v5952_v33  ;;  %v6819_v33 = vld [vmem:[%s9903_s5 + $0x128] sm:$0xff] }
0x1723   :  { %v9731_v61 = vadd.f32 %v6802_v35, %v5951_v38  ;;  %v6820_v38 = vld [vmem:[%s9903_s5 + $0x130] sm:$0xff] }
0x1724   :  { %v5969_v63 = vsel %vm69_vm2, %v9729_v31, 0.0  ;;  %v5983_v6 = vmul.f32 %v9729_v31, %v9729_v31 }
0x1725   :  { %5970 = vadd.xlane.f32.xlu1 %v5969_v63  ;;  %v5966_v28 = vsel %vm69_vm2, %v9731_v61, 0.0  ;;  %v5982_v41 = vmul.f32 %v9731_v61, %v9731_v61  ;;  %v6821_v63 = vld [vmem:[%s9903_s5 + $0x138] sm:$0xff] }
0x1726   :  { %5967 = vadd.xlane.f32.xlu0 %v5966_v28  ;;  %v5989_v45 = vsel %vm69_vm2, %v5983_v6, 0.0  ;;  %v8316_v6 = vpack.c.bf16 %v6821_v63, %v6820_v38  ;;  %v6822_v28 = vld [vmem:[%s9903_s5 + $0x140] sm:$0xff] }
0x1727   :  { %v5986_v8 = vsel %vm69_vm2, %v5982_v41, 0.0  ;;  %v6823_v41 = vld [vmem:[%s9903_s5 + $0x148] sm:$0xff] }
0x1729   :  { %5990 = vadd.xlane.f32.xlu1 %v5989_v45  ;;  %v8320_v45 = vpack.c.bf16 %v6823_v41, %v6822_v28 }
0x172a   :  { %5987 = vadd.xlane.f32.xlu0 %v5986_v8  ;;  %v6824_v8 = vld [vmem:[%s9903_s5 + $0x150] sm:$0xff] }
0x172b   :  { %v8324_v10 = vpack.c.bf16 %v6825_v56, %v6824_v8 }
0x17b2   :  { %v5971_v3 = vpop.xlane.xlu1 %5970 }
0x17b3   :  { %v5979_v0 = vmul.f32 0.03125, %v5971_v3  ;;  %v5968_v1 = vpop.xlane.xlu0 %5967  ;;  %v6829_v3 = vld [vmem:[%s9903_s5 + $0x178] sm:$0xff] }
0x17b4   :  { %v5978_v2 = vmul.f32 0.03125, %v5968_v1 }
0x17b5   :  { %v6003_v18 = vmul.f32 %v5979_v0, %v5979_v0  ;;  %v6015_v32 = vsub.f32 %v9729_v31, %v5979_v0  ;;  %v8332_v0 = vpack.c.bf16 %v6829_v3, %v6828_v40 }
0x17b6   :  { %v5991_v4 = vpop.xlane.xlu1 %5990  ;;  %v6002_v20 = vmul.f32 %v5978_v2, %v5978_v2  ;;  %v6014_v39 = vsub.f32 %v9731_v61, %v5978_v2 }
0x17b7   :  { %v5999_v12 = vmul.f32 0.03125, %v5991_v4  ;;  %v5988_v62 = vpop.xlane.xlu0 %5987  ;;  %v7837_v19 = vpop.f32.mrb[54].mxu1 }
0x17b8   :  { %v5998_v5 = vmul.f32 0.03125, %v5988_v62  ;;  %v5954_v59 = vadd.f32 %v7837_v19, %v9199_v44  ;;  %v5938_v52 = vpop.f32.mrb[55].mxu1 }
0x17b9   :  { %v6007_v34 = vsub.f32 %v5999_v12, %v6003_v18  ;;  %v5953_v42 = vadd.f32 %v5938_v52, %v9202_v55 }
0x17ba   :  { %v6006_v21 = vsub.f32 %v5998_v5, %v6002_v20  ;;  %v9757_v25 = vadd.f32 %v6802_v35, %v5954_v59 }
0x17bb   :  { %v6011_v50 = vmax.f32 %v6007_v34, 0.0  ;;  %v9759_v26 = vadd.f32 %v6802_v35, %v5953_v42  ;;  %v6818_v35 = vld [vmem:[%s9903_s5 + $0x120] sm:$0xff] }
0x17bc   :  { %v6010_v7 = vmax.f32 %v6006_v21, 0.0  ;;  %v5975_v11 = vsel %vm69_vm2, %v9757_v25, 0.0  ;;  %v5985_v49 = vmul.f32 %v9757_v25, %v9757_v25  ;;  %v8312_v37 = vpack.c.bf16 %v6819_v33, %v6818_v35 }
0x17bd   :  { %v6019_v13 = vadd.f32 1e-06, %v6011_v50  ;;  %5976 = vadd.xlane.f32.xlu1 %v5975_v11  ;;  %v5972_v44 = vsel %vm69_vm2, %v9759_v26, 0.0  ;;  %v5984_v55 = vmul.f32 %v9759_v26, %v9759_v26 }
0x17be   :  { %v6018_v9 = vadd.f32 1e-06, %v6010_v7  ;;  %5973 = vadd.xlane.f32.xlu0 %v5972_v44  ;;  %v5995_v16 = vsel %vm69_vm2, %v5985_v49, 0.0 }
0x17bf   :  { %8528 = vrsqrt.f32 %v6019_v13  ;;  %v5992_v24 = vsel %vm69_vm2, %v5984_v55, 0.0 }
0x17c0   :  { %8530 = vrsqrt.f32 %v6018_v9 }
0x17c1   :  { %5996 = vadd.xlane.f32.xlu1 %v5995_v16 }
0x17c2   :  { %5993 = vadd.xlane.f32.xlu0 %v5992_v24 }
0x17c9   :  { %v8529_v36 = vpop.eup %8528 }
0x17ca   :  { %v8531_v51 = vpop.eup %8530  ;;  %v6027_v27 = vmul.f32 %v8529_v36, %v6015_v32 }
0x17cb   :  { %v6026_v30 = vmul.f32 %v8531_v51, %v6014_v39  ;;  %v6809_v39 = vld [vmem:[%s9904_s2 + $0x19] ss:$0 sm:$0xff] }
0x17cc   :  { %v6035_v29 = vmul.f32 %v9776_v47, %v6027_v27 }
0x17cd   :  { %v6034_v46 = vmul.f32 %v9776_v47, %v6026_v30 }
0x17ce   :  { %v6043_v23 = vadd.f32 %v9781_v60, %v6035_v29 }
0x17cf   :  { %v6042_v14 = vadd.f32 %v9781_v60, %v6034_v46 }
0x17d1   :  { %7846 = vmatprep.mubr.msk.f32.mxu0 %vm69_vm2, %v6042_v14 }
0x17d2   :  { %7847 = vmatmul.mubr.msk.f32.vlgmr.msra.gmra.mrb[78].mxu0 %vm69_vm2, %v6043_v23 }
0x17d3   :  { %8307 = vmatpush3.bf16.msra.mxu0 %v8304_v17 }
0x17d4   :  { %8309 = vmatprep.subr.bf16.mxu0 %v8308_v22 }
0x17d7   :  { %8311 = vmatpush3.bf16.msra.mxu0 %v8308_v22 }
0x17d8   :  { %8313 = vmatprep.subr.bf16.mxu0 %v8312_v37 }
0x17db   :  { %8315 = vmatpush3.bf16.msra.mxu0 %v8312_v37 }
0x17dc   :  { %8317 = vmatprep.subr.bf16.mxu0 %v8316_v6 }
0x17df   :  { %8319 = vmatpush3.bf16.msra.mxu0 %v8316_v6 }
0x17e0   :  { %8321 = vmatprep.subr.bf16.mxu0 %v8320_v45 }
0x17e3   :  { %8323 = vmatpush3.bf16.msra.mxu0 %v8320_v45 }
0x17e4   :  { %8325 = vmatprep.subr.bf16.mxu0 %v8324_v10 }
0x17e7   :  { %8327 = vmatpush3.bf16.msra.mxu0 %v8324_v10 }
0x17e8   :  { %8329 = vmatprep.subr.bf16.mxu0 %v8328_v15 }
0x17eb   :  { %8331 = vmatpush3.bf16.msra.mxu0 %v8328_v15 }
0x17ec   :  { %8333 = vmatprep.subr.bf16.mxu0 %v8332_v0 }
0x17ef   :  { %8335 = vmatpush3.bf16.msra.mxu0 %v8332_v0 }
0x184a   :  { %v5977_v1 = vpop.xlane.xlu1 %5976 }
0x184b   :  { %v5981_v2 = vmul.f32 0.03125, %v5977_v1  ;;  %v5974_v4 = vpop.xlane.xlu0 %5973 }
0x184c   :  { %v5980_v18 = vmul.f32 0.03125, %v5974_v4 }
0x184d   :  { %v6005_v62 = vmul.f32 %v5981_v2, %v5981_v2  ;;  %v6017_v11 = vsub.f32 %v9757_v25, %v5981_v2 }
0x184e   :  { %v5997_v12 = vpop.xlane.xlu1 %5996  ;;  %v6004_v5 = vmul.f32 %v5980_v18, %v5980_v18  ;;  %v6016_v13 = vsub.f32 %v9759_v26, %v5980_v18 }
0x184f   :  { %v6001_v19 = vmul.f32 0.03125, %v5997_v12  ;;  %v5994_v20 = vpop.xlane.xlu0 %5993 }
0x1850   :  { %v6000_v59 = vmul.f32 0.03125, %v5994_v20 }
0x1851   :  { %v6009_v52 = vsub.f32 %v6001_v19, %v6005_v62 }
0x1852   :  { %v6008_v34 = vsub.f32 %v6000_v59, %v6004_v5  ;;  %v6835_v59 = vld [vmem:[%s9905_s4 + $0x50] sm:$0xff] }
0x1853   :  { %v6013_v42 = vmax.f32 %v6009_v52, 0.0  ;;  %v6836_v52 = vld [vmem:[%s9905_s4 + $0x58] sm:$0xff] }
0x1854   :  { %v6012_v21 = vmax.f32 %v6008_v34, 0.0  ;;  %v8340_v34 = vpack.c.bf16 %v6836_v52, %v6835_v59 }
0x1855   :  { %v6021_v50 = vadd.f32 1e-06, %v6013_v42 }
0x1856   :  { %v6020_v7 = vadd.f32 1e-06, %v6012_v21 }
0x1857   :  { %8532 = vrsqrt.f32 %v6021_v50 }
0x1858   :  { %8534 = vrsqrt.f32 %v6020_v7 }
0x1861   :  { %v8533_v49 = vpop.eup %8532 }
0x1862   :  { %v8535_v44 = vpop.eup %8534  ;;  %v6029_v55 = vmul.f32 %v8533_v49, %v6017_v11 }
0x1863   :  { %v6028_v9 = vmul.f32 %v8535_v44, %v6016_v13 }
0x1864   :  { %v6037_v16 = vmul.f32 %v9776_v47, %v6029_v55 }
0x1865   :  { %v6036_v24 = vmul.f32 %v9776_v47, %v6028_v9 }
0x1866   :  { %v6045_v36 = vadd.f32 %v9781_v60, %v6037_v16 }
0x1867   :  { %v6044_v32 = vadd.f32 %v9781_v60, %v6036_v24 }
0x1869   :  { %7849 = vmatprep.mubr.msk.f32.mxu0 %vm69_vm2, %v6044_v32 }
0x186a   :  { %7850 = vmatmul.mubr.msk.f32.gmra.mrb[80].mxu0 %vm69_vm2, %v6045_v36 }
0x18a5   :  { %v7848_v51 = vpop.f32.mrb[78].mxu0 }
0x18a6   :  { %v6140_v27 = vadd.f32 %v7848_v51, %v6809_v39  ;;  %v6134_v30 = vpop.f32.mrb[79].mxu0 }
0x18a7   :  { %v6135_v29 = vadd.f32 %v6809_v39, %v6134_v30 }
0x18a8   :  { %v6158_v46 = vmul.f32 0.70710677, %v6140_v27  ;;  %v6154_v58 = vmul.f32 0.5, %v6140_v27 }
0x18a9   :  { %v6157_v14 = vmul.f32 0.70710677, %v6135_v29  ;;  %v6153_v60 = vmul.f32 0.5, %v6135_v29 }
0x18aa   :  { %8536 = verf.f32 %v6158_v46 }
0x18ab   :  { %8538 = verf.f32 %v6157_v14 }
0x18b4   :  { %v8537_v47 = vpop.eup %8536 }
0x18b5   :  { %v8539_v23 = vpop.eup %8538  ;;  %v6166_v53 = vadd.f32 1.0, %v8537_v47 }
0x18b6   :  { %v6165_v54 = vadd.f32 1.0, %v8539_v23 }
0x18b7   :  { %v6170_v48 = vmul.f32 %v6166_v53, %v6154_v58 }
0x18b8   :  { %v6169_v17 = vmul.f32 %v6165_v54, %v6153_v60 }
0x18ba   :  { %7884 = vmatprep.mubr.f32.mxu0 %v6169_v17 }
0x18bb   :  { %7885 = vmatmul.mubr.f32.vlgmr.msra.gmra.mrb[82].mxu0 %v6170_v48 }
0x193d   :  { %v7851_v22 = vpop.f32.mrb[80].mxu0 }
0x193e   :  { %v6150_v35 = vadd.f32 %v7851_v22, %v6809_v39  ;;  %v6144_v33 = vpop.f32.mrb[81].mxu0  ;;  %v6831_v22 = vld [vmem:[%s9904_s2 + $0x26] ss:$0 sm:$0xff] }
0x193f   :  { %v6145_v37 = vadd.f32 %v6809_v39, %v6144_v33 }
0x1940   :  { %v6160_v38 = vmul.f32 0.70710677, %v6150_v35  ;;  %v6156_v56 = vmul.f32 0.5, %v6150_v35 }
0x1941   :  { %v6159_v63 = vmul.f32 0.70710677, %v6145_v37  ;;  %v6155_v45 = vmul.f32 0.5, %v6145_v37 }
0x1942   :  { %8540 = verf.f32 %v6160_v38  ;;  %v6832_v38 = vld [vmem:[%s9904_s2 + $0x27] ss:$0 sm:$0xff] }
0x1943   :  { %8542 = verf.f32 %v6159_v63 }
0x194c   :  { %v8541_v6 = vpop.eup %8540 }
0x194d   :  { %v8543_v28 = vpop.eup %8542  ;;  %v6168_v41 = vadd.f32 1.0, %v8541_v6 }
0x194e   :  { %v6167_v8 = vadd.f32 1.0, %v8543_v28 }
0x194f   :  { %v6172_v57 = vmul.f32 %v6168_v41, %v6156_v56 }
0x1950   :  { %v6171_v10 = vmul.f32 %v6167_v8, %v6155_v45 }
0x1952   :  { %7887 = vmatprep.mubr.f32.mxu0 %v6171_v10 }
0x1953   :  { %7888 = vmatmul.mubr.f32.gmra.mrb[84].mxu0 %v6172_v57 }
0x198e   :  { %v7886_v15 = vpop.f32.mrb[82].mxu0 }
0x198f   :  { %v6267_v40 = vadd.f32 %v7886_v15, %v6830_v43  ;;  %v6261_v3 = vpop.f32.mrb[83].mxu0 }
0x1990   :  { %v6262_v0 = vadd.f32 %v6830_v43, %v6261_v3 }
0x1991   :  { %v6281_v1 = vadd.f32 %v6267_v40, %v9729_v31  ;;  %v6833_v31 = vld [vmem:[%s9905_s4 + $0x40] sm:$0xff] }
0x1992   :  { %v6280_v2 = vadd.f32 %v6262_v0, %v9731_v61  ;;  %v6834_v61 = vld [vmem:[%s9905_s4 + $0x48] sm:$0xff] }
0x1993   :  { %v6289_v4 = vsel %vm69_vm2, %v6281_v1, 0.0  ;;  %v6303_v18 = vmul.f32 %v6281_v1, %v6281_v1  ;;  %v8336_v5 = vpack.c.bf16 %v6834_v61, %v6833_v31 }
0x1994   :  { %6290 = vadd.xlane.f32.xlu1 %v6289_v4  ;;  %v6286_v12 = vsel %vm69_vm2, %v6280_v2, 0.0  ;;  %v6302_v62 = vmul.f32 %v6280_v2, %v6280_v2 }
0x1995   :  { %6287 = vadd.xlane.f32.xlu0 %v6286_v12  ;;  %v6309_v19 = vsel %vm69_vm2, %v6303_v18, 0.0  ;;  %8337 = vmatprep.subr.bf16.mxu1 %v8336_v5 }
0x1996   :  { %v6306_v20 = vsel %vm69_vm2, %v6302_v62, 0.0  ;;  %8339 = vmatpush3.bf16.msra.mxu1 %v8336_v5 }
0x1997   :  { %8341 = vmatprep.subr.bf16.mxu1 %v8340_v34 }
0x1998   :  { %6310 = vadd.xlane.f32.xlu1 %v6309_v19 }
0x1999   :  { %6307 = vadd.xlane.f32.xlu0 %v6306_v20 }
0x199a   :  { %8343 = vmatpush3.bf16.msra.mxu1 %v8340_v34 }
0x1a21   :  { %v6291_v42 = vpop.xlane.xlu1 %6290 }
0x1a22   :  { %v6299_v21 = vmul.f32 0.03125, %v6291_v42  ;;  %v6288_v50 = vpop.xlane.xlu0 %6287 }
0x1a23   :  { %v6298_v7 = vmul.f32 0.03125, %v6288_v50  ;;  %v6837_v50 = vld [vmem:[%s9904_s2 + $0x28] ss:$0 sm:$0xff] }
0x1a24   :  { %v6323_v49 = vmul.f32 %v6299_v21, %v6299_v21 }
0x1a25   :  { %v6311_v11 = vpop.xlane.xlu1 %6310  ;;  %v6322_v9 = vmul.f32 %v6298_v7, %v6298_v7  ;;  %v6334_v48 = vsub.f32 %v6280_v2, %v6298_v7 }
0x1a26   :  { %v6319_v13 = vmul.f32 0.03125, %v6311_v11  ;;  %v6308_v44 = vpop.xlane.xlu0 %6307  ;;  %v7889_v55 = vpop.f32.mrb[84].mxu0 }
0x1a27   :  { %v6318_v16 = vmul.f32 0.03125, %v6308_v44  ;;  %v6277_v24 = vadd.f32 %v7889_v55, %v6830_v43  ;;  %v6271_v32 = vpop.f32.mrb[85].mxu0 }
0x1a28   :  { %v6327_v36 = vsub.f32 %v6319_v13, %v6323_v49  ;;  %v6272_v39 = vadd.f32 %v6830_v43, %v6271_v32 }
0x1a29   :  { %v6326_v51 = vsub.f32 %v6318_v16, %v6322_v9  ;;  %v6283_v27 = vadd.f32 %v6277_v24, %v9757_v25 }
0x1a2a   :  { %v6331_v30 = vmax.f32 %v6327_v36, 0.0  ;;  %v6282_v29 = vadd.f32 %v6272_v39, %v9759_v26  ;;  %v6335_v26 = vsub.f32 %v6281_v1, %v6299_v21 }
0x1a2b   :  { %v6330_v46 = vmax.f32 %v6326_v51, 0.0  ;;  %v6295_v14 = vsel %vm69_vm2, %v6283_v27, 0.0  ;;  %v6305_v47 = vmul.f32 %v6283_v27, %v6283_v27 }
0x1a2c   :  { %v6339_v23 = vadd.f32 1e-06, %v6331_v30  ;;  %6296 = vadd.xlane.f32.xlu1 %v6295_v14  ;;  %v6292_v53 = vsel %vm69_vm2, %v6282_v29, 0.0  ;;  %v6304_v60 = vmul.f32 %v6282_v29, %v6282_v29 }
0x1a2d   :  { %v6338_v54 = vadd.f32 1e-06, %v6330_v46  ;;  %6293 = vadd.xlane.f32.xlu0 %v6292_v53  ;;  %v6315_v58 = vsel %vm69_vm2, %v6305_v47, 0.0 }
0x1a2e   :  { %8544 = vrsqrt.f32 %v6339_v23  ;;  %v6312_v25 = vsel %vm69_vm2, %v6304_v60, 0.0 }
0x1a2f   :  { %8546 = vrsqrt.f32 %v6338_v54 }
0x1a30   :  { %6316 = vadd.xlane.f32.xlu1 %v6315_v58 }
0x1a31   :  { %6313 = vadd.xlane.f32.xlu0 %v6312_v25 }
0x1a38   :  { %v8545_v17 = vpop.eup %8544 }
0x1a39   :  { %v8547_v35 = vpop.eup %8546  ;;  %v6347_v33 = vmul.f32 %v8545_v17, %v6335_v26 }
0x1a3a   :  { %v6346_v37 = vmul.f32 %v8547_v35, %v6334_v48 }
0x1a3b   :  { %v6355_v63 = vmul.f32 %v6831_v22, %v6347_v33 }
0x1a3c   :  { %v6354_v6 = vmul.f32 %v6831_v22, %v6346_v37 }
0x1a3d   :  { %v6363_v41 = vadd.f32 %v6832_v38, %v6355_v63 }
0x1a3e   :  { %v6362_v28 = vadd.f32 %v6832_v38, %v6354_v6 }
0x1a40   :  { %7898 = vmatprep.mubr.msk.f32.mxu1 %vm69_vm2, %v6362_v28 }
0x1a41   :  { %7899 = vmatmul.mubr.msk.f32.vlgmr.msra.gmra.mrb[68].mxu1 %vm69_vm2, %v6363_v41 }
0x1ab9   :  { %v6297_v45 = vpop.xlane.xlu1 %6296 }
0x1aba   :  { %v6301_v8 = vmul.f32 0.03125, %v6297_v45  ;;  %v6294_v56 = vpop.xlane.xlu0 %6293 }
0x1abb   :  { %v6300_v10 = vmul.f32 0.03125, %v6294_v56 }
0x1abc   :  { %v6325_v43 = vmul.f32 %v6301_v8, %v6301_v8  ;;  %v6337_v19 = vsub.f32 %v6283_v27, %v6301_v8 }
0x1abd   :  { %v6317_v57 = vpop.xlane.xlu1 %6316  ;;  %v6324_v3 = vmul.f32 %v6300_v10, %v6300_v10  ;;  %v6336_v31 = vsub.f32 %v6282_v29, %v6300_v10 }
0x1abe   :  { %v6321_v15 = vmul.f32 0.03125, %v6317_v57  ;;  %v6314_v40 = vpop.xlane.xlu0 %6313 }
0x1abf   :  { %v6320_v0 = vmul.f32 0.03125, %v6314_v40 }
0x1ac0   :  { %v6329_v1 = vsub.f32 %v6321_v15, %v6325_v43 }
0x1ac1   :  { %v6328_v2 = vsub.f32 %v6320_v0, %v6324_v3 }
0x1ac2   :  { %v6333_v4 = vmax.f32 %v6329_v1, 0.0 }
0x1ac3   :  { %v6332_v18 = vmax.f32 %v6328_v2, 0.0 }
0x1ac4   :  { %v6341_v12 = vadd.f32 1e-06, %v6333_v4 }
0x1ac5   :  { %v6340_v62 = vadd.f32 1e-06, %v6332_v18 }
0x1ac6   :  { %8548 = vrsqrt.f32 %v6341_v12 }
0x1ac7   :  { %8550 = vrsqrt.f32 %v6340_v62 }
0x1ad0   :  { %v8549_v20 = vpop.eup %8548 }
0x1ad1   :  { %v8551_v61 = vpop.eup %8550  ;;  %v6349_v5 = vmul.f32 %v8549_v20, %v6337_v19 }
0x1ad2   :  { %v6348_v59 = vmul.f32 %v8551_v61, %v6336_v31 }
0x1ad3   :  { %v6357_v52 = vmul.f32 %v6831_v22, %v6349_v5 }
0x1ad4   :  { %v6356_v34 = vmul.f32 %v6831_v22, %v6348_v59 }
0x1ad5   :  { %v6365_v21 = vadd.f32 %v6832_v38, %v6357_v52 }
0x1ad6   :  { %v6364_v42 = vadd.f32 %v6832_v38, %v6356_v34 }
0x1ad8   :  { %7901 = vmatprep.mubr.msk.f32.mxu1 %vm69_vm2, %v6364_v42 }
0x1ad9   :  { %7902 = vmatmul.mubr.msk.f32.gmra.mrb[70].mxu1 %vm69_vm2, %v6365_v21 }
0x1b14   :  { %v7900_v7 = vpop.f32.mrb[68].mxu1 }
0x1b15   :  { %v6460_v11 = vadd.f32 %v7900_v7, %v6837_v50  ;;  %v6454_v49 = vpop.f32.mrb[69].mxu1 }
0x1b16   :  { %v6455_v13 = vadd.f32 %v6837_v50, %v6454_v49 }
0x1b17   :  { %6474 = vst [vmem:[%s9906_s6 + $0x8] sm:$0xff] %v6460_v11 }
0x1b18   :  { %6473 = vst [vmem:[%s9906_s6] sm:$0xff] %v6455_v13 }
0x1bac   :  { %v7903_v44 = vpop.f32.mrb[70].mxu1 }
0x1bad   :  { %v6470_v55 = vadd.f32 %v7903_v44, %v6837_v50  ;;  %v6464_v9 = vpop.f32.mrb[71].mxu1 }
0x1bae   :  { %v6465_v16 = vadd.f32 %v6837_v50, %v6464_v9 }
0x1baf   :  { %6476 = vst [vmem:[%s9906_s6 + $0x18] sm:$0xff] %v6470_v55 }
0x1bb0   :  { %6475 = vst [vmem:[%s9906_s6 + $0x10] sm:$0xff] %v6465_v16 }

</bundles_post_ra>
